<compile_context>
chip_gen: v5e
topology: v5e:2x2
jax: 0.10.0
libtpu: 0.0.40
codegen_flags: <defaults>
</compile_context>

<pallas_src>
import math
import functools

import jax
import jax.numpy as jnp
from jax import lax
from jax.experimental import pallas as pl
from jax.experimental.pallas import tpu as pltpu

# torch uses float('-inf') in masked_fill; a large negative finite value is
# numerically identical (exp underflows to 0) and avoids inf arithmetic.
_NEG_INF = -1e30
_LANE = 128
_SUBLANE = 8
# Fits the default scoped-VMEM budget on v5e / v6e / v7x.
_VMEM_LIMIT = 32 * 1024 * 1024


def _round_up(x, m):
    return (x + m - 1) // m * m


# ----------------------------- Pallas kernels ------------------------------

def _fused_linear_kernel(*refs, ln, eps, has_bias, has_res):
    """[LayerNorm] -> bf16 matmul (f32 acc) -> [+bias] -> [+residual]."""
    it = iter(refs)
    x_ref = next(it)
    w_ref = next(it)
    g_ref = next(it) if ln else None
    be_ref = next(it) if ln else None
    b_ref = next(it) if has_bias else None
    r_ref = next(it) if has_res else None
    o_ref = next(it)

    x = x_ref[...]                                   # (bm, K) f32
    if ln:
        mu = jnp.mean(x, axis=-1, keepdims=True)
        xc = x - mu
        var = jnp.mean(xc * xc, axis=-1, keepdims=True)
        x = xc * lax.rsqrt(var + eps) * g_ref[...] + be_ref[...]
    acc = jnp.dot(x.astype(jnp.bfloat16), w_ref[...],
                  preferred_element_type=jnp.float32)
    if has_bias:
        acc = acc + b_ref[...]
    if has_res:
        acc = acc + r_ref[...]
    o_ref[...] = acc


def fused_linear(x, w, b=None, *, ln=None, residual=None, eps=1e-5,
                 block_rows=256, block_cols=256):
    """y = [x + ] (LN?(x) @ W + b), grid-tiled, bf16 matmul, f32 accumulate."""
    lead, k = x.shape[:-1], x.shape[-1]
    n = w.shape[1]
    x2 = x.reshape(-1, k).astype(jnp.float32)
    rows = x2.shape[0]

    bm = min(block_rows, _round_up(rows, _SUBLANE))
    rows_p = _round_up(rows, bm)
    n_p = _round_up(n, _LANE)                        # lane-dense output slab
    bn = min(block_cols, n_p)
    if n_p % bn:
        bn = _LANE

    x2 = jnp.pad(x2, ((0, rows_p - rows), (0, 0)))
    w_p = jnp.pad(w.astype(jnp.bfloat16), ((0, 0), (0, n_p - n)))

    args = [x2, w_p]
    in_specs = [pl.BlockSpec((bm, k), lambda i, j: (i, 0)),
                pl.BlockSpec((k, bn), lambda i, j: (0, j))]

    has_ln = ln is not None
    if has_ln:
        g, be = ln
        args += [g.reshape(1, k).astype(jnp.float32),
                 be.reshape(1, k).astype(jnp.float32)]
        in_specs += [pl.BlockSpec((1, k), lambda i, j: (0, 0)),
                     pl.BlockSpec((1, k), lambda i, j: (0, 0))]
    has_bias = b is not None
    if has_bias:
        b_p = jnp.pad(b.astype(jnp.float32), (0, n_p - n)).reshape(1, n_p)
        args.append(b_p)
        in_specs.append(pl.BlockSpec((1, bn), lambda i, j: (0, j)))
    has_res = residual is not None
    if has_res:
        r2 = residual.reshape(-1, n).astype(jnp.float32)
        r2 = jnp.pad(r2, ((0, rows_p - rows), (0, n_p - n)))
        args.append(r2)
        in_specs.append(pl.BlockSpec((bm, bn), lambda i, j: (i, j)))

    out = pl.pallas_call(
        functools.partial(_fused_linear_kernel, ln=has_ln, eps=eps,
                          has_bias=has_bias, has_res=has_res),
        grid=(rows_p // bm, n_p // bn),
        out_shape=jax.ShapeDtypeStruct((rows_p, n_p), jnp.float32),
        in_specs=in_specs,
        out_specs=pl.BlockSpec((bm, bn), lambda i, j: (i, j)),
        compiler_params=pltpu.CompilerParams(
            dimension_semantics=("parallel", "parallel"),
            vmem_limit_bytes=_VMEM_LIMIT),
    )(*args)
    return out[:rows, :n].reshape(*lead, n)


def _attention_kernel(q_ref, k_ref, v_ref, bias_ref, o_ref, *, scale):
    # q: (H, n, dh), k/v: (H, m, dh), bias: (1, n, m) — broadcast over heads.
    q = q_ref[...].astype(jnp.bfloat16)
    k = k_ref[...].astype(jnp.bfloat16)
    v = v_ref[...].astype(jnp.bfloat16)
    dots = jnp.einsum('hid,hjd->hij', q, k,
                      preferred_element_type=jnp.float32) * scale
    dots = dots + bias_ref[...]                      # additive mask/sims bias
    dots = dots - jnp.max(dots, axis=-1, keepdims=True)
    p = jnp.exp(dots)
    attn = p * pl.reciprocal(jnp.sum(p, axis=-1, keepdims=True), approx=True)
    o_ref[...] = jnp.einsum('hij,hjd->hid', attn.astype(jnp.bfloat16), v,
                            preferred_element_type=jnp.float32)


def attention_core(q, k, v, bias, *, heads, scale):
    # q: (B*H, n, dh), k/v: (B*H, m, dh), bias: (B, n, m)
    bh, n, dh = q.shape
    m = k.shape[1]
    bsz = bias.shape[0]
    return pl.pallas_call(
        functools.partial(_attention_kernel, scale=scale),
        grid=(bsz,),
        out_shape=jax.ShapeDtypeStruct((bh, n, dh), jnp.float32),
        in_specs=[pl.BlockSpec((heads, n, dh), lambda b: (b, 0, 0)),
                  pl.BlockSpec((heads, m, dh), lambda b: (b, 0, 0)),
                  pl.BlockSpec((heads, m, dh), lambda b: (b, 0, 0)),
                  pl.BlockSpec((1, n, m), lambda b: (b, 0, 0))],
        out_specs=pl.BlockSpec((heads, n, dh), lambda b: (b, 0, 0)),
        compiler_params=pltpu.CompilerParams(
            dimension_semantics=("parallel",),
            vmem_limit_bytes=_VMEM_LIMIT),
    )(q, k, v, bias)


def _xent_kernel(logits_ref, labels_ref, o_ref, acc_ref, *, rows_valid):
    i = pl.program_id(0)

    @pl.when(i == 0)
    def _():
        acc_ref[...] = jnp.zeros_like(acc_ref)

    lg = logits_ref[...]                             # (bm, Vp) f32
    lab = labels_ref[...]                            # (bm, 1) int32
    bm = lg.shape[0]
    mx = jnp.max(lg, axis=-1, keepdims=True)
    lse = jnp.log(jnp.sum(jnp.exp(lg - mx), axis=-1, keepdims=True)) + mx
    col = lax.broadcasted_iota(jnp.int32, lg.shape, 1)
    picked = jnp.sum(jnp.where(col == lab, lg, 0.0), axis=-1, keepdims=True)
    row = lax.broadcasted_iota(jnp.int32, (bm, 1), 0) + i * bm
    contrib = jnp.sum(jnp.where(row < rows_valid, lse - picked, 0.0))
    acc_ref[...] = acc_ref[...] + contrib

    @pl.when(i == pl.num_programs(0) - 1)
    def _():
        o_ref[...] = acc_ref[...] / rows_valid


def cross_entropy_with_labels(logits, labels):
    """Mean token-level CE from raw logits + int labels (no one-hot)."""
    rows, vocab = logits.shape
    bm = min(256, _round_up(rows, _SUBLANE))
    rows_p = _round_up(rows, bm)
    v_p = _round_up(vocab, _LANE)
    lg = jnp.pad(logits.astype(jnp.float32),
                 ((0, rows_p - rows), (0, v_p - vocab)),
                 constant_values=_NEG_INF)
    lab = jnp.pad(labels.astype(jnp.int32), (0, rows_p - rows)).reshape(rows_p, 1)
    out = pl.pallas_call(
        functools.partial(_xent_kernel, rows_valid=rows),
        grid=(rows_p // bm,),
        out_shape=jax.ShapeDtypeStruct((1, 1), jnp.float32),
        in_specs=[pl.BlockSpec((bm, v_p), lambda i: (i, 0)),
                  pl.BlockSpec((bm, 1), lambda i: (i, 0))],
        out_specs=pl.BlockSpec((1, 1), lambda i: (0, 0)),
        scratch_shapes=[pltpu.VMEM((1, 1), jnp.float32)],
        compiler_params=pltpu.CompilerParams(
            dimension_semantics=("arbitrary",),
            vmem_limit_bytes=_VMEM_LIMIT),
    )(lg, lab)
    return out[0, 0]


# --------------------------- model building blocks --------------------------

def _gelu_exact(x):
    return 0.5 * x * (1.0 + lax.erf(x / math.sqrt(2.0)))


def _split_heads(t, bsz, seq, heads, dh):
    return t.reshape(bsz, seq, heads, dh).transpose(0, 2, 1, 3).reshape(
        bsz * heads, seq, dh)


def _merge_heads(t, bsz, seq, heads, dh):
    return t.reshape(bsz, heads, seq, dh).transpose(0, 2, 1, 3).reshape(
        bsz, seq, heads * dh)


def self_attention(x, p, ln, mask, heads, scale, causal=True):
    """x + to_out(attn(LN(x)));  LN / bias / residual fused into the linears."""
    bsz, n, d = x.shape
    dh = d // heads
    qkv = fused_linear(x, p['w_qkv'], ln=ln)          # (b, n, 3d)
    qkv = qkv.reshape(bsz, n, 3, heads, dh)
    q = qkv[:, :, 0].transpose(0, 2, 1, 3).reshape(bsz * heads, n, dh)
    k = qkv[:, :, 1].transpose(0, 2, 1, 3).reshape(bsz * heads, n, dh)
    v = qkv[:, :, 2].transpose(0, 2, 1, 3).reshape(bsz * heads, n, dh)

    # Per-batch additive bias (NOT broadcast over heads — done in-kernel).
    bias = jnp.zeros((bsz, n, n), jnp.float32)
    if mask is not None:
        pair = mask[:, :, None] & mask[:, None, :]
        bias = jnp.where(pair, bias, _NEG_INF)
    if causal:
        cm = jnp.triu(jnp.ones((n, n), bool), k=1)
        bias = jnp.where(cm[None], _NEG_INF, bias)

    out = attention_core(q, k, v, bias, heads=heads, scale=scale)
    out = _merge_heads(out, bsz, n, heads, dh)
    return fused_linear(out, p['w_o'], p['b_o'], residual=x)


def cross_attention(x, context, doc_similarities, p, ln, mask, context_mask,
                    heads, scale):
    bsz, n, d = x.shape
    dh = d // heads
    q = _split_heads(fused_linear(x, p['w_q'], ln=ln), bsz, n, heads, dh)

    _, m_docs, n_ctx, _ = context.shape
    mt = m_docs * n_ctx
    ctx = context.reshape(bsz, mt, d)
    kv = fused_linear(ctx, p['w_kv']).reshape(bsz, mt, 2, heads, dh)
    k = kv[:, :, 0].transpose(0, 2, 1, 3).reshape(bsz * heads, mt, dh)
    v = kv[:, :, 1].transpose(0, 2, 1, 3).reshape(bsz * heads, mt, dh)

    sims = jnp.repeat(doc_similarities[:, :, None], n_ctx, axis=2).reshape(bsz, mt)
    bias = jnp.broadcast_to((sims * p['beta'])[:, None, :], (bsz, n, mt))
    cmask = context_mask.reshape(bsz, mt) if context_mask is not None else None
    if (mask is not None) or (cmask is not None):
        if mask is None:
            mask = jnp.ones((bsz, n), bool)
        if cmask is None:
            cmask = jnp.ones((bsz, mt), bool)
        pair = mask[:, :, None] & cmask[:, None, :]
        bias = jnp.where(pair, bias, _NEG_INF)

    out = attention_core(q, k, v, bias, heads=heads, scale=scale)
    out = _merge_heads(out, bsz, n, heads, dh)
    return fused_linear(out, p['w_o'], p['b_o'], residual=x)


def feed_forward(x, p, ln):
    h = fused_linear(x, p['w1'], p['b1'], ln=ln)       # LN + bias fused
    h = _gelu_exact(h)                                 # exact erf-GELU (JAX)
    return fused_linear(h, p['w2'], p['b2'], residual=x)  # bias + residual fused


def _attn_ff_block(x, p, mask, heads, scale, causal=True):
    x = self_attention(x, p['attn'], (p['ln1_g'], p['ln1_b']), mask, heads,
                       scale, causal=causal)
    x = feed_forward(x, p['ff'], (p['ln2_g'], p['ln2_b']))
    return x


def encoder_forward(params, cfg, tokens, src_mask):
    bsz, n = tokens.shape
    heads, scale = cfg['heads'], cfg['scale']
    x = params['token_emb'][tokens] + params['enc_pos_emb'][:n][None]
    cls = jnp.broadcast_to(params['cls'][None], (bsz, 1, cfg['dim']))
    x = jnp.concatenate([cls, x], axis=1)
    if src_mask is not None:
        src_mask = jnp.concatenate([jnp.ones((bsz, 1), bool), src_mask], axis=1)
    # NOTE: the reference Encoder builds SelfAttention with default causal=True
    # (a quirk of marge_pytorch) — reproduced exactly here.
    for p in params['enc_head']:
        x = _attn_ff_block(x, p, src_mask, heads, scale, causal=True)
    cls_tokens = x[:, 0]
    for p in params['enc_tail']:
        x = _attn_ff_block(x, p, src_mask, heads, scale, causal=True)
    return x, cls_tokens


def decoder_forward(params, cfg, tokens, context, similarities, src_mask,
                    context_mask):
    bsz, n = tokens.shape
    heads, scale = cfg['heads'], cfg['scale']
    x = params['token_emb'][tokens] + params['dec_pos_emb'][:n][None]
    for p in params['dec_head']:
        x = _attn_ff_block(x, p, src_mask, heads, scale, causal=True)
    for p in params['dec_tail']:
        x = self_attention(x, p['attn'], (p['ln1_g'], p['ln1_b']), src_mask,
                           heads, scale, causal=True)
        x = feed_forward(x, p['ff1'], (p['ln2_g'], p['ln2_b']))
        x = cross_attention(x, context, similarities, p['xattn'],
                            (p['ln3_g'], p['ln3_b']), src_mask, context_mask,
                            heads, scale)
        x = feed_forward(x, p['ff2'], (p['ln4_g'], p['ln4_b']))
    return fused_linear(x, params['to_logits_w'], params['to_logits_b'])


def marge_forward(params, cfg, evidence, target, target_embeds, src_mask,
                  tgt_mask):
    b, m, n_ev = evidence.shape
    ev = evidence.reshape(b * m, n_ev)
    enc_src_mask = src_mask.reshape(b * m, n_ev) if src_mask is not None else None
    encodings, evidence_embeds = encoder_forward(params, cfg, ev, enc_src_mask)
    encodings = encodings.reshape(b, m, n_ev + 1, cfg['dim'])
    evidence_embeds = evidence_embeds.reshape(b, m, cfg['dim'])
    similarities = jnp.einsum('bmd,bd->bm', evidence_embeds, target_embeds)
    context_mask = (jnp.concatenate([jnp.ones((b, m, 1), bool), src_mask],
                                    axis=-1)
                    if src_mask is not None else None)
    # AutoregressiveWrapper: teacher forcing + mean token-level cross entropy.
    # (ignore_index=-100 never appears in the synthetic targets.)
    xi, xo = target[:, :-1], target[:, 1:]
    logits = decoder_forward(params, cfg, xi, encodings, similarities,
                             tgt_mask[:, :-1], context_mask)
    vocab = logits.shape[-1]
    return cross_entropy_with_labels(logits.reshape(-1, vocab), xo.reshape(-1))


# ------------------------------ parameter init ------------------------------

def init_params(key, cfg):
    dim, vocab, max_len = cfg['dim'], cfg['num_tokens'], cfg['max_seq_len']
    keys = iter(jax.random.split(key, 256))

    def nrm(shape, std=0.02):
        return jax.random.normal(next(keys), shape, jnp.float32) * std

    def ln():
        return jnp.ones((dim,), jnp.float32), jnp.zeros((dim,), jnp.float32)

    def attn_params():
        return dict(w_qkv=nrm((dim, 3 * dim)), w_o=nrm((dim, dim)),
                    b_o=jnp.zeros((dim,), jnp.float32))

    def ff_params(mult):
        h = dim * mult
        return dict(w1=nrm((dim, h)), b1=jnp.zeros((h,), jnp.float32),
                    w2=nrm((h, dim)), b2=jnp.zeros((dim,), jnp.float32))

    def block(ff_mult):
        g1, b1 = ln(); g2, b2 = ln()
        return dict(ln1_g=g1, ln1_b=b1, attn=attn_params(),
                    ln2_g=g2, ln2_b=b2, ff=ff_params(ff_mult))

    def tail_block():
        g1, b1 = ln(); g2, b2 = ln(); g3, b3 = ln(); g4, b4 = ln()
        return dict(
            ln1_g=g1, ln1_b=b1, attn=attn_params(),
            ln2_g=g2, ln2_b=b2, ff1=ff_params(4),
            ln3_g=g3, ln3_b=b3,
            xattn=dict(w_q=nrm((dim, dim)), w_kv=nrm((dim, 2 * dim)),
                       beta=jnp.float32(1.0), w_o=nrm((dim, dim)),
                       b_o=jnp.zeros((dim,), jnp.float32)),
            ln4_g=g4, ln4_b=b4, ff2=ff_params(cfg['dec_ff_mult']))

    return dict(
        token_emb=nrm((vocab, dim), std=1.0),        # shared enc/dec embedding
        enc_pos_emb=nrm((max_len, dim), std=1.0),
        dec_pos_emb=nrm((max_len, dim), std=1.0),
        cls=jnp.zeros((1, dim), jnp.float32),
        enc_head=[block(cfg['enc_ff_mult']) for _ in range(4)],
        enc_tail=[block(cfg['enc_ff_mult'])
                  for _ in range(cfg['enc_depth'] - 4)],
        dec_head=[block(4) for _ in range(4)],
        dec_tail=[tail_block() for _ in range(cfg['dec_depth'] - 4)],
        to_logits_w=nrm((dim, vocab)),
        to_logits_b=jnp.zeros((vocab,), jnp.float32),
    )


# ------------------------------------ main -----------------------------------

if __name__ == "__main__":
    cfg = dict(dim=32, heads=8, num_tokens=64, max_seq_len=32,
               enc_depth=5, dec_depth=5, enc_ff_mult=4, dec_ff_mult=16)
    cfg['scale'] = cfg['dim'] ** -0.5

    key = jax.random.PRNGKey(0)
    kp, ke, kt, km = jax.random.split(key, 4)
    params = init_params(kp, cfg)

    b, m, n_ev, n_tgt = 2, 3, 8, 8
    evidence = jax.random.randint(ke, (b, m, n_ev), 1, cfg['num_tokens'])
    target = jax.random.randint(kt, (b, n_tgt), 1, cfg['num_tokens'])
    temb = jax.random.normal(km, (b, cfg['dim']), jnp.float32)
    target_embeds = temb / jnp.linalg.norm(temb, axis=-1, keepdims=True)
    src_mask = jnp.ones((b, m, n_ev), bool)
    tgt_mask = jnp.ones((b, n_tgt), bool)

    @jax.jit
    def loss_fn(p, ev, tg, te, sm, tm):
        return marge_forward(p, cfg, ev, tg, te, sm, tm)

    loss = loss_fn(params, evidence, target, target_embeds, src_mask, tgt_mask)
    jax.block_until_ready(loss)
    assert loss.shape == () and bool(jnp.isfinite(loss))
    print("KERNEL_OK")
</pallas_src>

<mosaic_0001>
module attributes {stable_mosaic.version = 11 : i64} {
  func.func @_fused_linear_kernel(%arg0: i32, %arg1: i32, %arg2: memref<56x32xf32, #tpu.memory_space<vmem>>, %arg3: memref<32x128xbf16, #tpu.memory_space<vmem>>, %arg4: memref<1x32xf32, #tpu.memory_space<vmem>>, %arg5: memref<1x32xf32, #tpu.memory_space<vmem>>, %arg6: memref<56x128xf32, #tpu.memory_space<vmem>>) attributes {dimension_semantics = [#tpu.dimension_semantics<parallel>, #tpu.dimension_semantics<parallel>], iteration_bounds = array<i64: 1, 1>, scalar_prefetch = 0 : i64, scratch_operands = 0 : i64, tpu.core_type = #tpu.core_type<tc>, window_params = [{transform_indices = @transform_0, window_bounds = array<i64: 56, 32>}, {transform_indices = @transform_1, window_bounds = array<i64: 32, 128>}, {pipeline_mode = #tpu.pipeline_mode<synchronous>, transform_indices = @transform_2, window_bounds = array<i64: 1, 32>}, {pipeline_mode = #tpu.pipeline_mode<synchronous>, transform_indices = @transform_3, window_bounds = array<i64: 1, 32>}, {transform_indices = @transform_4, window_bounds = array<i64: 56, 128>}]} {
    %c0 = arith.constant 0 : index
    %c0_0 = arith.constant 0 : index
    %0 = vector.load %arg2[%c0, %c0_0] : memref<56x32xf32, #tpu.memory_space<vmem>>, vector<56x32xf32>
    %cst = arith.constant dense<0.000000e+00> : vector<56xf32>
    %1 = vector.multi_reduction <add>, %0, %cst [1] : vector<56x32xf32> to vector<56xf32>
    %2 = vector.shape_cast %1 : vector<56xf32> to vector<56x1xf32>
    %cst_1 = arith.constant 3.200000e+01 : f32
    %3 = vector.broadcast %cst_1 : f32 to vector<56x1xf32>
    %4 = arith.divf %2, %3 : vector<56x1xf32>
    %5 = vector.broadcast %4 : vector<56x1xf32> to vector<56x32xf32>
    %6 = arith.subf %0, %5 : vector<56x32xf32>
    %7 = arith.mulf %6, %6 : vector<56x32xf32>
    %cst_2 = arith.constant dense<0.000000e+00> : vector<56xf32>
    %8 = vector.multi_reduction <add>, %7, %cst_2 [1] : vector<56x32xf32> to vector<56xf32>
    %9 = vector.shape_cast %8 : vector<56xf32> to vector<56x1xf32>
    %cst_3 = arith.constant 3.200000e+01 : f32
    %10 = vector.broadcast %cst_3 : f32 to vector<56x1xf32>
    %11 = arith.divf %9, %10 : vector<56x1xf32>
    %cst_4 = arith.constant 9.99999974E-6 : f32
    %12 = vector.broadcast %cst_4 : f32 to vector<56x1xf32>
    %13 = arith.addf %11, %12 : vector<56x1xf32>
    %14 = math.rsqrt %13 : vector<56x1xf32>
    %15 = vector.broadcast %14 : vector<56x1xf32> to vector<56x32xf32>
    %16 = arith.mulf %6, %15 : vector<56x32xf32>
    %c0_5 = arith.constant 0 : index
    %c0_6 = arith.constant 0 : index
    %17 = vector.load %arg4[%c0_5, %c0_6] : memref<1x32xf32, #tpu.memory_space<vmem>>, vector<1x32xf32>
    %18 = vector.broadcast %17 : vector<1x32xf32> to vector<56x32xf32>
    %19 = arith.mulf %16, %18 : vector<56x32xf32>
    %c0_7 = arith.constant 0 : index
    %c0_8 = arith.constant 0 : index
    %20 = vector.load %arg5[%c0_7, %c0_8] : memref<1x32xf32, #tpu.memory_space<vmem>>, vector<1x32xf32>
    %21 = vector.broadcast %20 : vector<1x32xf32> to vector<56x32xf32>
    %22 = arith.addf %19, %21 : vector<56x32xf32>
    %23 = arith.truncf %22 : vector<56x32xf32> to vector<56x32xbf16>
    %c0_9 = arith.constant 0 : index
    %c0_10 = arith.constant 0 : index
    %24 = vector.load %arg3[%c0_9, %c0_10] : memref<32x128xbf16, #tpu.memory_space<vmem>>, vector<32x128xbf16>
    %cst_11 = arith.constant dense<0.000000e+00> : vector<56x128xf32>
    %25 = tpu.matmul %23, %24, %cst_11 {dimension_numbers = #tpu.dot_dimension_numbers<[1], [0], [0], [1], [0, 0, 1, 1], [], []>} : vector<56x32xbf16>, vector<32x128xbf16>, vector<56x128xf32> -> vector<56x128xf32>
    %c0_12 = arith.constant 0 : index
    %c0_13 = arith.constant 0 : index
    %26 = vector.load %arg6[%c0_12, %c0_13] : memref<56x128xf32, #tpu.memory_space<vmem>>, vector<56x128xf32>
    tpu.vector_store %arg6[%c0_12, %c0_13], %25 {strides = array<i32>} : memref<56x128xf32, #tpu.memory_space<vmem>>, vector<56x128xf32>,
    return
  }
  func.func @transform_0(%arg0: i32, %arg1: i32) -> (i32, i32) {
    %c0_i32 = arith.constant 0 : i32
    %c0_i32_0 = arith.constant 0 : i32
    return %arg0, %c0_i32 : i32, i32
  }
  func.func @transform_1(%arg0: i32, %arg1: i32) -> (i32, i32) {
    %c0_i32 = arith.constant 0 : i32
    %c0_i32_0 = arith.constant 0 : i32
    return %c0_i32, %arg1 : i32, i32
  }
  func.func @transform_2(%arg0: i32, %arg1: i32) -> (i32, i32) {
    %c0_i32 = arith.constant 0 : i32
    %c0_i32_0 = arith.constant 0 : i32
    %c0_i32_1 = arith.constant 0 : i32
    return %c0_i32, %c0_i32_0 : i32, i32
  }
  func.func @transform_3(%arg0: i32, %arg1: i32) -> (i32, i32) {
    %c0_i32 = arith.constant 0 : i32
    %c0_i32_0 = arith.constant 0 : i32
    %c0_i32_1 = arith.constant 0 : i32
    return %c0_i32, %c0_i32_0 : i32, i32
  }
  func.func @transform_4(%arg0: i32, %arg1: i32) -> (i32, i32) {
    %c0_i32 = arith.constant 0 : i32
    return %arg0, %arg1 : i32, i32
  }
}

module attributes {stable_mosaic.version = 11 : i64} {
  func.func @_attention_kernel(%arg0: i32, %arg1: memref<8x9x4xf32, #tpu.memory_space<vmem>>, %arg2: memref<8x9x4xf32, #tpu.memory_space<vmem>>, %arg3: memref<8x9x4xf32, #tpu.memory_space<vmem>>, %arg4: memref<1x9x9xf32, #tpu.memory_space<vmem>>, %arg5: memref<8x9x4xf32, #tpu.memory_space<vmem>>) attributes {dimension_semantics = [#tpu.dimension_semantics<parallel>], iteration_bounds = array<i64: 6>, scalar_prefetch = 0 : i64, scratch_operands = 0 : i64, tpu.core_type = #tpu.core_type<tc>, window_params = [{transform_indices = @transform_0, window_bounds = array<i64: 8, 9, 4>}, {transform_indices = @transform_1, window_bounds = array<i64: 8, 9, 4>}, {transform_indices = @transform_2, window_bounds = array<i64: 8, 9, 4>}, {transform_indices = @transform_3, window_bounds = array<i64: 1, 9, 9>}, {transform_indices = @transform_4, window_bounds = array<i64: 8, 9, 4>}]} {
    %c0 = arith.constant 0 : index
    %c0_0 = arith.constant 0 : index
    %c0_1 = arith.constant 0 : index
    %0 = vector.load %arg1[%c0, %c0_0, %c0_1] : memref<8x9x4xf32, #tpu.memory_space<vmem>>, vector<8x9x4xf32>
    %1 = arith.truncf %0 : vector<8x9x4xf32> to vector<8x9x4xbf16>
    %c0_2 = arith.constant 0 : index
    %c0_3 = arith.constant 0 : index
    %c0_4 = arith.constant 0 : index
    %2 = vector.load %arg2[%c0_2, %c0_3, %c0_4] : memref<8x9x4xf32, #tpu.memory_space<vmem>>, vector<8x9x4xf32>
    %3 = arith.truncf %2 : vector<8x9x4xf32> to vector<8x9x4xbf16>
    %c0_5 = arith.constant 0 : index
    %c0_6 = arith.constant 0 : index
    %c0_7 = arith.constant 0 : index
    %4 = vector.load %arg3[%c0_5, %c0_6, %c0_7] : memref<8x9x4xf32, #tpu.memory_space<vmem>>, vector<8x9x4xf32>
    %5 = arith.truncf %4 : vector<8x9x4xf32> to vector<8x9x4xbf16>
    "tpu.trace_start"() <{level = 10 : i32, message = "hid,hjd->hij"}> : () -> ()
    %cst = arith.constant dense<0.000000e+00> : vector<8x9x9xf32>
    %6 = tpu.matmul %1, %3, %cst {dimension_numbers = #tpu.dot_dimension_numbers<[2], [2], [1], [1], [0, 0, 0, 1, 1, 1], [0], [0]>} : vector<8x9x4xbf16>, vector<8x9x4xbf16>, vector<8x9x9xf32> -> vector<8x9x9xf32>
    "tpu.trace_stop"() : () -> ()
    %cst_8 = arith.constant 0.176776692 : f32
    %7 = vector.broadcast %cst_8 : f32 to vector<8x9x9xf32>
    %8 = arith.mulf %6, %7 : vector<8x9x9xf32>
    %c0_9 = arith.constant 0 : index
    %c0_10 = arith.constant 0 : index
    %c0_11 = arith.constant 0 : index
    %9 = vector.load %arg4[%c0_9, %c0_10, %c0_11] : memref<1x9x9xf32, #tpu.memory_space<vmem>>, vector<1x9x9xf32>
    %10 = vector.broadcast %9 : vector<1x9x9xf32> to vector<8x9x9xf32>
    %11 = arith.addf %8, %10 : vector<8x9x9xf32>
    %cst_12 = arith.constant dense<0xFF800000> : vector<8x9xf32>
    %12 = vector.multi_reduction <maximumf>, %11, %cst_12 [2] : vector<8x9x9xf32> to vector<8x9xf32>
    %13 = vector.shape_cast %12 : vector<8x9xf32> to vector<8x9x1xf32>
    %14 = vector.broadcast %13 : vector<8x9x1xf32> to vector<8x9x9xf32>
    %15 = arith.subf %11, %14 : vector<8x9x9xf32>
    %16 = math.exp %15 : vector<8x9x9xf32>
    %cst_13 = arith.constant dense<0.000000e+00> : vector<8x9xf32>
    %17 = vector.multi_reduction <add>, %16, %cst_13 [2] : vector<8x9x9xf32> to vector<8x9xf32>
    %18 = vector.shape_cast %17 : vector<8x9xf32> to vector<8x9x1xf32>
    %19 = tpu.reciprocal %18 {approx = true} : vector<8x9x1xf32> -> vector<8x9x1xf32>
    %20 = vector.broadcast %19 : vector<8x9x1xf32> to vector<8x9x9xf32>
    %21 = arith.mulf %16, %20 : vector<8x9x9xf32>
    %22 = arith.truncf %21 : vector<8x9x9xf32> to vector<8x9x9xbf16>
    "tpu.trace_start"() <{level = 10 : i32, message = "hij,hjd->hid"}> : () -> ()
    %cst_14 = arith.constant dense<0.000000e+00> : vector<8x9x4xf32>
    %23 = tpu.matmul %22, %5, %cst_14 {dimension_numbers = #tpu.dot_dimension_numbers<[2], [1], [1], [2], [0, 0, 0, 1, 1, 2], [0], [0]>} : vector<8x9x9xbf16>, vector<8x9x4xbf16>, vector<8x9x4xf32> -> vector<8x9x4xf32>
    "tpu.trace_stop"() : () -> ()
    %c0_15 = arith.constant 0 : index
    %c0_16 = arith.constant 0 : index
    %c0_17 = arith.constant 0 : index
    %24 = vector.load %arg5[%c0_15, %c0_16, %c0_17] : memref<8x9x4xf32, #tpu.memory_space<vmem>>, vector<8x9x4xf32>
    tpu.vector_store %arg5[%c0_15, %c0_16, %c0_17], %23 {strides = array<i32>} : memref<8x9x4xf32, #tpu.memory_space<vmem>>, vector<8x9x4xf32>,
    return
  }
  func.func @transform_0(%arg0: i32) -> (i32, i32, i32) {
    %c0_i32 = arith.constant 0 : i32
    %c0_i32_0 = arith.constant 0 : i32
    %c0_i32_1 = arith.constant 0 : i32
    return %arg0, %c0_i32, %c0_i32_0 : i32, i32, i32
  }
  func.func @transform_1(%arg0: i32) -> (i32, i32, i32) {
    %c0_i32 = arith.constant 0 : i32
    %c0_i32_0 = arith.constant 0 : i32
    %c0_i32_1 = arith.constant 0 : i32
    return %arg0, %c0_i32, %c0_i32_0 : i32, i32, i32
  }
  func.func @transform_2(%arg0: i32) -> (i32, i32, i32) {
    %c0_i32 = arith.constant 0 : i32
    %c0_i32_0 = arith.constant 0 : i32
    %c0_i32_1 = arith.constant 0 : i32
    return %arg0, %c0_i32, %c0_i32_0 : i32, i32, i32
  }
  func.func @transform_3(%arg0: i32) -> (i32, i32, i32) {
    %c0_i32 = arith.constant 0 : i32
    %c0_i32_0 = arith.constant 0 : i32
    %c0_i32_1 = arith.constant 0 : i32
    return %arg0, %c0_i32, %c0_i32_0 : i32, i32, i32
  }
  func.func @transform_4(%arg0: i32) -> (i32, i32, i32) {
    %c0_i32 = arith.constant 0 : i32
    %c0_i32_0 = arith.constant 0 : i32
    %c0_i32_1 = arith.constant 0 : i32
    return %arg0, %c0_i32, %c0_i32_0 : i32, i32, i32
  }
}

module attributes {stable_mosaic.version = 11 : i64} {
  func.func @_fused_linear_kernel(%arg0: i32, %arg1: i32, %arg2: memref<56x32xf32, #tpu.memory_space<vmem>>, %arg3: memref<32x128xbf16, #tpu.memory_space<vmem>>, %arg4: memref<1x128xf32, #tpu.memory_space<vmem>>, %arg5: memref<56x128xf32, #tpu.memory_space<vmem>>, %arg6: memref<56x128xf32, #tpu.memory_space<vmem>>) attributes {dimension_semantics = [#tpu.dimension_semantics<parallel>, #tpu.dimension_semantics<parallel>], iteration_bounds = array<i64: 1, 1>, scalar_prefetch = 0 : i64, scratch_operands = 0 : i64, tpu.core_type = #tpu.core_type<tc>, window_params = [{transform_indices = @transform_0, window_bounds = array<i64: 56, 32>}, {transform_indices = @transform_1, window_bounds = array<i64: 32, 128>}, {transform_indices = @transform_2, window_bounds = array<i64: 1, 128>}, {transform_indices = @transform_3, window_bounds = array<i64: 56, 128>}, {transform_indices = @transform_4, window_bounds = array<i64: 56, 128>}]} {
    %c0 = arith.constant 0 : index
    %c0_0 = arith.constant 0 : index
    %0 = vector.load %arg2[%c0, %c0_0] : memref<56x32xf32, #tpu.memory_space<vmem>>, vector<56x32xf32>
    %1 = arith.truncf %0 : vector<56x32xf32> to vector<56x32xbf16>
    %c0_1 = arith.constant 0 : index
    %c0_2 = arith.constant 0 : index
    %2 = vector.load %arg3[%c0_1, %c0_2] : memref<32x128xbf16, #tpu.memory_space<vmem>>, vector<32x128xbf16>
    %cst = arith.constant dense<0.000000e+00> : vector<56x128xf32>
    %3 = tpu.matmul %1, %2, %cst {dimension_numbers = #tpu.dot_dimension_numbers<[1], [0], [0], [1], [0, 0, 1, 1], [], []>} : vector<56x32xbf16>, vector<32x128xbf16>, vector<56x128xf32> -> vector<56x128xf32>
    %c0_3 = arith.constant 0 : index
    %c0_4 = arith.constant 0 : index
    %4 = vector.load %arg4[%c0_3, %c0_4] : memref<1x128xf32, #tpu.memory_space<vmem>>, vector<1x128xf32>
    %5 = vector.broadcast %4 : vector<1x128xf32> to vector<56x128xf32>
    %6 = arith.addf %3, %5 : vector<56x128xf32>
    %c0_5 = arith.constant 0 : index
    %c0_6 = arith.constant 0 : index
    %7 = vector.load %arg5[%c0_5, %c0_6] : memref<56x128xf32, #tpu.memory_space<vmem>>, vector<56x128xf32>
    %8 = arith.addf %6, %7 : vector<56x128xf32>
    %c0_7 = arith.constant 0 : index
    %c0_8 = arith.constant 0 : index
    %9 = vector.load %arg6[%c0_7, %c0_8] : memref<56x128xf32, #tpu.memory_space<vmem>>, vector<56x128xf32>
    tpu.vector_store %arg6[%c0_7, %c0_8], %8 {strides = array<i32>} : memref<56x128xf32, #tpu.memory_space<vmem>>, vector<56x128xf32>,
    return
  }
  func.func @transform_0(%arg0: i32, %arg1: i32) -> (i32, i32) {
    %c0_i32 = arith.constant 0 : i32
    %c0_i32_0 = arith.constant 0 : i32
    return %arg0, %c0_i32 : i32, i32
  }
  func.func @transform_1(%arg0: i32, %arg1: i32) -> (i32, i32) {
    %c0_i32 = arith.constant 0 : i32
    %c0_i32_0 = arith.constant 0 : i32
    return %c0_i32, %arg1 : i32, i32
  }
  func.func @transform_2(%arg0: i32, %arg1: i32) -> (i32, i32) {
    %c0_i32 = arith.constant 0 : i32
    %c0_i32_0 = arith.constant 0 : i32
    return %c0_i32, %arg1 : i32, i32
  }
  func.func @transform_3(%arg0: i32, %arg1: i32) -> (i32, i32) {
    %c0_i32 = arith.constant 0 : i32
    return %arg0, %arg1 : i32, i32
  }
  func.func @transform_4(%arg0: i32, %arg1: i32) -> (i32, i32) {
    %c0_i32 = arith.constant 0 : i32
    return %arg0, %arg1 : i32, i32
  }
}

module attributes {stable_mosaic.version = 11 : i64} {
  func.func @_fused_linear_kernel(%arg0: i32, %arg1: i32, %arg2: memref<56x32xf32, #tpu.memory_space<vmem>>, %arg3: memref<32x128xbf16, #tpu.memory_space<vmem>>, %arg4: memref<1x32xf32, #tpu.memory_space<vmem>>, %arg5: memref<1x32xf32, #tpu.memory_space<vmem>>, %arg6: memref<1x128xf32, #tpu.memory_space<vmem>>, %arg7: memref<56x128xf32, #tpu.memory_space<vmem>>) attributes {dimension_semantics = [#tpu.dimension_semantics<parallel>, #tpu.dimension_semantics<parallel>], iteration_bounds = array<i64: 1, 1>, scalar_prefetch = 0 : i64, scratch_operands = 0 : i64, tpu.core_type = #tpu.core_type<tc>, window_params = [{transform_indices = @transform_0, window_bounds = array<i64: 56, 32>}, {transform_indices = @transform_1, window_bounds = array<i64: 32, 128>}, {pipeline_mode = #tpu.pipeline_mode<synchronous>, transform_indices = @transform_2, window_bounds = array<i64: 1, 32>}, {pipeline_mode = #tpu.pipeline_mode<synchronous>, transform_indices = @transform_3, window_bounds = array<i64: 1, 32>}, {transform_indices = @transform_4, window_bounds = array<i64: 1, 128>}, {transform_indices = @transform_5, window_bounds = array<i64: 56, 128>}]} {
    %c0 = arith.constant 0 : index
    %c0_0 = arith.constant 0 : index
    %0 = vector.load %arg2[%c0, %c0_0] : memref<56x32xf32, #tpu.memory_space<vmem>>, vector<56x32xf32>
    %cst = arith.constant dense<0.000000e+00> : vector<56xf32>
    %1 = vector.multi_reduction <add>, %0, %cst [1] : vector<56x32xf32> to vector<56xf32>
    %2 = vector.shape_cast %1 : vector<56xf32> to vector<56x1xf32>
    %cst_1 = arith.constant 3.200000e+01 : f32
    %3 = vector.broadcast %cst_1 : f32 to vector<56x1xf32>
    %4 = arith.divf %2, %3 : vector<56x1xf32>
    %5 = vector.broadcast %4 : vector<56x1xf32> to vector<56x32xf32>
    %6 = arith.subf %0, %5 : vector<56x32xf32>
    %7 = arith.mulf %6, %6 : vector<56x32xf32>
    %cst_2 = arith.constant dense<0.000000e+00> : vector<56xf32>
    %8 = vector.multi_reduction <add>, %7, %cst_2 [1] : vector<56x32xf32> to vector<56xf32>
    %9 = vector.shape_cast %8 : vector<56xf32> to vector<56x1xf32>
    %cst_3 = arith.constant 3.200000e+01 : f32
    %10 = vector.broadcast %cst_3 : f32 to vector<56x1xf32>
    %11 = arith.divf %9, %10 : vector<56x1xf32>
    %cst_4 = arith.constant 9.99999974E-6 : f32
    %12 = vector.broadcast %cst_4 : f32 to vector<56x1xf32>
    %13 = arith.addf %11, %12 : vector<56x1xf32>
    %14 = math.rsqrt %13 : vector<56x1xf32>
    %15 = vector.broadcast %14 : vector<56x1xf32> to vector<56x32xf32>
    %16 = arith.mulf %6, %15 : vector<56x32xf32>
    %c0_5 = arith.constant 0 : index
    %c0_6 = arith.constant 0 : index
    %17 = vector.load %arg4[%c0_5, %c0_6] : memref<1x32xf32, #tpu.memory_space<vmem>>, vector<1x32xf32>
    %18 = vector.broadcast %17 : vector<1x32xf32> to vector<56x32xf32>
    %19 = arith.mulf %16, %18 : vector<56x32xf32>
    %c0_7 = arith.constant 0 : index
    %c0_8 = arith.constant 0 : index
    %20 = vector.load %arg5[%c0_7, %c0_8] : memref<1x32xf32, #tpu.memory_space<vmem>>, vector<1x32xf32>
    %21 = vector.broadcast %20 : vector<1x32xf32> to vector<56x32xf32>
    %22 = arith.addf %19, %21 : vector<56x32xf32>
    %23 = arith.truncf %22 : vector<56x32xf32> to vector<56x32xbf16>
    %c0_9 = arith.constant 0 : index
    %c0_10 = arith.constant 0 : index
    %24 = vector.load %arg3[%c0_9, %c0_10] : memref<32x128xbf16, #tpu.memory_space<vmem>>, vector<32x128xbf16>
    %cst_11 = arith.constant dense<0.000000e+00> : vector<56x128xf32>
    %25 = tpu.matmul %23, %24, %cst_11 {dimension_numbers = #tpu.dot_dimension_numbers<[1], [0], [0], [1], [0, 0, 1, 1], [], []>} : vector<56x32xbf16>, vector<32x128xbf16>, vector<56x128xf32> -> vector<56x128xf32>
    %c0_12 = arith.constant 0 : index
    %c0_13 = arith.constant 0 : index
    %26 = vector.load %arg6[%c0_12, %c0_13] : memref<1x128xf32, #tpu.memory_space<vmem>>, vector<1x128xf32>
    %27 = vector.broadcast %26 : vector<1x128xf32> to vector<56x128xf32>
    %28 = arith.addf %25, %27 : vector<56x128xf32>
    %c0_14 = arith.constant 0 : index
    %c0_15 = arith.constant 0 : index
    %29 = vector.load %arg7[%c0_14, %c0_15] : memref<56x128xf32, #tpu.memory_space<vmem>>, vector<56x128xf32>
    tpu.vector_store %arg7[%c0_14, %c0_15], %28 {strides = array<i32>} : memref<56x128xf32, #tpu.memory_space<vmem>>, vector<56x128xf32>,
    return
  }
  func.func @transform_0(%arg0: i32, %arg1: i32) -> (i32, i32) {
    %c0_i32 = arith.constant 0 : i32
    %c0_i32_0 = arith.constant 0 : i32
    return %arg0, %c0_i32 : i32, i32
  }
  func.func @transform_1(%arg0: i32, %arg1: i32) -> (i32, i32) {
    %c0_i32 = arith.constant 0 : i32
    %c0_i32_0 = arith.constant 0 : i32
    return %c0_i32, %arg1 : i32, i32
  }
  func.func @transform_2(%arg0: i32, %arg1: i32) -> (i32, i32) {
    %c0_i32 = arith.constant 0 : i32
    %c0_i32_0 = arith.constant 0 : i32
    %c0_i32_1 = arith.constant 0 : i32
    return %c0_i32, %c0_i32_0 : i32, i32
  }
  func.func @transform_3(%arg0: i32, %arg1: i32) -> (i32, i32) {
    %c0_i32 = arith.constant 0 : i32
    %c0_i32_0 = arith.constant 0 : i32
    %c0_i32_1 = arith.constant 0 : i32
    return %c0_i32, %c0_i32_0 : i32, i32
  }
  func.func @transform_4(%arg0: i32, %arg1: i32) -> (i32, i32) {
    %c0_i32 = arith.constant 0 : i32
    %c0_i32_0 = arith.constant 0 : i32
    return %c0_i32, %arg1 : i32, i32
  }
  func.func @transform_5(%arg0: i32, %arg1: i32) -> (i32, i32) {
    %c0_i32 = arith.constant 0 : i32
    return %arg0, %arg1 : i32, i32
  }
}

module attributes {stable_mosaic.version = 11 : i64} {
  func.func @_fused_linear_kernel(%arg0: i32, %arg1: i32, %arg2: memref<56x128xf32, #tpu.memory_space<vmem>>, %arg3: memref<128x128xbf16, #tpu.memory_space<vmem>>, %arg4: memref<1x128xf32, #tpu.memory_space<vmem>>, %arg5: memref<56x128xf32, #tpu.memory_space<vmem>>, %arg6: memref<56x128xf32, #tpu.memory_space<vmem>>) attributes {dimension_semantics = [#tpu.dimension_semantics<parallel>, #tpu.dimension_semantics<parallel>], iteration_bounds = array<i64: 1, 1>, scalar_prefetch = 0 : i64, scratch_operands = 0 : i64, tpu.core_type = #tpu.core_type<tc>, window_params = [{transform_indices = @transform_0, window_bounds = array<i64: 56, 128>}, {transform_indices = @transform_1, window_bounds = array<i64: 128, 128>}, {transform_indices = @transform_2, window_bounds = array<i64: 1, 128>}, {transform_indices = @transform_3, window_bounds = array<i64: 56, 128>}, {transform_indices = @transform_4, window_bounds = array<i64: 56, 128>}]} {
    %c0 = arith.constant 0 : index
    %c0_0 = arith.constant 0 : index
    %0 = vector.load %arg2[%c0, %c0_0] : memref<56x128xf32, #tpu.memory_space<vmem>>, vector<56x128xf32>
    %1 = arith.truncf %0 : vector<56x128xf32> to vector<56x128xbf16>
    %c0_1 = arith.constant 0 : index
    %c0_2 = arith.constant 0 : index
    %2 = vector.load %arg3[%c0_1, %c0_2] : memref<128x128xbf16, #tpu.memory_space<vmem>>, vector<128x128xbf16>
    %cst = arith.constant dense<0.000000e+00> : vector<56x128xf32>
    %3 = tpu.matmul %1, %2, %cst {dimension_numbers = #tpu.dot_dimension_numbers<[1], [0], [0], [1], [0, 0, 1, 1], [], []>} : vector<56x128xbf16>, vector<128x128xbf16>, vector<56x128xf32> -> vector<56x128xf32>
    %c0_3 = arith.constant 0 : index
    %c0_4 = arith.constant 0 : index
    %4 = vector.load %arg4[%c0_3, %c0_4] : memref<1x128xf32, #tpu.memory_space<vmem>>, vector<1x128xf32>
    %5 = vector.broadcast %4 : vector<1x128xf32> to vector<56x128xf32>
    %6 = arith.addf %3, %5 : vector<56x128xf32>
    %c0_5 = arith.constant 0 : index
    %c0_6 = arith.constant 0 : index
    %7 = vector.load %arg5[%c0_5, %c0_6] : memref<56x128xf32, #tpu.memory_space<vmem>>, vector<56x128xf32>
    %8 = arith.addf %6, %7 : vector<56x128xf32>
    %c0_7 = arith.constant 0 : index
    %c0_8 = arith.constant 0 : index
    %9 = vector.load %arg6[%c0_7, %c0_8] : memref<56x128xf32, #tpu.memory_space<vmem>>, vector<56x128xf32>
    tpu.vector_store %arg6[%c0_7, %c0_8], %8 {strides = array<i32>} : memref<56x128xf32, #tpu.memory_space<vmem>>, vector<56x128xf32>,
    return
  }
  func.func @transform_0(%arg0: i32, %arg1: i32) -> (i32, i32) {
    %c0_i32 = arith.constant 0 : i32
    %c0_i32_0 = arith.constant 0 : i32
    return %arg0, %c0_i32 : i32, i32
  }
  func.func @transform_1(%arg0: i32, %arg1: i32) -> (i32, i32) {
    %c0_i32 = arith.constant 0 : i32
    %c0_i32_0 = arith.constant 0 : i32
    return %c0_i32, %arg1 : i32, i32
  }
  func.func @transform_2(%arg0: i32, %arg1: i32) -> (i32, i32) {
    %c0_i32 = arith.constant 0 : i32
    %c0_i32_0 = arith.constant 0 : i32
    return %c0_i32, %arg1 : i32, i32
  }
  func.func @transform_3(%arg0: i32, %arg1: i32) -> (i32, i32) {
    %c0_i32 = arith.constant 0 : i32
    return %arg0, %arg1 : i32, i32
  }
  func.func @transform_4(%arg0: i32, %arg1: i32) -> (i32, i32) {
    %c0_i32 = arith.constant 0 : i32
    return %arg0, %arg1 : i32, i32
  }
}

module attributes {stable_mosaic.version = 11 : i64} {
  func.func @_fused_linear_kernel(%arg0: i32, %arg1: i32, %arg2: memref<56x32xf32, #tpu.memory_space<vmem>>, %arg3: memref<32x128xbf16, #tpu.memory_space<vmem>>, %arg4: memref<56x128xf32, #tpu.memory_space<vmem>>) attributes {dimension_semantics = [#tpu.dimension_semantics<parallel>, #tpu.dimension_semantics<parallel>], iteration_bounds = array<i64: 1, 1>, scalar_prefetch = 0 : i64, scratch_operands = 0 : i64, tpu.core_type = #tpu.core_type<tc>, window_params = [{transform_indices = @transform_0, window_bounds = array<i64: 56, 32>}, {transform_indices = @transform_1, window_bounds = array<i64: 32, 128>}, {transform_indices = @transform_2, window_bounds = array<i64: 56, 128>}]} {
    %c0 = arith.constant 0 : index
    %c0_0 = arith.constant 0 : index
    %0 = vector.load %arg2[%c0, %c0_0] : memref<56x32xf32, #tpu.memory_space<vmem>>, vector<56x32xf32>
    %1 = arith.truncf %0 : vector<56x32xf32> to vector<56x32xbf16>
    %c0_1 = arith.constant 0 : index
    %c0_2 = arith.constant 0 : index
    %2 = vector.load %arg3[%c0_1, %c0_2] : memref<32x128xbf16, #tpu.memory_space<vmem>>, vector<32x128xbf16>
    %cst = arith.constant dense<0.000000e+00> : vector<56x128xf32>
    %3 = tpu.matmul %1, %2, %cst {dimension_numbers = #tpu.dot_dimension_numbers<[1], [0], [0], [1], [0, 0, 1, 1], [], []>} : vector<56x32xbf16>, vector<32x128xbf16>, vector<56x128xf32> -> vector<56x128xf32>
    %c0_3 = arith.constant 0 : index
    %c0_4 = arith.constant 0 : index
    %4 = vector.load %arg4[%c0_3, %c0_4] : memref<56x128xf32, #tpu.memory_space<vmem>>, vector<56x128xf32>
    tpu.vector_store %arg4[%c0_3, %c0_4], %3 {strides = array<i32>} : memref<56x128xf32, #tpu.memory_space<vmem>>, vector<56x128xf32>,
    return
  }
  func.func @transform_0(%arg0: i32, %arg1: i32) -> (i32, i32) {
    %c0_i32 = arith.constant 0 : i32
    %c0_i32_0 = arith.constant 0 : i32
    return %arg0, %c0_i32 : i32, i32
  }
  func.func @transform_1(%arg0: i32, %arg1: i32) -> (i32, i32) {
    %c0_i32 = arith.constant 0 : i32
    %c0_i32_0 = arith.constant 0 : i32
    return %c0_i32, %arg1 : i32, i32
  }
  func.func @transform_2(%arg0: i32, %arg1: i32) -> (i32, i32) {
    %c0_i32 = arith.constant 0 : i32
    return %arg0, %arg1 : i32, i32
  }
}

module attributes {stable_mosaic.version = 11 : i64} {
  func.func @_fused_linear_kernel(%arg0: i32, %arg1: i32, %arg2: memref<16x32xf32, #tpu.memory_space<vmem>>, %arg3: memref<32x128xbf16, #tpu.memory_space<vmem>>, %arg4: memref<1x32xf32, #tpu.memory_space<vmem>>, %arg5: memref<1x32xf32, #tpu.memory_space<vmem>>, %arg6: memref<16x128xf32, #tpu.memory_space<vmem>>) attributes {dimension_semantics = [#tpu.dimension_semantics<parallel>, #tpu.dimension_semantics<parallel>], iteration_bounds = array<i64: 1, 1>, scalar_prefetch = 0 : i64, scratch_operands = 0 : i64, tpu.core_type = #tpu.core_type<tc>, window_params = [{transform_indices = @transform_0, window_bounds = array<i64: 16, 32>}, {transform_indices = @transform_1, window_bounds = array<i64: 32, 128>}, {pipeline_mode = #tpu.pipeline_mode<synchronous>, transform_indices = @transform_2, window_bounds = array<i64: 1, 32>}, {pipeline_mode = #tpu.pipeline_mode<synchronous>, transform_indices = @transform_3, window_bounds = array<i64: 1, 32>}, {transform_indices = @transform_4, window_bounds = array<i64: 16, 128>}]} {
    %c0 = arith.constant 0 : index
    %c0_0 = arith.constant 0 : index
    %0 = vector.load %arg2[%c0, %c0_0] : memref<16x32xf32, #tpu.memory_space<vmem>>, vector<16x32xf32>
    %cst = arith.constant dense<0.000000e+00> : vector<16xf32>
    %1 = vector.multi_reduction <add>, %0, %cst [1] : vector<16x32xf32> to vector<16xf32>
    %2 = vector.shape_cast %1 : vector<16xf32> to vector<16x1xf32>
    %cst_1 = arith.constant 3.200000e+01 : f32
    %3 = vector.broadcast %cst_1 : f32 to vector<16x1xf32>
    %4 = arith.divf %2, %3 : vector<16x1xf32>
    %5 = vector.broadcast %4 : vector<16x1xf32> to vector<16x32xf32>
    %6 = arith.subf %0, %5 : vector<16x32xf32>
    %7 = arith.mulf %6, %6 : vector<16x32xf32>
    %cst_2 = arith.constant dense<0.000000e+00> : vector<16xf32>
    %8 = vector.multi_reduction <add>, %7, %cst_2 [1] : vector<16x32xf32> to vector<16xf32>
    %9 = vector.shape_cast %8 : vector<16xf32> to vector<16x1xf32>
    %cst_3 = arith.constant 3.200000e+01 : f32
    %10 = vector.broadcast %cst_3 : f32 to vector<16x1xf32>
    %11 = arith.divf %9, %10 : vector<16x1xf32>
    %cst_4 = arith.constant 9.99999974E-6 : f32
    %12 = vector.broadcast %cst_4 : f32 to vector<16x1xf32>
    %13 = arith.addf %11, %12 : vector<16x1xf32>
    %14 = math.rsqrt %13 : vector<16x1xf32>
    %15 = vector.broadcast %14 : vector<16x1xf32> to vector<16x32xf32>
    %16 = arith.mulf %6, %15 : vector<16x32xf32>
    %c0_5 = arith.constant 0 : index
    %c0_6 = arith.constant 0 : index
    %17 = vector.load %arg4[%c0_5, %c0_6] : memref<1x32xf32, #tpu.memory_space<vmem>>, vector<1x32xf32>
    %18 = vector.broadcast %17 : vector<1x32xf32> to vector<16x32xf32>
    %19 = arith.mulf %16, %18 : vector<16x32xf32>
    %c0_7 = arith.constant 0 : index
    %c0_8 = arith.constant 0 : index
    %20 = vector.load %arg5[%c0_7, %c0_8] : memref<1x32xf32, #tpu.memory_space<vmem>>, vector<1x32xf32>
    %21 = vector.broadcast %20 : vector<1x32xf32> to vector<16x32xf32>
    %22 = arith.addf %19, %21 : vector<16x32xf32>
    %23 = arith.truncf %22 : vector<16x32xf32> to vector<16x32xbf16>
    %c0_9 = arith.constant 0 : index
    %c0_10 = arith.constant 0 : index
    %24 = vector.load %arg3[%c0_9, %c0_10] : memref<32x128xbf16, #tpu.memory_space<vmem>>, vector<32x128xbf16>
    %cst_11 = arith.constant dense<0.000000e+00> : vector<16x128xf32>
    %25 = tpu.matmul %23, %24, %cst_11 {dimension_numbers = #tpu.dot_dimension_numbers<[1], [0], [0], [1], [0, 0, 1, 1], [], []>} : vector<16x32xbf16>, vector<32x128xbf16>, vector<16x128xf32> -> vector<16x128xf32>
    %c0_12 = arith.constant 0 : index
    %c0_13 = arith.constant 0 : index
    %26 = vector.load %arg6[%c0_12, %c0_13] : memref<16x128xf32, #tpu.memory_space<vmem>>, vector<16x128xf32>
    tpu.vector_store %arg6[%c0_12, %c0_13], %25 {strides = array<i32>} : memref<16x128xf32, #tpu.memory_space<vmem>>, vector<16x128xf32>,
    return
  }
  func.func @transform_0(%arg0: i32, %arg1: i32) -> (i32, i32) {
    %c0_i32 = arith.constant 0 : i32
    %c0_i32_0 = arith.constant 0 : i32
    return %arg0, %c0_i32 : i32, i32
  }
  func.func @transform_1(%arg0: i32, %arg1: i32) -> (i32, i32) {
    %c0_i32 = arith.constant 0 : i32
    %c0_i32_0 = arith.constant 0 : i32
    return %c0_i32, %arg1 : i32, i32
  }
  func.func @transform_2(%arg0: i32, %arg1: i32) -> (i32, i32) {
    %c0_i32 = arith.constant 0 : i32
    %c0_i32_0 = arith.constant 0 : i32
    %c0_i32_1 = arith.constant 0 : i32
    return %c0_i32, %c0_i32_0 : i32, i32
  }
  func.func @transform_3(%arg0: i32, %arg1: i32) -> (i32, i32) {
    %c0_i32 = arith.constant 0 : i32
    %c0_i32_0 = arith.constant 0 : i32
    %c0_i32_1 = arith.constant 0 : i32
    return %c0_i32, %c0_i32_0 : i32, i32
  }
  func.func @transform_4(%arg0: i32, %arg1: i32) -> (i32, i32) {
    %c0_i32 = arith.constant 0 : i32
    return %arg0, %arg1 : i32, i32
  }
}

module attributes {stable_mosaic.version = 11 : i64} {
  func.func @_attention_kernel(%arg0: i32, %arg1: memref<8x7x4xf32, #tpu.memory_space<vmem>>, %arg2: memref<8x7x4xf32, #tpu.memory_space<vmem>>, %arg3: memref<8x7x4xf32, #tpu.memory_space<vmem>>, %arg4: memref<1x7x7xf32, #tpu.memory_space<vmem>>, %arg5: memref<8x7x4xf32, #tpu.memory_space<vmem>>) attributes {dimension_semantics = [#tpu.dimension_semantics<parallel>], iteration_bounds = array<i64: 2>, scalar_prefetch = 0 : i64, scratch_operands = 0 : i64, tpu.core_type = #tpu.core_type<tc>, window_params = [{transform_indices = @transform_0, window_bounds = array<i64: 8, 7, 4>}, {transform_indices = @transform_1, window_bounds = array<i64: 8, 7, 4>}, {transform_indices = @transform_2, window_bounds = array<i64: 8, 7, 4>}, {transform_indices = @transform_3, window_bounds = array<i64: 1, 7, 7>}, {transform_indices = @transform_4, window_bounds = array<i64: 8, 7, 4>}]} {
    %c0 = arith.constant 0 : index
    %c0_0 = arith.constant 0 : index
    %c0_1 = arith.constant 0 : index
    %0 = vector.load %arg1[%c0, %c0_0, %c0_1] : memref<8x7x4xf32, #tpu.memory_space<vmem>>, vector<8x7x4xf32>
    %1 = arith.truncf %0 : vector<8x7x4xf32> to vector<8x7x4xbf16>
    %c0_2 = arith.constant 0 : index
    %c0_3 = arith.constant 0 : index
    %c0_4 = arith.constant 0 : index
    %2 = vector.load %arg2[%c0_2, %c0_3, %c0_4] : memref<8x7x4xf32, #tpu.memory_space<vmem>>, vector<8x7x4xf32>
    %3 = arith.truncf %2 : vector<8x7x4xf32> to vector<8x7x4xbf16>
    %c0_5 = arith.constant 0 : index
    %c0_6 = arith.constant 0 : index
    %c0_7 = arith.constant 0 : index
    %4 = vector.load %arg3[%c0_5, %c0_6, %c0_7] : memref<8x7x4xf32, #tpu.memory_space<vmem>>, vector<8x7x4xf32>
    %5 = arith.truncf %4 : vector<8x7x4xf32> to vector<8x7x4xbf16>
    "tpu.trace_start"() <{level = 10 : i32, message = "hid,hjd->hij"}> : () -> ()
    %cst = arith.constant dense<0.000000e+00> : vector<8x7x7xf32>
    %6 = tpu.matmul %1, %3, %cst {dimension_numbers = #tpu.dot_dimension_numbers<[2], [2], [1], [1], [0, 0, 0, 1, 1, 1], [0], [0]>} : vector<8x7x4xbf16>, vector<8x7x4xbf16>, vector<8x7x7xf32> -> vector<8x7x7xf32>
    "tpu.trace_stop"() : () -> ()
    %cst_8 = arith.constant 0.176776692 : f32
    %7 = vector.broadcast %cst_8 : f32 to vector<8x7x7xf32>
    %8 = arith.mulf %6, %7 : vector<8x7x7xf32>
    %c0_9 = arith.constant 0 : index
    %c0_10 = arith.constant 0 : index
    %c0_11 = arith.constant 0 : index
    %9 = vector.load %arg4[%c0_9, %c0_10, %c0_11] : memref<1x7x7xf32, #tpu.memory_space<vmem>>, vector<1x7x7xf32>
    %10 = vector.broadcast %9 : vector<1x7x7xf32> to vector<8x7x7xf32>
    %11 = arith.addf %8, %10 : vector<8x7x7xf32>
    %cst_12 = arith.constant dense<0xFF800000> : vector<8x7xf32>
    %12 = vector.multi_reduction <maximumf>, %11, %cst_12 [2] : vector<8x7x7xf32> to vector<8x7xf32>
    %13 = vector.shape_cast %12 : vector<8x7xf32> to vector<8x7x1xf32>
    %14 = vector.broadcast %13 : vector<8x7x1xf32> to vector<8x7x7xf32>
    %15 = arith.subf %11, %14 : vector<8x7x7xf32>
    %16 = math.exp %15 : vector<8x7x7xf32>
    %cst_13 = arith.constant dense<0.000000e+00> : vector<8x7xf32>
    %17 = vector.multi_reduction <add>, %16, %cst_13 [2] : vector<8x7x7xf32> to vector<8x7xf32>
    %18 = vector.shape_cast %17 : vector<8x7xf32> to vector<8x7x1xf32>
    %19 = tpu.reciprocal %18 {approx = true} : vector<8x7x1xf32> -> vector<8x7x1xf32>
    %20 = vector.broadcast %19 : vector<8x7x1xf32> to vector<8x7x7xf32>
    %21 = arith.mulf %16, %20 : vector<8x7x7xf32>
    %22 = arith.truncf %21 : vector<8x7x7xf32> to vector<8x7x7xbf16>
    "tpu.trace_start"() <{level = 10 : i32, message = "hij,hjd->hid"}> : () -> ()
    %cst_14 = arith.constant dense<0.000000e+00> : vector<8x7x4xf32>
    %23 = tpu.matmul %22, %5, %cst_14 {dimension_numbers = #tpu.dot_dimension_numbers<[2], [1], [1], [2], [0, 0, 0, 1, 1, 2], [0], [0]>} : vector<8x7x7xbf16>, vector<8x7x4xbf16>, vector<8x7x4xf32> -> vector<8x7x4xf32>
    "tpu.trace_stop"() : () -> ()
    %c0_15 = arith.constant 0 : index
    %c0_16 = arith.constant 0 : index
    %c0_17 = arith.constant 0 : index
    %24 = vector.load %arg5[%c0_15, %c0_16, %c0_17] : memref<8x7x4xf32, #tpu.memory_space<vmem>>, vector<8x7x4xf32>
    tpu.vector_store %arg5[%c0_15, %c0_16, %c0_17], %23 {strides = array<i32>} : memref<8x7x4xf32, #tpu.memory_space<vmem>>, vector<8x7x4xf32>,
    return
  }
  func.func @transform_0(%arg0: i32) -> (i32, i32, i32) {
    %c0_i32 = arith.constant 0 : i32
    %c0_i32_0 = arith.constant 0 : i32
    %c0_i32_1 = arith.constant 0 : i32
    return %arg0, %c0_i32, %c0_i32_0 : i32, i32, i32
  }
  func.func @transform_1(%arg0: i32) -> (i32, i32, i32) {
    %c0_i32 = arith.constant 0 : i32
    %c0_i32_0 = arith.constant 0 : i32
    %c0_i32_1 = arith.constant 0 : i32
    return %arg0, %c0_i32, %c0_i32_0 : i32, i32, i32
  }
  func.func @transform_2(%arg0: i32) -> (i32, i32, i32) {
    %c0_i32 = arith.constant 0 : i32
    %c0_i32_0 = arith.constant 0 : i32
    %c0_i32_1 = arith.constant 0 : i32
    return %arg0, %c0_i32, %c0_i32_0 : i32, i32, i32
  }
  func.func @transform_3(%arg0: i32) -> (i32, i32, i32) {
    %c0_i32 = arith.constant 0 : i32
    %c0_i32_0 = arith.constant 0 : i32
    %c0_i32_1 = arith.constant 0 : i32
    return %arg0, %c0_i32, %c0_i32_0 : i32, i32, i32
  }
  func.func @transform_4(%arg0: i32) -> (i32, i32, i32) {
    %c0_i32 = arith.constant 0 : i32
    %c0_i32_0 = arith.constant 0 : i32
    %c0_i32_1 = arith.constant 0 : i32
    return %arg0, %c0_i32, %c0_i32_0 : i32, i32, i32
  }
}

module attributes {stable_mosaic.version = 11 : i64} {
  func.func @_fused_linear_kernel(%arg0: i32, %arg1: i32, %arg2: memref<16x32xf32, #tpu.memory_space<vmem>>, %arg3: memref<32x128xbf16, #tpu.memory_space<vmem>>, %arg4: memref<1x32xf32, #tpu.memory_space<vmem>>, %arg5: memref<1x32xf32, #tpu.memory_space<vmem>>, %arg6: memref<1x128xf32, #tpu.memory_space<vmem>>, %arg7: memref<16x128xf32, #tpu.memory_space<vmem>>) attributes {dimension_semantics = [#tpu.dimension_semantics<parallel>, #tpu.dimension_semantics<parallel>], iteration_bounds = array<i64: 1, 1>, scalar_prefetch = 0 : i64, scratch_operands = 0 : i64, tpu.core_type = #tpu.core_type<tc>, window_params = [{transform_indices = @transform_0, window_bounds = array<i64: 16, 32>}, {transform_indices = @transform_1, window_bounds = array<i64: 32, 128>}, {pipeline_mode = #tpu.pipeline_mode<synchronous>, transform_indices = @transform_2, window_bounds = array<i64: 1, 32>}, {pipeline_mode = #tpu.pipeline_mode<synchronous>, transform_indices = @transform_3, window_bounds = array<i64: 1, 32>}, {transform_indices = @transform_4, window_bounds = array<i64: 1, 128>}, {transform_indices = @transform_5, window_bounds = array<i64: 16, 128>}]} {
    %c0 = arith.constant 0 : index
    %c0_0 = arith.constant 0 : index
    %0 = vector.load %arg2[%c0, %c0_0] : memref<16x32xf32, #tpu.memory_space<vmem>>, vector<16x32xf32>
    %cst = arith.constant dense<0.000000e+00> : vector<16xf32>
    %1 = vector.multi_reduction <add>, %0, %cst [1] : vector<16x32xf32> to vector<16xf32>
    %2 = vector.shape_cast %1 : vector<16xf32> to vector<16x1xf32>
    %cst_1 = arith.constant 3.200000e+01 : f32
    %3 = vector.broadcast %cst_1 : f32 to vector<16x1xf32>
    %4 = arith.divf %2, %3 : vector<16x1xf32>
    %5 = vector.broadcast %4 : vector<16x1xf32> to vector<16x32xf32>
    %6 = arith.subf %0, %5 : vector<16x32xf32>
    %7 = arith.mulf %6, %6 : vector<16x32xf32>
    %cst_2 = arith.constant dense<0.000000e+00> : vector<16xf32>
    %8 = vector.multi_reduction <add>, %7, %cst_2 [1] : vector<16x32xf32> to vector<16xf32>
    %9 = vector.shape_cast %8 : vector<16xf32> to vector<16x1xf32>
    %cst_3 = arith.constant 3.200000e+01 : f32
    %10 = vector.broadcast %cst_3 : f32 to vector<16x1xf32>
    %11 = arith.divf %9, %10 : vector<16x1xf32>
    %cst_4 = arith.constant 9.99999974E-6 : f32
    %12 = vector.broadcast %cst_4 : f32 to vector<16x1xf32>
    %13 = arith.addf %11, %12 : vector<16x1xf32>
    %14 = math.rsqrt %13 : vector<16x1xf32>
    %15 = vector.broadcast %14 : vector<16x1xf32> to vector<16x32xf32>
    %16 = arith.mulf %6, %15 : vector<16x32xf32>
    %c0_5 = arith.constant 0 : index
    %c0_6 = arith.constant 0 : index
    %17 = vector.load %arg4[%c0_5, %c0_6] : memref<1x32xf32, #tpu.memory_space<vmem>>, vector<1x32xf32>
    %18 = vector.broadcast %17 : vector<1x32xf32> to vector<16x32xf32>
    %19 = arith.mulf %16, %18 : vector<16x32xf32>
    %c0_7 = arith.constant 0 : index
    %c0_8 = arith.constant 0 : index
    %20 = vector.load %arg5[%c0_7, %c0_8] : memref<1x32xf32, #tpu.memory_space<vmem>>, vector<1x32xf32>
    %21 = vector.broadcast %20 : vector<1x32xf32> to vector<16x32xf32>
    %22 = arith.addf %19, %21 : vector<16x32xf32>
    %23 = arith.truncf %22 : vector<16x32xf32> to vector<16x32xbf16>
    %c0_9 = arith.constant 0 : index
    %c0_10 = arith.constant 0 : index
    %24 = vector.load %arg3[%c0_9, %c0_10] : memref<32x128xbf16, #tpu.memory_space<vmem>>, vector<32x128xbf16>
    %cst_11 = arith.constant dense<0.000000e+00> : vector<16x128xf32>
    %25 = tpu.matmul %23, %24, %cst_11 {dimension_numbers = #tpu.dot_dimension_numbers<[1], [0], [0], [1], [0, 0, 1, 1], [], []>} : vector<16x32xbf16>, vector<32x128xbf16>, vector<16x128xf32> -> vector<16x128xf32>
    %c0_12 = arith.constant 0 : index
    %c0_13 = arith.constant 0 : index
    %26 = vector.load %arg6[%c0_12, %c0_13] : memref<1x128xf32, #tpu.memory_space<vmem>>, vector<1x128xf32>
    %27 = vector.broadcast %26 : vector<1x128xf32> to vector<16x128xf32>
    %28 = arith.addf %25, %27 : vector<16x128xf32>
    %c0_14 = arith.constant 0 : index
    %c0_15 = arith.constant 0 : index
    %29 = vector.load %arg7[%c0_14, %c0_15] : memref<16x128xf32, #tpu.memory_space<vmem>>, vector<16x128xf32>
    tpu.vector_store %arg7[%c0_14, %c0_15], %28 {strides = array<i32>} : memref<16x128xf32, #tpu.memory_space<vmem>>, vector<16x128xf32>,
    return
  }
  func.func @transform_0(%arg0: i32, %arg1: i32) -> (i32, i32) {
    %c0_i32 = arith.constant 0 : i32
    %c0_i32_0 = arith.constant 0 : i32
    return %arg0, %c0_i32 : i32, i32
  }
  func.func @transform_1(%arg0: i32, %arg1: i32) -> (i32, i32) {
    %c0_i32 = arith.constant 0 : i32
    %c0_i32_0 = arith.constant 0 : i32
    return %c0_i32, %arg1 : i32, i32
  }
  func.func @transform_2(%arg0: i32, %arg1: i32) -> (i32, i32) {
    %c0_i32 = arith.constant 0 : i32
    %c0_i32_0 = arith.constant 0 : i32
    %c0_i32_1 = arith.constant 0 : i32
    return %c0_i32, %c0_i32_0 : i32, i32
  }
  func.func @transform_3(%arg0: i32, %arg1: i32) -> (i32, i32) {
    %c0_i32 = arith.constant 0 : i32
    %c0_i32_0 = arith.constant 0 : i32
    %c0_i32_1 = arith.constant 0 : i32
    return %c0_i32, %c0_i32_0 : i32, i32
  }
  func.func @transform_4(%arg0: i32, %arg1: i32) -> (i32, i32) {
    %c0_i32 = arith.constant 0 : i32
    %c0_i32_0 = arith.constant 0 : i32
    return %c0_i32, %arg1 : i32, i32
  }
  func.func @transform_5(%arg0: i32, %arg1: i32) -> (i32, i32) {
    %c0_i32 = arith.constant 0 : i32
    return %arg0, %arg1 : i32, i32
  }
}

module attributes {stable_mosaic.version = 11 : i64} {
  func.func @_fused_linear_kernel(%arg0: i32, %arg1: i32, %arg2: memref<16x32xf32, #tpu.memory_space<vmem>>, %arg3: memref<32x128xbf16, #tpu.memory_space<vmem>>, %arg4: memref<1x128xf32, #tpu.memory_space<vmem>>, %arg5: memref<16x128xf32, #tpu.memory_space<vmem>>, %arg6: memref<16x128xf32, #tpu.memory_space<vmem>>) attributes {dimension_semantics = [#tpu.dimension_semantics<parallel>, #tpu.dimension_semantics<parallel>], iteration_bounds = array<i64: 1, 1>, scalar_prefetch = 0 : i64, scratch_operands = 0 : i64, tpu.core_type = #tpu.core_type<tc>, window_params = [{transform_indices = @transform_0, window_bounds = array<i64: 16, 32>}, {transform_indices = @transform_1, window_bounds = array<i64: 32, 128>}, {transform_indices = @transform_2, window_bounds = array<i64: 1, 128>}, {transform_indices = @transform_3, window_bounds = array<i64: 16, 128>}, {transform_indices = @transform_4, window_bounds = array<i64: 16, 128>}]} {
    %c0 = arith.constant 0 : index
    %c0_0 = arith.constant 0 : index
    %0 = vector.load %arg2[%c0, %c0_0] : memref<16x32xf32, #tpu.memory_space<vmem>>, vector<16x32xf32>
    %1 = arith.truncf %0 : vector<16x32xf32> to vector<16x32xbf16>
    %c0_1 = arith.constant 0 : index
    %c0_2 = arith.constant 0 : index
    %2 = vector.load %arg3[%c0_1, %c0_2] : memref<32x128xbf16, #tpu.memory_space<vmem>>, vector<32x128xbf16>
    %cst = arith.constant dense<0.000000e+00> : vector<16x128xf32>
    %3 = tpu.matmul %1, %2, %cst {dimension_numbers = #tpu.dot_dimension_numbers<[1], [0], [0], [1], [0, 0, 1, 1], [], []>} : vector<16x32xbf16>, vector<32x128xbf16>, vector<16x128xf32> -> vector<16x128xf32>
    %c0_3 = arith.constant 0 : index
    %c0_4 = arith.constant 0 : index
    %4 = vector.load %arg4[%c0_3, %c0_4] : memref<1x128xf32, #tpu.memory_space<vmem>>, vector<1x128xf32>
    %5 = vector.broadcast %4 : vector<1x128xf32> to vector<16x128xf32>
    %6 = arith.addf %3, %5 : vector<16x128xf32>
    %c0_5 = arith.constant 0 : index
    %c0_6 = arith.constant 0 : index
    %7 = vector.load %arg5[%c0_5, %c0_6] : memref<16x128xf32, #tpu.memory_space<vmem>>, vector<16x128xf32>
    %8 = arith.addf %6, %7 : vector<16x128xf32>
    %c0_7 = arith.constant 0 : index
    %c0_8 = arith.constant 0 : index
    %9 = vector.load %arg6[%c0_7, %c0_8] : memref<16x128xf32, #tpu.memory_space<vmem>>, vector<16x128xf32>
    tpu.vector_store %arg6[%c0_7, %c0_8], %8 {strides = array<i32>} : memref<16x128xf32, #tpu.memory_space<vmem>>, vector<16x128xf32>,
    return
  }
  func.func @transform_0(%arg0: i32, %arg1: i32) -> (i32, i32) {
    %c0_i32 = arith.constant 0 : i32
    %c0_i32_0 = arith.constant 0 : i32
    return %arg0, %c0_i32 : i32, i32
  }
  func.func @transform_1(%arg0: i32, %arg1: i32) -> (i32, i32) {
    %c0_i32 = arith.constant 0 : i32
    %c0_i32_0 = arith.constant 0 : i32
    return %c0_i32, %arg1 : i32, i32
  }
  func.func @transform_2(%arg0: i32, %arg1: i32) -> (i32, i32) {
    %c0_i32 = arith.constant 0 : i32
    %c0_i32_0 = arith.constant 0 : i32
    return %c0_i32, %arg1 : i32, i32
  }
  func.func @transform_3(%arg0: i32, %arg1: i32) -> (i32, i32) {
    %c0_i32 = arith.constant 0 : i32
    return %arg0, %arg1 : i32, i32
  }
  func.func @transform_4(%arg0: i32, %arg1: i32) -> (i32, i32) {
    %c0_i32 = arith.constant 0 : i32
    return %arg0, %arg1 : i32, i32
  }
}

module attributes {stable_mosaic.version = 11 : i64} {
  func.func @_fused_linear_kernel(%arg0: i32, %arg1: i32, %arg2: memref<16x128xf32, #tpu.memory_space<vmem>>, %arg3: memref<128x128xbf16, #tpu.memory_space<vmem>>, %arg4: memref<1x128xf32, #tpu.memory_space<vmem>>, %arg5: memref<16x128xf32, #tpu.memory_space<vmem>>, %arg6: memref<16x128xf32, #tpu.memory_space<vmem>>) attributes {dimension_semantics = [#tpu.dimension_semantics<parallel>, #tpu.dimension_semantics<parallel>], iteration_bounds = array<i64: 1, 1>, scalar_prefetch = 0 : i64, scratch_operands = 0 : i64, tpu.core_type = #tpu.core_type<tc>, window_params = [{transform_indices = @transform_0, window_bounds = array<i64: 16, 128>}, {transform_indices = @transform_1, window_bounds = array<i64: 128, 128>}, {transform_indices = @transform_2, window_bounds = array<i64: 1, 128>}, {transform_indices = @transform_3, window_bounds = array<i64: 16, 128>}, {transform_indices = @transform_4, window_bounds = array<i64: 16, 128>}]} {
    %c0 = arith.constant 0 : index
    %c0_0 = arith.constant 0 : index
    %0 = vector.load %arg2[%c0, %c0_0] : memref<16x128xf32, #tpu.memory_space<vmem>>, vector<16x128xf32>
    %1 = arith.truncf %0 : vector<16x128xf32> to vector<16x128xbf16>
    %c0_1 = arith.constant 0 : index
    %c0_2 = arith.constant 0 : index
    %2 = vector.load %arg3[%c0_1, %c0_2] : memref<128x128xbf16, #tpu.memory_space<vmem>>, vector<128x128xbf16>
    %cst = arith.constant dense<0.000000e+00> : vector<16x128xf32>
    %3 = tpu.matmul %1, %2, %cst {dimension_numbers = #tpu.dot_dimension_numbers<[1], [0], [0], [1], [0, 0, 1, 1], [], []>} : vector<16x128xbf16>, vector<128x128xbf16>, vector<16x128xf32> -> vector<16x128xf32>
    %c0_3 = arith.constant 0 : index
    %c0_4 = arith.constant 0 : index
    %4 = vector.load %arg4[%c0_3, %c0_4] : memref<1x128xf32, #tpu.memory_space<vmem>>, vector<1x128xf32>
    %5 = vector.broadcast %4 : vector<1x128xf32> to vector<16x128xf32>
    %6 = arith.addf %3, %5 : vector<16x128xf32>
    %c0_5 = arith.constant 0 : index
    %c0_6 = arith.constant 0 : index
    %7 = vector.load %arg5[%c0_5, %c0_6] : memref<16x128xf32, #tpu.memory_space<vmem>>, vector<16x128xf32>
    %8 = arith.addf %6, %7 : vector<16x128xf32>
    %c0_7 = arith.constant 0 : index
    %c0_8 = arith.constant 0 : index
    %9 = vector.load %arg6[%c0_7, %c0_8] : memref<16x128xf32, #tpu.memory_space<vmem>>, vector<16x128xf32>
    tpu.vector_store %arg6[%c0_7, %c0_8], %8 {strides = array<i32>} : memref<16x128xf32, #tpu.memory_space<vmem>>, vector<16x128xf32>,
    return
  }
  func.func @transform_0(%arg0: i32, %arg1: i32) -> (i32, i32) {
    %c0_i32 = arith.constant 0 : i32
    %c0_i32_0 = arith.constant 0 : i32
    return %arg0, %c0_i32 : i32, i32
  }
  func.func @transform_1(%arg0: i32, %arg1: i32) -> (i32, i32) {
    %c0_i32 = arith.constant 0 : i32
    %c0_i32_0 = arith.constant 0 : i32
    return %c0_i32, %arg1 : i32, i32
  }
  func.func @transform_2(%arg0: i32, %arg1: i32) -> (i32, i32) {
    %c0_i32 = arith.constant 0 : i32
    %c0_i32_0 = arith.constant 0 : i32
    return %c0_i32, %arg1 : i32, i32
  }
  func.func @transform_3(%arg0: i32, %arg1: i32) -> (i32, i32) {
    %c0_i32 = arith.constant 0 : i32
    return %arg0, %arg1 : i32, i32
  }
  func.func @transform_4(%arg0: i32, %arg1: i32) -> (i32, i32) {
    %c0_i32 = arith.constant 0 : i32
    return %arg0, %arg1 : i32, i32
  }
}

module attributes {stable_mosaic.version = 11 : i64} {
  func.func @_attention_kernel(%arg0: i32, %arg1: memref<8x7x4xf32, #tpu.memory_space<vmem>>, %arg2: memref<8x27x4xf32, #tpu.memory_space<vmem>>, %arg3: memref<8x27x4xf32, #tpu.memory_space<vmem>>, %arg4: memref<1x7x27xf32, #tpu.memory_space<vmem>>, %arg5: memref<8x7x4xf32, #tpu.memory_space<vmem>>) attributes {dimension_semantics = [#tpu.dimension_semantics<parallel>], iteration_bounds = array<i64: 2>, scalar_prefetch = 0 : i64, scratch_operands = 0 : i64, tpu.core_type = #tpu.core_type<tc>, window_params = [{transform_indices = @transform_0, window_bounds = array<i64: 8, 7, 4>}, {transform_indices = @transform_1, window_bounds = array<i64: 8, 27, 4>}, {transform_indices = @transform_2, window_bounds = array<i64: 8, 27, 4>}, {transform_indices = @transform_3, window_bounds = array<i64: 1, 7, 27>}, {transform_indices = @transform_4, window_bounds = array<i64: 8, 7, 4>}]} {
    %c0 = arith.constant 0 : index
    %c0_0 = arith.constant 0 : index
    %c0_1 = arith.constant 0 : index
    %0 = vector.load %arg1[%c0, %c0_0, %c0_1] : memref<8x7x4xf32, #tpu.memory_space<vmem>>, vector<8x7x4xf32>
    %1 = arith.truncf %0 : vector<8x7x4xf32> to vector<8x7x4xbf16>
    %c0_2 = arith.constant 0 : index
    %c0_3 = arith.constant 0 : index
    %c0_4 = arith.constant 0 : index
    %2 = vector.load %arg2[%c0_2, %c0_3, %c0_4] : memref<8x27x4xf32, #tpu.memory_space<vmem>>, vector<8x27x4xf32>
    %3 = arith.truncf %2 : vector<8x27x4xf32> to vector<8x27x4xbf16>
    %c0_5 = arith.constant 0 : index
    %c0_6 = arith.constant 0 : index
    %c0_7 = arith.constant 0 : index
    %4 = vector.load %arg3[%c0_5, %c0_6, %c0_7] : memref<8x27x4xf32, #tpu.memory_space<vmem>>, vector<8x27x4xf32>
    %5 = arith.truncf %4 : vector<8x27x4xf32> to vector<8x27x4xbf16>
    "tpu.trace_start"() <{level = 10 : i32, message = "hid,hjd->hij"}> : () -> ()
    %cst = arith.constant dense<0.000000e+00> : vector<8x7x27xf32>
    %6 = tpu.matmul %1, %3, %cst {dimension_numbers = #tpu.dot_dimension_numbers<[2], [2], [1], [1], [0, 0, 0, 1, 1, 1], [0], [0]>} : vector<8x7x4xbf16>, vector<8x27x4xbf16>, vector<8x7x27xf32> -> vector<8x7x27xf32>
    "tpu.trace_stop"() : () -> ()
    %cst_8 = arith.constant 0.176776692 : f32
    %7 = vector.broadcast %cst_8 : f32 to vector<8x7x27xf32>
    %8 = arith.mulf %6, %7 : vector<8x7x27xf32>
    %c0_9 = arith.constant 0 : index
    %c0_10 = arith.constant 0 : index
    %c0_11 = arith.constant 0 : index
    %9 = vector.load %arg4[%c0_9, %c0_10, %c0_11] : memref<1x7x27xf32, #tpu.memory_space<vmem>>, vector<1x7x27xf32>
    %10 = vector.broadcast %9 : vector<1x7x27xf32> to vector<8x7x27xf32>
    %11 = arith.addf %8, %10 : vector<8x7x27xf32>
    %cst_12 = arith.constant dense<0xFF800000> : vector<8x7xf32>
    %12 = vector.multi_reduction <maximumf>, %11, %cst_12 [2] : vector<8x7x27xf32> to vector<8x7xf32>
    %13 = vector.shape_cast %12 : vector<8x7xf32> to vector<8x7x1xf32>
    %14 = vector.broadcast %13 : vector<8x7x1xf32> to vector<8x7x27xf32>
    %15 = arith.subf %11, %14 : vector<8x7x27xf32>
    %16 = math.exp %15 : vector<8x7x27xf32>
    %cst_13 = arith.constant dense<0.000000e+00> : vector<8x7xf32>
    %17 = vector.multi_reduction <add>, %16, %cst_13 [2] : vector<8x7x27xf32> to vector<8x7xf32>
    %18 = vector.shape_cast %17 : vector<8x7xf32> to vector<8x7x1xf32>
    %19 = tpu.reciprocal %18 {approx = true} : vector<8x7x1xf32> -> vector<8x7x1xf32>
    %20 = vector.broadcast %19 : vector<8x7x1xf32> to vector<8x7x27xf32>
    %21 = arith.mulf %16, %20 : vector<8x7x27xf32>
    %22 = arith.truncf %21 : vector<8x7x27xf32> to vector<8x7x27xbf16>
    "tpu.trace_start"() <{level = 10 : i32, message = "hij,hjd->hid"}> : () -> ()
    %cst_14 = arith.constant dense<0.000000e+00> : vector<8x7x4xf32>
    %23 = tpu.matmul %22, %5, %cst_14 {dimension_numbers = #tpu.dot_dimension_numbers<[2], [1], [1], [2], [0, 0, 0, 1, 1, 2], [0], [0]>} : vector<8x7x27xbf16>, vector<8x27x4xbf16>, vector<8x7x4xf32> -> vector<8x7x4xf32>
    "tpu.trace_stop"() : () -> ()
    %c0_15 = arith.constant 0 : index
    %c0_16 = arith.constant 0 : index
    %c0_17 = arith.constant 0 : index
    %24 = vector.load %arg5[%c0_15, %c0_16, %c0_17] : memref<8x7x4xf32, #tpu.memory_space<vmem>>, vector<8x7x4xf32>
    tpu.vector_store %arg5[%c0_15, %c0_16, %c0_17], %23 {strides = array<i32>} : memref<8x7x4xf32, #tpu.memory_space<vmem>>, vector<8x7x4xf32>,
    return
  }
  func.func @transform_0(%arg0: i32) -> (i32, i32, i32) {
    %c0_i32 = arith.constant 0 : i32
    %c0_i32_0 = arith.constant 0 : i32
    %c0_i32_1 = arith.constant 0 : i32
    return %arg0, %c0_i32, %c0_i32_0 : i32, i32, i32
  }
  func.func @transform_1(%arg0: i32) -> (i32, i32, i32) {
    %c0_i32 = arith.constant 0 : i32
    %c0_i32_0 = arith.constant 0 : i32
    %c0_i32_1 = arith.constant 0 : i32
    return %arg0, %c0_i32, %c0_i32_0 : i32, i32, i32
  }
  func.func @transform_2(%arg0: i32) -> (i32, i32, i32) {
    %c0_i32 = arith.constant 0 : i32
    %c0_i32_0 = arith.constant 0 : i32
    %c0_i32_1 = arith.constant 0 : i32
    return %arg0, %c0_i32, %c0_i32_0 : i32, i32, i32
  }
  func.func @transform_3(%arg0: i32) -> (i32, i32, i32) {
    %c0_i32 = arith.constant 0 : i32
    %c0_i32_0 = arith.constant 0 : i32
    %c0_i32_1 = arith.constant 0 : i32
    return %arg0, %c0_i32, %c0_i32_0 : i32, i32, i32
  }
  func.func @transform_4(%arg0: i32) -> (i32, i32, i32) {
    %c0_i32 = arith.constant 0 : i32
    %c0_i32_0 = arith.constant 0 : i32
    %c0_i32_1 = arith.constant 0 : i32
    return %arg0, %c0_i32, %c0_i32_0 : i32, i32, i32
  }
}

module attributes {stable_mosaic.version = 11 : i64} {
  func.func @_fused_linear_kernel(%arg0: i32, %arg1: i32, %arg2: memref<16x32xf32, #tpu.memory_space<vmem>>, %arg3: memref<32x256xbf16, #tpu.memory_space<vmem>>, %arg4: memref<1x32xf32, #tpu.memory_space<vmem>>, %arg5: memref<1x32xf32, #tpu.memory_space<vmem>>, %arg6: memref<1x256xf32, #tpu.memory_space<vmem>>, %arg7: memref<16x256xf32, #tpu.memory_space<vmem>>) attributes {dimension_semantics = [#tpu.dimension_semantics<parallel>, #tpu.dimension_semantics<parallel>], iteration_bounds = array<i64: 1, 2>, scalar_prefetch = 0 : i64, scratch_operands = 0 : i64, tpu.core_type = #tpu.core_type<tc>, window_params = [{transform_indices = @transform_0, window_bounds = array<i64: 16, 32>}, {transform_indices = @transform_1, window_bounds = array<i64: 32, 256>}, {pipeline_mode = #tpu.pipeline_mode<synchronous>, transform_indices = @transform_2, window_bounds = array<i64: 1, 32>}, {pipeline_mode = #tpu.pipeline_mode<synchronous>, transform_indices = @transform_3, window_bounds = array<i64: 1, 32>}, {transform_indices = @transform_4, window_bounds = array<i64: 1, 256>}, {transform_indices = @transform_5, window_bounds = array<i64: 16, 256>}]} {
    %c0 = arith.constant 0 : index
    %c0_0 = arith.constant 0 : index
    %0 = vector.load %arg2[%c0, %c0_0] : memref<16x32xf32, #tpu.memory_space<vmem>>, vector<16x32xf32>
    %cst = arith.constant dense<0.000000e+00> : vector<16xf32>
    %1 = vector.multi_reduction <add>, %0, %cst [1] : vector<16x32xf32> to vector<16xf32>
    %2 = vector.shape_cast %1 : vector<16xf32> to vector<16x1xf32>
    %cst_1 = arith.constant 3.200000e+01 : f32
    %3 = vector.broadcast %cst_1 : f32 to vector<16x1xf32>
    %4 = arith.divf %2, %3 : vector<16x1xf32>
    %5 = vector.broadcast %4 : vector<16x1xf32> to vector<16x32xf32>
    %6 = arith.subf %0, %5 : vector<16x32xf32>
    %7 = arith.mulf %6, %6 : vector<16x32xf32>
    %cst_2 = arith.constant dense<0.000000e+00> : vector<16xf32>
    %8 = vector.multi_reduction <add>, %7, %cst_2 [1] : vector<16x32xf32> to vector<16xf32>
    %9 = vector.shape_cast %8 : vector<16xf32> to vector<16x1xf32>
    %cst_3 = arith.constant 3.200000e+01 : f32
    %10 = vector.broadcast %cst_3 : f32 to vector<16x1xf32>
    %11 = arith.divf %9, %10 : vector<16x1xf32>
    %cst_4 = arith.constant 9.99999974E-6 : f32
    %12 = vector.broadcast %cst_4 : f32 to vector<16x1xf32>
    %13 = arith.addf %11, %12 : vector<16x1xf32>
    %14 = math.rsqrt %13 : vector<16x1xf32>
    %15 = vector.broadcast %14 : vector<16x1xf32> to vector<16x32xf32>
    %16 = arith.mulf %6, %15 : vector<16x32xf32>
    %c0_5 = arith.constant 0 : index
    %c0_6 = arith.constant 0 : index
    %17 = vector.load %arg4[%c0_5, %c0_6] : memref<1x32xf32, #tpu.memory_space<vmem>>, vector<1x32xf32>
    %18 = vector.broadcast %17 : vector<1x32xf32> to vector<16x32xf32>
    %19 = arith.mulf %16, %18 : vector<16x32xf32>
    %c0_7 = arith.constant 0 : index
    %c0_8 = arith.constant 0 : index
    %20 = vector.load %arg5[%c0_7, %c0_8] : memref<1x32xf32, #tpu.memory_space<vmem>>, vector<1x32xf32>
    %21 = vector.broadcast %20 : vector<1x32xf32> to vector<16x32xf32>
    %22 = arith.addf %19, %21 : vector<16x32xf32>
    %23 = arith.truncf %22 : vector<16x32xf32> to vector<16x32xbf16>
    %c0_9 = arith.constant 0 : index
    %c0_10 = arith.constant 0 : index
    %24 = vector.load %arg3[%c0_9, %c0_10] : memref<32x256xbf16, #tpu.memory_space<vmem>>, vector<32x256xbf16>
    %cst_11 = arith.constant dense<0.000000e+00> : vector<16x256xf32>
    %25 = tpu.matmul %23, %24, %cst_11 {dimension_numbers = #tpu.dot_dimension_numbers<[1], [0], [0], [1], [0, 0, 1, 1], [], []>} : vector<16x32xbf16>, vector<32x256xbf16>, vector<16x256xf32> -> vector<16x256xf32>
    %c0_12 = arith.constant 0 : index
    %c0_13 = arith.constant 0 : index
    %26 = vector.load %arg6[%c0_12, %c0_13] : memref<1x256xf32, #tpu.memory_space<vmem>>, vector<1x256xf32>
    %27 = vector.broadcast %26 : vector<1x256xf32> to vector<16x256xf32>
    %28 = arith.addf %25, %27 : vector<16x256xf32>
    %c0_14 = arith.constant 0 : index
    %c0_15 = arith.constant 0 : index
    %29 = vector.load %arg7[%c0_14, %c0_15] : memref<16x256xf32, #tpu.memory_space<vmem>>, vector<16x256xf32>
    tpu.vector_store %arg7[%c0_14, %c0_15], %28 {strides = array<i32>} : memref<16x256xf32, #tpu.memory_space<vmem>>, vector<16x256xf32>,
    return
  }
  func.func @transform_0(%arg0: i32, %arg1: i32) -> (i32, i32) {
    %c0_i32 = arith.constant 0 : i32
    %c0_i32_0 = arith.constant 0 : i32
    return %arg0, %c0_i32 : i32, i32
  }
  func.func @transform_1(%arg0: i32, %arg1: i32) -> (i32, i32) {
    %c0_i32 = arith.constant 0 : i32
    %c0_i32_0 = arith.constant 0 : i32
    return %c0_i32, %arg1 : i32, i32
  }
  func.func @transform_2(%arg0: i32, %arg1: i32) -> (i32, i32) {
    %c0_i32 = arith.constant 0 : i32
    %c0_i32_0 = arith.constant 0 : i32
    %c0_i32_1 = arith.constant 0 : i32
    return %c0_i32, %c0_i32_0 : i32, i32
  }
  func.func @transform_3(%arg0: i32, %arg1: i32) -> (i32, i32) {
    %c0_i32 = arith.constant 0 : i32
    %c0_i32_0 = arith.constant 0 : i32
    %c0_i32_1 = arith.constant 0 : i32
    return %c0_i32, %c0_i32_0 : i32, i32
  }
  func.func @transform_4(%arg0: i32, %arg1: i32) -> (i32, i32) {
    %c0_i32 = arith.constant 0 : i32
    %c0_i32_0 = arith.constant 0 : i32
    return %c0_i32, %arg1 : i32, i32
  }
  func.func @transform_5(%arg0: i32, %arg1: i32) -> (i32, i32) {
    %c0_i32 = arith.constant 0 : i32
    return %arg0, %arg1 : i32, i32
  }
}

module attributes {stable_mosaic.version = 11 : i64} {
  func.func @_fused_linear_kernel(%arg0: i32, %arg1: i32, %arg2: memref<16x512xf32, #tpu.memory_space<vmem>>, %arg3: memref<512x128xbf16, #tpu.memory_space<vmem>>, %arg4: memref<1x128xf32, #tpu.memory_space<vmem>>, %arg5: memref<16x128xf32, #tpu.memory_space<vmem>>, %arg6: memref<16x128xf32, #tpu.memory_space<vmem>>) attributes {dimension_semantics = [#tpu.dimension_semantics<parallel>, #tpu.dimension_semantics<parallel>], iteration_bounds = array<i64: 1, 1>, scalar_prefetch = 0 : i64, scratch_operands = 0 : i64, tpu.core_type = #tpu.core_type<tc>, window_params = [{transform_indices = @transform_0, window_bounds = array<i64: 16, 512>}, {transform_indices = @transform_1, window_bounds = array<i64: 512, 128>}, {transform_indices = @transform_2, window_bounds = array<i64: 1, 128>}, {transform_indices = @transform_3, window_bounds = array<i64: 16, 128>}, {transform_indices = @transform_4, window_bounds = array<i64: 16, 128>}]} {
    %c0 = arith.constant 0 : index
    %c0_0 = arith.constant 0 : index
    %0 = vector.load %arg2[%c0, %c0_0] : memref<16x512xf32, #tpu.memory_space<vmem>>, vector<16x512xf32>
    %1 = arith.truncf %0 : vector<16x512xf32> to vector<16x512xbf16>
    %c0_1 = arith.constant 0 : index
    %c0_2 = arith.constant 0 : index
    %2 = vector.load %arg3[%c0_1, %c0_2] : memref<512x128xbf16, #tpu.memory_space<vmem>>, vector<512x128xbf16>
    %cst = arith.constant dense<0.000000e+00> : vector<16x128xf32>
    %3 = tpu.matmul %1, %2, %cst {dimension_numbers = #tpu.dot_dimension_numbers<[1], [0], [0], [1], [0, 0, 1, 1], [], []>} : vector<16x512xbf16>, vector<512x128xbf16>, vector<16x128xf32> -> vector<16x128xf32>
    %c0_3 = arith.constant 0 : index
    %c0_4 = arith.constant 0 : index
    %4 = vector.load %arg4[%c0_3, %c0_4] : memref<1x128xf32, #tpu.memory_space<vmem>>, vector<1x128xf32>
    %5 = vector.broadcast %4 : vector<1x128xf32> to vector<16x128xf32>
    %6 = arith.addf %3, %5 : vector<16x128xf32>
    %c0_5 = arith.constant 0 : index
    %c0_6 = arith.constant 0 : index
    %7 = vector.load %arg5[%c0_5, %c0_6] : memref<16x128xf32, #tpu.memory_space<vmem>>, vector<16x128xf32>
    %8 = arith.addf %6, %7 : vector<16x128xf32>
    %c0_7 = arith.constant 0 : index
    %c0_8 = arith.constant 0 : index
    %9 = vector.load %arg6[%c0_7, %c0_8] : memref<16x128xf32, #tpu.memory_space<vmem>>, vector<16x128xf32>
    tpu.vector_store %arg6[%c0_7, %c0_8], %8 {strides = array<i32>} : memref<16x128xf32, #tpu.memory_space<vmem>>, vector<16x128xf32>,
    return
  }
  func.func @transform_0(%arg0: i32, %arg1: i32) -> (i32, i32) {
    %c0_i32 = arith.constant 0 : i32
    %c0_i32_0 = arith.constant 0 : i32
    return %arg0, %c0_i32 : i32, i32
  }
  func.func @transform_1(%arg0: i32, %arg1: i32) -> (i32, i32) {
    %c0_i32 = arith.constant 0 : i32
    %c0_i32_0 = arith.constant 0 : i32
    return %c0_i32, %arg1 : i32, i32
  }
  func.func @transform_2(%arg0: i32, %arg1: i32) -> (i32, i32) {
    %c0_i32 = arith.constant 0 : i32
    %c0_i32_0 = arith.constant 0 : i32
    return %c0_i32, %arg1 : i32, i32
  }
  func.func @transform_3(%arg0: i32, %arg1: i32) -> (i32, i32) {
    %c0_i32 = arith.constant 0 : i32
    return %arg0, %arg1 : i32, i32
  }
  func.func @transform_4(%arg0: i32, %arg1: i32) -> (i32, i32) {
    %c0_i32 = arith.constant 0 : i32
    return %arg0, %arg1 : i32, i32
  }
}

module attributes {stable_mosaic.version = 11 : i64} {
  func.func @_fused_linear_kernel(%arg0: i32, %arg1: i32, %arg2: memref<16x32xf32, #tpu.memory_space<vmem>>, %arg3: memref<32x128xbf16, #tpu.memory_space<vmem>>, %arg4: memref<1x128xf32, #tpu.memory_space<vmem>>, %arg5: memref<16x128xf32, #tpu.memory_space<vmem>>) attributes {dimension_semantics = [#tpu.dimension_semantics<parallel>, #tpu.dimension_semantics<parallel>], iteration_bounds = array<i64: 1, 1>, scalar_prefetch = 0 : i64, scratch_operands = 0 : i64, tpu.core_type = #tpu.core_type<tc>, window_params = [{transform_indices = @transform_0, window_bounds = array<i64: 16, 32>}, {transform_indices = @transform_1, window_bounds = array<i64: 32, 128>}, {transform_indices = @transform_2, window_bounds = array<i64: 1, 128>}, {transform_indices = @transform_3, window_bounds = array<i64: 16, 128>}]} {
    %c0 = arith.constant 0 : index
    %c0_0 = arith.constant 0 : index
    %0 = vector.load %arg2[%c0, %c0_0] : memref<16x32xf32, #tpu.memory_space<vmem>>, vector<16x32xf32>
    %1 = arith.truncf %0 : vector<16x32xf32> to vector<16x32xbf16>
    %c0_1 = arith.constant 0 : index
    %c0_2 = arith.constant 0 : index
    %2 = vector.load %arg3[%c0_1, %c0_2] : memref<32x128xbf16, #tpu.memory_space<vmem>>, vector<32x128xbf16>
    %cst = arith.constant dense<0.000000e+00> : vector<16x128xf32>
    %3 = tpu.matmul %1, %2, %cst {dimension_numbers = #tpu.dot_dimension_numbers<[1], [0], [0], [1], [0, 0, 1, 1], [], []>} : vector<16x32xbf16>, vector<32x128xbf16>, vector<16x128xf32> -> vector<16x128xf32>
    %c0_3 = arith.constant 0 : index
    %c0_4 = arith.constant 0 : index
    %4 = vector.load %arg4[%c0_3, %c0_4] : memref<1x128xf32, #tpu.memory_space<vmem>>, vector<1x128xf32>
    %5 = vector.broadcast %4 : vector<1x128xf32> to vector<16x128xf32>
    %6 = arith.addf %3, %5 : vector<16x128xf32>
    %c0_5 = arith.constant 0 : index
    %c0_6 = arith.constant 0 : index
    %7 = vector.load %arg5[%c0_5, %c0_6] : memref<16x128xf32, #tpu.memory_space<vmem>>, vector<16x128xf32>
    tpu.vector_store %arg5[%c0_5, %c0_6], %6 {strides = array<i32>} : memref<16x128xf32, #tpu.memory_space<vmem>>, vector<16x128xf32>,
    return
  }
  func.func @transform_0(%arg0: i32, %arg1: i32) -> (i32, i32) {
    %c0_i32 = arith.constant 0 : i32
    %c0_i32_0 = arith.constant 0 : i32
    return %arg0, %c0_i32 : i32, i32
  }
  func.func @transform_1(%arg0: i32, %arg1: i32) -> (i32, i32) {
    %c0_i32 = arith.constant 0 : i32
    %c0_i32_0 = arith.constant 0 : i32
    return %c0_i32, %arg1 : i32, i32
  }
  func.func @transform_2(%arg0: i32, %arg1: i32) -> (i32, i32) {
    %c0_i32 = arith.constant 0 : i32
    %c0_i32_0 = arith.constant 0 : i32
    return %c0_i32, %arg1 : i32, i32
  }
  func.func @transform_3(%arg0: i32, %arg1: i32) -> (i32, i32) {
    %c0_i32 = arith.constant 0 : i32
    return %arg0, %arg1 : i32, i32
  }
}

module attributes {stable_mosaic.version = 11 : i64} {
  func.func @_xent_kernel(%arg0: i32, %arg1: memref<16x128xf32, #tpu.memory_space<vmem>>, %arg2: memref<16x1xi32, #tpu.memory_space<vmem>>, %arg3: memref<1x1xf32, #tpu.memory_space<vmem>>, %arg4: memref<1x1xf32, #tpu.memory_space<vmem>>) attributes {dimension_semantics = [#tpu.dimension_semantics<arbitrary>], iteration_bounds = array<i64: 1>, scalar_prefetch = 0 : i64, scratch_operands = 1 : i64, tpu.core_type = #tpu.core_type<tc>, window_params = [{transform_indices = @transform_0, window_bounds = array<i64: 16, 128>}, {transform_indices = @transform_1, window_bounds = array<i64: 16, 1>}, {pipeline_mode = #tpu.pipeline_mode<synchronous>, transform_indices = @transform_2, window_bounds = array<i64: 1, 1>}]} {
    %c0_i32 = arith.constant 0 : i32
    %0 = arith.cmpi eq, %arg0, %c0_i32 : i32
    %1 = arith.extui %0 : i1 to i32
    %c0_i32_0 = arith.constant 0 : i32
    %2 = arith.cmpi ne, %1, %c0_i32_0 : i32
    scf.if %2 {
      %cst_15 = arith.constant 0.000000e+00 : f32
      %41 = vector.broadcast %cst_15 : f32 to vector<1x1xf32>
      %c0_16 = arith.constant 0 : index
      %c0_17 = arith.constant 0 : index
      %42 = vector.load %arg4[%c0_16, %c0_17] : memref<1x1xf32, #tpu.memory_space<vmem>>, vector<1x1xf32>
      tpu.vector_store %arg4[%c0_16, %c0_17], %41 {strides = array<i32>} : memref<1x1xf32, #tpu.memory_space<vmem>>, vector<1x1xf32>,
    } else {
    }
    %c0 = arith.constant 0 : index
    %c0_1 = arith.constant 0 : index
    %3 = vector.load %arg1[%c0, %c0_1] : memref<16x128xf32, #tpu.memory_space<vmem>>, vector<16x128xf32>
    %c0_2 = arith.constant 0 : index
    %c0_3 = arith.constant 0 : index
    %4 = vector.load %arg2[%c0_2, %c0_3] : memref<16x1xi32, #tpu.memory_space<vmem>>, vector<16x1xi32>
    %cst = arith.constant dense<0xFF800000> : vector<16xf32>
    %5 = vector.multi_reduction <maximumf>, %3, %cst [1] : vector<16x128xf32> to vector<16xf32>
    %6 = vector.shape_cast %5 : vector<16xf32> to vector<16x1xf32>
    %7 = vector.broadcast %6 : vector<16x1xf32> to vector<16x128xf32>
    %8 = arith.subf %3, %7 : vector<16x128xf32>
    %9 = math.exp %8 : vector<16x128xf32>
    %cst_4 = arith.constant dense<0.000000e+00> : vector<16xf32>
    %10 = vector.multi_reduction <add>, %9, %cst_4 [1] : vector<16x128xf32> to vector<16xf32>
    %11 = vector.shape_cast %10 : vector<16xf32> to vector<16x1xf32>
    %12 = math.log %11 : vector<16x1xf32>
    %13 = arith.addf %12, %6 : vector<16x1xf32>
    %14 = tpu.iota {dimensions = array<i32: 1>} : vector<16x128xi32>
    %15 = vector.broadcast %4 : vector<16x1xi32> to vector<16x128xi32>
    %16 = arith.cmpi eq, %14, %15 : vector<16x128xi32>
    %cst_5 = arith.constant 0.000000e+00 : f32
    %17 = vector.broadcast %cst_5 : f32 to vector<16x128xf32>
    %18 = arith.select %16, %3, %17 : vector<16x128xi1>, vector<16x128xf32>
    %cst_6 = arith.constant dense<0.000000e+00> : vector<16xf32>
    %19 = vector.multi_reduction <add>, %18, %cst_6 [1] : vector<16x128xf32> to vector<16xf32>
    %20 = vector.shape_cast %19 : vector<16xf32> to vector<16x1xf32>
    %21 = tpu.iota {dimensions = array<i32: 0>} : vector<16x1xi32>
    %c16_i32 = arith.constant 16 : i32
    %22 = arith.muli %arg0, %c16_i32 : i32
    %23 = vector.broadcast %22 : i32 to vector<16x1xi32>
    %24 = arith.addi %21, %23 : vector<16x1xi32>
    %c14_i32 = arith.constant 14 : i32
    %25 = vector.broadcast %c14_i32 : i32 to vector<16x1xi32>
    %26 = arith.cmpi slt, %24, %25 : vector<16x1xi32>
    %27 = arith.subf %13, %20 : vector<16x1xf32>
    %cst_7 = arith.constant 0.000000e+00 : f32
    %28 = vector.broadcast %cst_7 : f32 to vector<16x1xf32>
    %29 = arith.select %26, %27, %28 : vector<16x1xi1>, vector<16x1xf32>
    %30 = vector.shape_cast %29 : vector<16x1xf32> to vector<1x16x1xf32>
    %cst_8 = arith.constant dense<0.000000e+00> : vector<1xf32>
    %31 = vector.multi_reduction <add>, %30, %cst_8 [1, 2] : vector<1x16x1xf32> to vector<1xf32>
    %32 = vector.shape_cast %31 : vector<1xf32> to vector<1x1x1xf32>
    %33 = vector.extract %32[0, 0, 0] : f32 from vector<1x1x1xf32>
    %c0_9 = arith.constant 0 : index
    %c0_10 = arith.constant 0 : index
    %34 = vector.load %arg4[%c0_9, %c0_10] : memref<1x1xf32, #tpu.memory_space<vmem>>, vector<1x1xf32>
    %35 = vector.broadcast %33 : f32 to vector<1x1xf32>
    %36 = arith.addf %34, %35 : vector<1x1xf32>
    %c0_11 = arith.constant 0 : index
    %c0_12 = arith.constant 0 : index
    %37 = vector.load %arg4[%c0_11, %c0_12] : memref<1x1xf32, #tpu.memory_space<vmem>>, vector<1x1xf32>
    tpu.vector_store %arg4[%c0_11, %c0_12], %36 {strides = array<i32>} : memref<1x1xf32, #tpu.memory_space<vmem>>, vector<1x1xf32>,
    %c0_i32_13 = arith.constant 0 : i32
    %38 = arith.cmpi eq, %arg0, %c0_i32_13 : i32
    %39 = arith.extui %38 : i1 to i32
    %c0_i32_14 = arith.constant 0 : i32
    %40 = arith.cmpi ne, %39, %c0_i32_14 : i32
    scf.if %40 {
      %c0_15 = arith.constant 0 : index
      %c0_16 = arith.constant 0 : index
      %41 = vector.load %arg4[%c0_15, %c0_16] : memref<1x1xf32, #tpu.memory_space<vmem>>, vector<1x1xf32>
      %cst_17 = arith.constant 1.400000e+01 : f32
      %42 = vector.broadcast %cst_17 : f32 to vector<1x1xf32>
      %43 = arith.divf %41, %42 : vector<1x1xf32>
      %c0_18 = arith.constant 0 : index
      %c0_19 = arith.constant 0 : index
      %44 = vector.load %arg3[%c0_18, %c0_19] : memref<1x1xf32, #tpu.memory_space<vmem>>, vector<1x1xf32>
      tpu.vector_store %arg3[%c0_18, %c0_19], %43 {strides = array<i32>} : memref<1x1xf32, #tpu.memory_space<vmem>>, vector<1x1xf32>,
    } else {
    }
    return
  }
  func.func @transform_0(%arg0: i32) -> (i32, i32) {
    %c0_i32 = arith.constant 0 : i32
    %c0_i32_0 = arith.constant 0 : i32
    return %arg0, %c0_i32 : i32, i32
  }
  func.func @transform_1(%arg0: i32) -> (i32, i32) {
    %c0_i32 = arith.constant 0 : i32
    %c0_i32_0 = arith.constant 0 : i32
    return %arg0, %c0_i32 : i32, i32
  }
  func.func @transform_2(%arg0: i32) -> (i32, i32) {
    %c0_i32 = arith.constant 0 : i32
    %c0_i32_0 = arith.constant 0 : i32
    %c0_i32_1 = arith.constant 0 : i32
    return %c0_i32, %c0_i32_0 : i32, i32
  }
}

</mosaic_0001>

<bundles_post_ra>
// kernel: loss_fn.58
= control target key start
LH: loop header
LB: loop body
LE: loop exit
PB: predicated region body
PF: predicated region fallthrough
CT: control target
= control target key end

     0   :  { %vm25_vm0 = vcmask 261120   ;;  %v319_v14 = vmov 32.0   ;;  %s530_s0 = inlined_call_operand.vmem [shape: f32[56,32], index: 0, kind: input, shape index: {}]   ;;  %s531_s2 = inlined_call_operand.vmem [shape: f32[1,32], index: 2, kind: input, shape index: {}]   ;;  %s532_s3 = inlined_call_operand.vmem [shape: f32[1,32], index: 3, kind: input, shape index: {}]   ;;  %s533_s1 = inlined_call_operand.vmem [shape: bf16[32,128], index: 1, kind: input, shape index: {}]   ;;  %s534_s4 = inlined_call_operand.vmem [shape: f32[56,128], index: 4, kind: output, shape index: {}]  }
   0x1   :  { %v24_v0 = vld [vmem:[%s530_s0 + $0x30] sm:$0xff]  ;;  %v22_v1 = vld [vmem:[%s530_s0 + $0x20] sm:$0xff]  ;;  %v19_v2 = vld [vmem:[%s530_s0 + $0x8] sm:$0xff]  ;;  %303 = vrcp.f32 %v319_v14 }
   0x2   :  { %v44_v3 = vsel %vm25_vm0, %v24_v0, 0.0  ;;  %v38_v4 = vsel %vm25_vm0, %v22_v1, 0.0  ;;  %v29_v5 = vsel %vm25_vm0, %v19_v2, 0.0  ;;  %v23_v6 = vld [vmem:[%s530_s0 + $0x28] sm:$0xff]  ;;  %v18_v7 = vld [vmem:[%s530_s0] sm:$0xff]  ;;  %v20_v8 = vld [vmem:[%s530_s0 + $0x10] sm:$0xff] }
   0x3   :  { %45 = vadd.xlane.f32.xlu1 %v44_v3  ;;  %39 = vadd.xlane.f32.xlu0 %v38_v4  ;;  %v41_v9 = vsel %vm25_vm0, %v23_v6, 0.0  ;;  %v26_v10 = vsel %vm25_vm0, %v18_v7, 0.0  ;;  %v32_v11 = vsel %vm25_vm0, %v20_v8, 0.0  ;;  %v21_v12 = vld [vmem:[%s530_s0 + $0x18] sm:$0xff]  ;;  %v293_v56 = vld [vmem:[%s533_s1 + $0x8] sm:$0xff]  ;;  %v292_v57 = vld [vmem:[%s533_s1] sm:$0xff] }
   0x4   :  { %30 = vadd.xlane.f32.xlu2 %v29_v5  ;;  %v35_v13 = vsel %vm25_vm0, %v21_v12, 0.0  ;;  %296 = vmatpush.bf16.msra.mxu3 %v293_v56 }
   0x5   :  { %295 = vmatpush.bf16.msra.mxu2 %v293_v56  ;;  %247 = vmatpush.bf16.msra.mxu0 %v293_v56 }
   0x6   :  { %294 = vmatpush.bf16.msra.mxu1 %v293_v56 }
   0x7   :  { %v304_v15 = vpop.eup %303 }
   0x8   :  { %v48_v16 = vmul.f32 32.0, %v304_v15  ;;  %vm52_vm1 = vweird.f32 %v304_v15  ;;  %299 = vmatpush.bf16.msra.mxu3 %v292_v57 }
   0x9   :  { %298 = vmatpush.bf16.msra.mxu2 %v292_v57  ;;  %248 = vmatpush.bf16.msra.mxu0 %v292_v57 }
   0xa   :  { %v49_v17 = vsub.f32 1.0, %v48_v16  ;;  %297 = vmatpush.bf16.msra.mxu1 %v292_v57 }
   0xb   :  { %42 = vadd.xlane.f32.xlu0 %v41_v9  ;;  %27 = vadd.xlane.f32.xlu1 %v26_v10 }
   0xc   :  { %33 = vadd.xlane.f32.xlu2 %v32_v11  ;;  %v50_v18 = vmul.f32 %v304_v15, %v49_v17 }
   0xe   :  { %v51_v19 = vadd.f32 %v304_v15, %v50_v18 }
  0x10   :  { %v373_v20 = vsel %vm52_vm1, %v304_v15, %v51_v19 }
  0x13   :  { %36 = vadd.xlane.f32.xlu0 %v35_v13 }
  0x76   :  { %v46_v21 = vpop.xlane.xlu1 %45  ;;  %v40_v22 = vpop.xlane.xlu0 %39 }
  0x77   :  { %v60_v23 = vmul.f32 %v373_v20, %v46_v21  ;;  %v58_v24 = vmul.f32 %v373_v20, %v40_v22  ;;  %v31_v25 = vpop.xlane.xlu2 %30 }
  0x78   :  { %v55_v38 = vmul.f32 %v373_v20, %v31_v25 }
  0x79   :  { %v377_v26 = vsub.f32 %v24_v0, %v60_v23  ;;  %v379_v27 = vsub.f32 %v22_v1, %v58_v24 }
  0x7a   :  { %v403_v45 = vsub.f32 %v19_v2, %v55_v38 }
  0x7b   :  { %v74_v28 = vmul.f32 %v377_v26, %v377_v26  ;;  %v72_v29 = vmul.f32 %v379_v27, %v379_v27 }
  0x7c   :  { %v69_v52 = vmul.f32 %v403_v45, %v403_v45 }
  0x7d   :  { %v93_v30 = vsel %vm25_vm0, %v74_v28, 0.0  ;;  %v87_v31 = vsel %vm25_vm0, %v72_v29, 0.0 }
  0x7e   :  { %v43_v32 = vpop.xlane.xlu0 %42  ;;  %94 = vadd.xlane.f32.xlu0 %v93_v30  ;;  %88 = vadd.xlane.f32.xlu1 %v87_v31  ;;  %v28_v33 = vpop.xlane.xlu1 %27  ;;  %v78_v54 = vsel %vm25_vm0, %v69_v52, 0.0 }
  0x7f   :  { %v59_v34 = vmul.f32 %v373_v20, %v43_v32  ;;  %v34_v35 = vpop.xlane.xlu2 %33  ;;  %v54_v36 = vmul.f32 %v373_v20, %v28_v33 }
  0x80   :  { %v56_v37 = vmul.f32 %v373_v20, %v34_v35 }
  0x81   :  { %v391_v39 = vsub.f32 %v23_v6, %v59_v34  ;;  %v393_v40 = vsub.f32 %v18_v7, %v54_v36 }
  0x82   :  { %v395_v41 = vsub.f32 %v20_v8, %v56_v37 }
  0x83   :  { %v73_v42 = vmul.f32 %v391_v39, %v391_v39  ;;  %v68_v43 = vmul.f32 %v393_v40, %v393_v40 }
  0x84   :  { %v70_v44 = vmul.f32 %v395_v41, %v395_v41 }
  0x85   :  { %v90_v46 = vsel %vm25_vm0, %v73_v42, 0.0  ;;  %v75_v47 = vsel %vm25_vm0, %v68_v43, 0.0  ;;  %v461_v42 = vld [vmem:[%s531_s2] ss:$0 sm:$0xff] }
  0x86   :  { %v37_v48 = vpop.xlane.xlu0 %36  ;;  %91 = vadd.xlane.f32.xlu2 %v90_v46  ;;  %v81_v49 = vsel %vm25_vm0, %v70_v44, 0.0  ;;  %76 = vadd.xlane.f32.xlu1 %v75_v47 }
  0x87   :  { %v57_v50 = vmul.f32 %v373_v20, %v37_v48  ;;  %82 = vadd.xlane.f32.xlu0 %v81_v49  ;;  %v467_v49 = vld [vmem:[%s532_s3] ss:$0 sm:$0xff] }
  0x89   :  { %v409_v51 = vsub.f32 %v21_v12, %v57_v50 }
  0x8b   :  { %v71_v53 = vmul.f32 %v409_v51, %v409_v51 }
  0x8d   :  { %v84_v55 = vsel %vm25_vm0, %v71_v53, 0.0 }
  0x8e   :  { %79 = vadd.xlane.f32.xlu2 %v78_v54  ;;  %85 = vadd.xlane.f32.xlu1 %v84_v55 }
  0xf1   :  { %v95_v58 = vpop.xlane.xlu0 %94  ;;  %v89_v59 = vpop.xlane.xlu1 %88 }
  0xf2   :  { %v102_v60 = vmul.f32 %v95_v58, %v373_v20  ;;  %v100_v61 = vmul.f32 %v89_v59, %v373_v20 }
  0xf4   :  { %v109_v62 = vadd.f32 1e-05, %v102_v60  ;;  %v107_v63 = vadd.f32 1e-05, %v100_v61 }
  0xf6   :  { %305 = vrsqrt.f32 %v109_v62  ;;  %vm176_vm3 = vweird.f32 %v109_v62  ;;  %vm156_vm6 = vweird.f32 %v107_v63 }
  0xf7   :  { %307 = vrsqrt.f32 %v107_v63 }
  0xf9   :  { %v92_v0 = vpop.xlane.xlu2 %91  ;;  %v77_v1 = vpop.xlane.xlu1 %76 }
  0xfa   :  { %v83_v2 = vpop.xlane.xlu0 %82  ;;  %v101_v3 = vmul.f32 %v92_v0, %v373_v20  ;;  %v96_v4 = vmul.f32 %v77_v1, %v373_v20 }
  0xfb   :  { %v98_v5 = vmul.f32 %v83_v2, %v373_v20 }
  0xfc   :  { %v306_v6 = vpop.eup %305  ;;  %v428_v7 = vadd.f32 1e-05, %v101_v3  ;;  %v430_v8 = vadd.f32 1e-05, %v96_v4 }
  0xfd   :  { %v308_v9 = vpop.eup %307  ;;  %v171_v10 = vmul.f32 %v306_v6, %v109_v62  ;;  %v432_v11 = vadd.f32 1e-05, %v98_v5  ;;  %vm177_vm2 = vweird.f32 %v306_v6 }
  0xfe   :  { %v151_v12 = vmul.f32 %v308_v9, %v107_v63  ;;  %309 = vrsqrt.f32 %v428_v7  ;;  %vm157_vm4 = vweird.f32 %v308_v9  ;;  %vm446_vm5 = vmor %vm176_vm3, %vm177_vm2  ;;  %vm166_vm8 = vweird.f32 %v428_v7 }
  0xff   :  { %v172_v13 = vmul.f32 %v306_v6, %v171_v10  ;;  %311 = vrsqrt.f32 %v432_v11  ;;  %vm158_vm7 = vmor %vm156_vm6, %vm157_vm4  ;;  %vm136_vm10 = vweird.f32 %v432_v11  ;;  %vm116_vm14 = vweird.f32 %v430_v8 }
 0x100   :  { %v152_v14 = vmul.f32 %v308_v9, %v151_v12  ;;  %313 = vrsqrt.f32 %v430_v8 }
 0x101   :  { %v173_v15 = vmul.f32 0.5, %v172_v13  ;;  %v80_v16 = vpop.xlane.xlu2 %79  ;;  %v86_v17 = vpop.xlane.xlu1 %85 }
 0x102   :  { %v153_v18 = vmul.f32 0.5, %v152_v14  ;;  %v97_v19 = vmul.f32 %v80_v16, %v373_v20  ;;  %v99_v21 = vmul.f32 %v86_v17, %v373_v20 }
 0x103   :  { %v174_v22 = vsub.f32 1.5, %v173_v15 }
 0x104   :  { %v310_v23 = vpop.eup %309  ;;  %v154_v24 = vsub.f32 1.5, %v153_v18  ;;  %v439_v25 = vadd.f32 1e-05, %v97_v19  ;;  %v441_v28 = vadd.f32 1e-05, %v99_v21 }
 0x105   :  { %v443_v29 = vpop.eup %311  ;;  %v175_v30 = vmul.f32 %v306_v6, %v174_v22  ;;  %v161_v31 = vmul.f32 %v310_v23, %v428_v7  ;;  %vm167_vm9 = vweird.f32 %v310_v23 }
 0x106   :  { %v314_v32 = vpop.eup %313  ;;  %v155_v20 = vmul.f32 %v308_v9, %v154_v24  ;;  %v131_v34 = vmul.f32 %v443_v29, %v432_v11  ;;  %315 = vrsqrt.f32 %v439_v25  ;;  %vm137_vm12 = vweird.f32 %v443_v29  ;;  %vm168_vm13 = vmor %vm166_vm8, %vm167_vm9 }
 0x107   :  { %v179_v35 = vsel %vm446_vm5, %v306_v6, %v175_v30  ;;  %v162_v36 = vmul.f32 %v310_v23, %v161_v31  ;;  %v111_v37 = vmul.f32 %v314_v32, %v430_v8  ;;  %317 = vrsqrt.f32 %v441_v28  ;;  %vm138_vm1 = vmor %vm136_vm10, %vm137_vm12 }
 0x108   :  { %v132_v38 = vmul.f32 %v443_v29, %v131_v34  ;;  %v159_v43 = vsel %vm158_vm7, %v308_v9, %v155_v20  ;;  %v186_v48 = vmul.f32 %v179_v35, %v377_v26  ;;  %vm117_vm11 = vweird.f32 %v314_v32 }
 0x109   :  { %v163_v44 = vmul.f32 0.5, %v162_v36  ;;  %v112_v46 = vmul.f32 %v314_v32, %v111_v37  ;;  %v184_v54 = vmul.f32 %v159_v43, %v379_v27  ;;  %vm118_vm15 = vmor %vm116_vm14, %vm117_vm11  ;;  %vm126_vm3 = vweird.f32 %v439_v25 }
 0x10a   :  { %v133_v47 = vmul.f32 0.5, %v132_v38  ;;  %v197_v56 = vmul.f32 %v461_v42, %v186_v48  ;;  %vm146_vm6 = vweird.f32 %v441_v28 }
 0x10b   :  { %v164_v50 = vsub.f32 1.5, %v163_v44  ;;  %v113_v52 = vmul.f32 0.5, %v112_v46  ;;  %v195_v3 = vmul.f32 %v461_v42, %v184_v54 }
 0x10c   :  { %v316_v53 = vpop.eup %315  ;;  %v134_v55 = vsub.f32 1.5, %v133_v47  ;;  %v208_v27 = vadd.f32 %v467_v49, %v197_v56 }
 0x10d   :  { %v165_v57 = vmul.f32 %v310_v23, %v164_v50  ;;  %v114_v26 = vsub.f32 1.5, %v113_v52  ;;  %v121_v58 = vmul.f32 %v316_v53, %v439_v25  ;;  %v318_v59 = vpop.eup %317  ;;  %vm127_vm2 = vweird.f32 %v316_v53 }
 0x10e   :  { %v135_v60 = vmul.f32 %v443_v29, %v134_v55  ;;  %v141_v0 = vmul.f32 %v318_v59, %v441_v28  ;;  %v212_v2 = vpack.c.bf16 %v208_v27, %v208_v27  ;;  %v206_v12 = vadd.f32 %v467_v49, %v195_v3  ;;  %vm128_vm5 = vmor %vm126_vm3, %vm127_vm2 }
 0x10f   :  { %v169_v61 = vsel %vm168_vm13, %v310_v23, %v165_v57  ;;  %v115_v62 = vmul.f32 %v314_v32, %v114_v26  ;;  %v122_v63 = vmul.f32 %v316_v53, %v121_v58  ;;  %vm147_vm4 = vweird.f32 %v318_v59 }
 0x110   :  { %v185_v1 = vmul.f32 %v169_v61, %v391_v39  ;;  %v142_v6 = vmul.f32 %v318_v59, %v141_v0  ;;  %291 = vmatmul.msk.bf16.vlgmr.msra.gmra.mxu3 %vm25_vm0, %v212_v2  ;;  %v139_v8 = vsel %vm138_vm1, %v443_v29, %v135_v60  ;;  %vm148_vm7 = vmor %vm146_vm6, %vm147_vm4 }
 0x111   :  { %v119_v4 = vsel %vm118_vm15, %v314_v32, %v115_v62  ;;  %v123_v5 = vmul.f32 0.5, %v122_v63  ;;  %v182_v15 = vmul.f32 %v139_v8, %v395_v41 }
 0x112   :  { %v196_v7 = vmul.f32 %v461_v42, %v185_v1  ;;  %v143_v39 = vmul.f32 0.5, %v142_v6  ;;  %v180_v10 = vmul.f32 %v119_v4, %v393_v40 }
 0x113   :  { %v124_v9 = vsub.f32 1.5, %v123_v5  ;;  %v193_v41 = vmul.f32 %v461_v42, %v182_v15 }
 0x114   :  { %v207_v13 = vadd.f32 %v467_v49, %v196_v7  ;;  %v144_v11 = vsub.f32 1.5, %v143_v39  ;;  %v191_v40 = vmul.f32 %v461_v42, %v180_v10 }
 0x115   :  { %v125_v14 = vmul.f32 %v316_v53, %v124_v9 }
 0x116   :  { %v211_v16 = vpack.c.bf16 %v207_v13, %v206_v12  ;;  %v145_v18 = vmul.f32 %v318_v59, %v144_v11  ;;  %v202_v24 = vadd.f32 %v467_v49, %v191_v40 }
 0x117   :  { %v129_v17 = vsel %vm128_vm5, %v316_v53, %v125_v14 }
 0x118   :  { %v181_v19 = vmul.f32 %v129_v17, %v403_v45  ;;  %290 = vmatmul.msk.bf16.vlgmr.msra.gmra.mxu2 %vm25_vm0, %v211_v16  ;;  %v149_v21 = vsel %vm148_vm7, %v318_v59, %v145_v18  ;;  %v204_v45 = vadd.f32 %v467_v49, %v193_v41 }
 0x119   :  { %v183_v22 = vmul.f32 %v149_v21, %v409_v51 }
 0x11a   :  { %v192_v23 = vmul.f32 %v461_v42, %v181_v19 }
 0x11b   :  { %v194_v28 = vmul.f32 %v461_v42, %v183_v22 }
 0x11c   :  { %v203_v25 = vadd.f32 %v467_v49, %v192_v23 }
 0x11d   :  { %v205_v30 = vadd.f32 %v467_v49, %v194_v28 }
 0x11e   :  { %v209_v29 = vpack.c.bf16 %v203_v25, %v202_v24 }
 0x11f   :  { %v210_v31 = vpack.c.bf16 %v205_v30, %v204_v45 }
 0x120   :  { %288 = vmatmul.msk.bf16.vlgmr.msra.gmra.mxu0 %vm25_vm0, %v209_v29 }
 0x121   :  { %289 = vmatmul.msk.bf16.vlgmr.msra.gmra.mxu1 %vm25_vm0, %v210_v31 }
 0x193   :  { %v265_v51 = vpop.f32.mrf.mxu3 }
 0x194   :  { %275 = vst [vmem:[%s534_s4 + $0x30] sm:$0xff] %v265_v51 }
 0x19b   :  { %v260_v32 = vpop.f32.mrf.mxu2  ;;  %v267_v33 = vpop.f32.mrf.mxu3 }
 0x19c   :  { %273 = vst [vmem:[%s534_s4 + $0x20] sm:$0xff] %v260_v32 }
 0x19d   :  { %v250_v20 = vpop.f32.mrf.mxu0 }
 0x19e   :  { %269 = vst [vmem:[%s534_s4] sm:$0xff] %v250_v20  ;;  %v255_v34 = vpop.f32.mrf.mxu1 }
 0x19f   :  { %271 = vst [vmem:[%s534_s4 + $0x10] sm:$0xff] %v255_v34 }
 0x1a3   :  { %v262_v35 = vpop.f32.mrf.mxu2 }
 0x1a4   :  { %274 = vst [vmem:[%s534_s4 + $0x28] sm:$0xff] %v262_v35 }
 0x1a5   :  { %v252_v36 = vpop.f32.mrf.mxu0 }
 0x1a6   :  { %270 = vst [vmem:[%s534_s4 + $0x8] sm:$0xff] %v252_v36  ;;  %v257_v37 = vpop.f32.mrf.mxu1 }
 0x1a7   :  { %272 = vst [vmem:[%s534_s4 + $0x18] sm:$0xff] %v257_v37 }

// kernel: loss_fn.60
= control target key start
LH: loop header
LB: loop body
LE: loop exit
PB: predicated region body
PF: predicated region fallthrough
CT: control target
= control target key end

     0   :  { %vm49_vm0 = vcmask 261120   ;;  %s233_s1 = inlined_call_operand.vmem [shape: bf16[32,128], index: 1, kind: input, shape index: {}]   ;;  %s234_s0 = inlined_call_operand.vmem [shape: f32[56,32], index: 0, kind: input, shape index: {}]   ;;  %s235_s2 = inlined_call_operand.vmem [shape: f32[1,128], index: 2, kind: input, shape index: {}]   ;;  %s236_s3 = inlined_call_operand.vmem [shape: f32[56,128], index: 3, kind: input, shape index: {}]   ;;  %s237_s4 = inlined_call_operand.vmem [shape: f32[56,128], index: 4, kind: output, shape index: {}]  }
   0x1   :  { %v128_v0 = vld [vmem:[%s233_s1 + $0x8] sm:$0xff]  ;;  %v127_v1 = vld [vmem:[%s233_s1] sm:$0xff]  ;;  %v20_v4 = vld [vmem:[%s234_s0 + $0x10] sm:$0xff] }
   0x2   :  { %v18_v2 = vld [vmem:[%s234_s0] sm:$0xff]  ;;  %v19_v3 = vld [vmem:[%s234_s0 + $0x8] sm:$0xff]  ;;  %68 = vmatpush.bf16.msra.mxu0 %v128_v0  ;;  %129 = vmatpush.bf16.msra.mxu1 %v128_v0  ;;  %v21_v5 = vld [vmem:[%s234_s0 + $0x18] sm:$0xff] }
   0x3   :  { %v22_v6 = vld [vmem:[%s234_s0 + $0x20] sm:$0xff]  ;;  %130 = vmatpush.bf16.msra.mxu2 %v128_v0  ;;  %131 = vmatpush.bf16.msra.mxu3 %v128_v0  ;;  %v23_v7 = vld [vmem:[%s234_s0 + $0x28] sm:$0xff]  ;;  %v24_v8 = vld [vmem:[%s234_s0 + $0x30] sm:$0xff]  ;;  %v25_v9 = vpack.c.bf16 %v19_v3, %v18_v2  ;;  %v26_v10 = vpack.c.bf16 %v21_v5, %v20_v4 }
   0x4   :  { %v27_v11 = vpack.c.bf16 %v23_v7, %v22_v6  ;;  %v28_v12 = vpack.c.bf16 %v24_v8, %v24_v8  ;;  %v135_v13 = vld [vmem:[%s235_s2] ss:$0 sm:$0xff]  ;;  %v92_v17 = vld [vmem:[%s236_s3 + $0x10] sm:$0xff]  ;;  %v91_v29 = vld [vmem:[%s236_s3 + $0x8] sm:$0xff] }
   0x5   :  { %v90_v15 = vld [vmem:[%s236_s3] sm:$0xff]  ;;  %v96_v25 = vld [vmem:[%s236_s3 + $0x30] sm:$0xff]  ;;  %v93_v31 = vld [vmem:[%s236_s3 + $0x18] sm:$0xff] }
   0x6   :  { %69 = vmatpush.bf16.msra.mxu0 %v127_v1  ;;  %132 = vmatpush.bf16.msra.mxu1 %v127_v1  ;;  %v94_v23 = vld [vmem:[%s236_s3 + $0x20] sm:$0xff]  ;;  %v95_v39 = vld [vmem:[%s236_s3 + $0x28] sm:$0xff] }
   0x7   :  { %133 = vmatpush.bf16.msra.mxu2 %v127_v1  ;;  %134 = vmatpush.bf16.msra.mxu3 %v127_v1 }
   0x9   :  { %123 = vmatmul.msk.bf16.vlgmr.msra.gmra.mxu0 %vm49_vm0, %v25_v9  ;;  %124 = vmatmul.msk.bf16.vlgmr.msra.gmra.mxu1 %vm49_vm0, %v26_v10 }
   0xa   :  { %125 = vmatmul.msk.bf16.vlgmr.msra.gmra.mxu2 %vm49_vm0, %v27_v11  ;;  %126 = vmatmul.msk.bf16.vlgmr.msra.gmra.mxu3 %vm49_vm0, %v28_v12 }
  0x86   :  { %v71_v14 = vpop.f32.mrf.mxu0  ;;  %v76_v16 = vpop.f32.mrf.mxu1 }
  0x87   :  { %v72_v18 = vadd.f32 %v135_v13, %v71_v14  ;;  %v77_v19 = vadd.f32 %v135_v13, %v76_v16 }
  0x89   :  { %v97_v20 = vadd.f32 %v90_v15, %v72_v18  ;;  %v99_v21 = vadd.f32 %v92_v17, %v77_v19 }
  0x8b   :  { %104 = vst [vmem:[%s237_s4] sm:$0xff] %v97_v20 }
  0x8c   :  { %106 = vst [vmem:[%s237_s4 + $0x10] sm:$0xff] %v99_v21 }
  0x8d   :  { %v81_v22 = vpop.f32.mrf.mxu2  ;;  %v86_v24 = vpop.f32.mrf.mxu3 }
  0x8e   :  { %v82_v26 = vadd.f32 %v135_v13, %v81_v22  ;;  %v87_v27 = vadd.f32 %v135_v13, %v86_v24  ;;  %v73_v28 = vpop.f32.mrf.mxu0  ;;  %v78_v30 = vpop.f32.mrf.mxu1 }
  0x8f   :  { %v74_v32 = vadd.f32 %v135_v13, %v73_v28  ;;  %v79_v33 = vadd.f32 %v135_v13, %v78_v30 }
  0x90   :  { %v101_v34 = vadd.f32 %v94_v23, %v82_v26  ;;  %v103_v35 = vadd.f32 %v96_v25, %v87_v27 }
  0x91   :  { %v98_v36 = vadd.f32 %v91_v29, %v74_v32  ;;  %v100_v37 = vadd.f32 %v93_v31, %v79_v33 }
  0x92   :  { %108 = vst [vmem:[%s237_s4 + $0x20] sm:$0xff] %v101_v34 }
  0x93   :  { %110 = vst [vmem:[%s237_s4 + $0x30] sm:$0xff] %v103_v35 }
  0x94   :  { %105 = vst [vmem:[%s237_s4 + $0x8] sm:$0xff] %v98_v36 }
  0x95   :  { %107 = vst [vmem:[%s237_s4 + $0x18] sm:$0xff] %v100_v37  ;;  %v83_v38 = vpop.f32.mrf.mxu2  ;;  %v88_v40 = vpop.f32.mrf.mxu3 }
  0x96   :  { %v84_v41 = vadd.f32 %v135_v13, %v83_v38 }
  0x98   :  { %v102_v42 = vadd.f32 %v95_v39, %v84_v41 }
  0x9a   :  { %109 = vst [vmem:[%s237_s4 + $0x28] sm:$0xff] %v102_v42 }

// kernel: loss_fn.59
= control target key start
LH: loop header
LB: loop body
LE: loop exit
PB: predicated region body
PF: predicated region fallthrough
CT: control target
= control target key end

     0   :  { %s1346_s15 = smov 0   ;;  %s1675_s0 = inlined_call_operand.vmem [shape: f32[48,9,4], index: 0, kind: input, shape index: {}]   ;;  %s1676_s1 = inlined_call_operand.vmem [shape: f32[48,9,4], index: 1, kind: input, shape index: {}]   ;;  %s1677_s2 = inlined_call_operand.vmem [shape: f32[48,9,4], index: 2, kind: input, shape index: {}]   ;;  %s1678_s3 = inlined_call_operand.vmem [shape: f32[6,9,9], index: 3, kind: input, shape index: {}]   ;;  %s1679_s4 = inlined_call_operand.vmem [shape: f32[48,9,4], index: 4, kind: output, shape index: {}]  }
   0x1 LB: > { %s1352_s16 = sadd.s32 4294967295, %s1318_s15   ;;  %p1201_p0 = scmp.ge.s32.totalorder %s1318_s15, 1  ;;  %s1318_s15 = sphi %s1346_s15, %s14_s15  }
   0x2   : > { %p198_p1 = scmp.lt.s32.totalorder %s1318_s15, 7 }
   0x4   : > { %p199_p2 = pnand %p1201_p0, %p198_p1 }
   0x5   : > { %s1202_s17 = sshll.u32 (!%p199_p2), %s1352_s16, 3  ;;  %p264_p4 = scmp.lt.s32.totalorder (!%p199_p2), %s1352_s16, 5 }
   0x6   : > { %202 = sbr.rel (%p199_p2) target bundleno = 598 (0x256), region = 36  ;;  %p244_p3 = scmp.lt.s32.totalorder (!%p199_p2), %s1202_s17, 47 }
   0xb   : > { %s1681_s17 = smov (!%p244_p3, %s1202_s17), 47  ;;  %vm383_vm0 = vcmask 31744   ;;  %s1683_s16 = smov (!%p264_p4, %s1352_s16), 5  ;;  %vm648_vm1 = vcmask 72704   ;;  %vm652_vm2 = vcmask 65536   ;;  %vm855_vm3 = vcmask 1043456  }
   0xc   : > { %s1357_s18 = sshll.u32 %s1681_s17, 4  ;;  %s1237_s25 = sshll.u32 %s1683_s16, 4  ;;  %vm856_vm4 = vcmask 1044480   ;;  %vm1087_vm5 = vcmask 24576  }
   0xd   : > { %s1363_s21 = scalar_lea.vmem %s1676_s1, %s1357_s18  ;;  %s1369_s24 = scalar_lea.vmem %s1675_s0, %s1357_s18 }
   0xe   : > { %v309_v0 = vld [vmem:[%s1363_s21] sm:$0xff]  ;;  %v310_v1 = vld [vmem:[%s1363_s21 + $0x8] sm:$0x1]  ;;  %v311_v2 = vld [vmem:[%s1363_s21 + $0x10] sm:$0xff]  ;;  %s268_s28 = scalar_lea.vmem %s1678_s3, %s1237_s25  ;;  %s1582_s5 = scalar_lea.vmem %s1677_s2, %s1357_s18 }
   0xf   : > { %v325_v3 = vpack.c.bf16 %v309_v0, %v309_v0  ;;  %v326_v4 = vpack.c.bf16 %v310_v1, %v310_v1  ;;  %v312_v5 = vld [vmem:[%s1363_s21 + $0x18] sm:$0x1]  ;;  %v327_v6 = vpack.c.bf16 %v311_v2, %v311_v2  ;;  %v313_v7 = vld [vmem:[%s1363_s21 + $0x20] sm:$0xff]  ;;  %v314_v8 = vld [vmem:[%s1363_s21 + $0x28] sm:$0x1]  ;;  %s1638_s8 = scalar_lea.vmem %s1679_s4, %s1357_s18 }
  0x10   : > { %v328_v9 = vpack.c.bf16 %v312_v5, %v312_v5  ;;  %v329_v10 = vpack.c.bf16 %v313_v7, %v313_v7  ;;  %v330_v11 = vpack.c.bf16 %v314_v8, %v314_v8  ;;  %v315_v12 = vld [vmem:[%s1363_s21 + $0x30] sm:$0xff]  ;;  %v316_v13 = vld [vmem:[%s1363_s21 + $0x38] sm:$0x1]  ;;  %v277_v14 = vld [vmem:[%s1369_s24] sm:$0xff] }
  0x11   : > { %v380_v15 = vunpack.c.l.b16 %v325_v3  ;;  %v381_v16 = vunpack.c.l.b16 %v326_v4  ;;  %v411_v17 = vunpack.c.l.b16 %v327_v6  ;;  %v331_v18 = vpack.c.bf16 %v315_v12, %v315_v12  ;;  %v278_v19 = vld [vmem:[%s1369_s24 + $0x8] sm:$0x1]  ;;  %v279_v20 = vld [vmem:[%s1369_s24 + $0x10] sm:$0xff]  ;;  %v280_v25 = vld [vmem:[%s1369_s24 + $0x18] sm:$0x1] }
  0x12   : > { %v412_v21 = vunpack.c.l.b16 %v328_v9  ;;  %v441_v22 = vunpack.c.l.b16 %v329_v10  ;;  %v442_v23 = vunpack.c.l.b16 %v330_v11  ;;  %v332_v24 = vpack.c.bf16 %v316_v13, %v316_v13  ;;  %v281_v34 = vld [vmem:[%s1369_s24 + $0x20] sm:$0xff]  ;;  %v282_v35 = vld [vmem:[%s1369_s24 + $0x28] sm:$0x1]  ;;  %v283_v40 = vld [vmem:[%s1369_s24 + $0x30] sm:$0xff] }
  0x13   : > { %v382_v26 = vpack.c.b16 %v381_v16, %v380_v15  ;;  %v471_v27 = vunpack.c.l.b16 %v331_v18  ;;  %v293_v28 = vpack.c.bf16 %v277_v14, %v277_v14  ;;  %v294_v29 = vpack.c.bf16 %v278_v19, %v278_v19  ;;  %v284_v41 = vld [vmem:[%s1369_s24 + $0x38] sm:$0x1]  ;;  %v321_v42 = vld [vmem:[%s1363_s21 + $0x60] sm:$0xff]  ;;  %v322_v47 = vld [vmem:[%s1363_s21 + $0x68] sm:$0x1] }
  0x14   : > { %v413_v30 = vpack.c.b16 %v412_v21, %v411_v17  ;;  %v443_v31 = vpack.c.b16 %v442_v23, %v441_v22  ;;  %v472_v32 = vunpack.c.l.b16 %v332_v24  ;;  %v295_v33 = vpack.c.bf16 %v279_v20, %v279_v20  ;;  %v323_v52 = vld [vmem:[%s1363_s21 + $0x70] sm:$0xff]  ;;  %v324_v57 = vld [vmem:[%s1363_s21 + $0x78] sm:$0x1]  ;;  %v317_v58 = vld [vmem:[%s1363_s21 + $0x40] sm:$0xff] }
  0x15   : > { %v388_v36 = vsel %vm383_vm0, %v382_v26, 0  ;;  %v375_v37 = vunpack.c.l.b16 %v293_v28  ;;  %v376_v38 = vunpack.c.l.b16 %v294_v29  ;;  %v296_v39 = vpack.c.bf16 %v280_v25, %v280_v25  ;;  %v318_v63 = vld [vmem:[%s1363_s21 + $0x48] sm:$0x1]  ;;  %v319_v8 = vld [vmem:[%s1363_s21 + $0x50] sm:$0xff]  ;;  %v320_v9 = vld [vmem:[%s1363_s21 + $0x58] sm:$0x1] }
  0x16   : > { %397 = vmatpush.bf16.xpose.msra.mxu0 %v388_v36  ;;  %v418_v43 = vsel %vm383_vm0, %v413_v30, 0  ;;  %v448_v44 = vsel %vm383_vm0, %v443_v31, 0  ;;  %v473_v45 = vpack.c.b16 %v472_v32, %v471_v27  ;;  %v406_v46 = vunpack.c.l.b16 %v295_v33  ;;  %v285_v17 = vld [vmem:[%s1369_s24 + $0x40] sm:$0xff]  ;;  %v286_v18 = vld [vmem:[%s1369_s24 + $0x48] sm:$0x1]  ;;  %v287_v28 = vld [vmem:[%s1369_s24 + $0x50] sm:$0xff] }
  0x17   : > { %427 = vmatpush.bf16.xpose.msra.mxu1 %v418_v43  ;;  %457 = vmatpush.bf16.xpose.msra.mxu2 %v448_v44  ;;  %v377_v48 = vpack.c.b16 %v376_v38, %v375_v37  ;;  %v407_v49 = vunpack.c.l.b16 %v296_v39  ;;  %v297_v50 = vpack.c.bf16 %v281_v34, %v281_v34  ;;  %v298_v51 = vpack.c.bf16 %v282_v35, %v282_v35  ;;  %v289_v23 = vld [vmem:[%s1369_s24 + $0x60] sm:$0xff]  ;;  %v290_v24 = vld [vmem:[%s1369_s24 + $0x68] sm:$0x1]  ;;  %v288_v29 = vld [vmem:[%s1369_s24 + $0x58] sm:$0x1] }
  0x18   : > { %v478_v53 = vsel %vm383_vm0, %v473_v45, 0  ;;  %v299_v54 = vpack.c.bf16 %v283_v40, %v283_v40  ;;  %v300_v55 = vpack.c.bf16 %v284_v41, %v284_v41  ;;  %v337_v56 = vpack.c.bf16 %v321_v42, %v321_v42  ;;  %v291_v33 = vld [vmem:[%s1369_s24 + $0x70] sm:$0xff]  ;;  %v292_v34 = vld [vmem:[%s1369_s24 + $0x78] sm:$0x1] }
  0x19   : > { %487 = vmatpush.bf16.xpose.msra.mxu3 %v478_v53  ;;  %v408_v59 = vpack.c.b16 %v407_v49, %v406_v46  ;;  %v436_v60 = vunpack.c.l.b16 %v297_v50  ;;  %v437_v61 = vunpack.c.l.b16 %v298_v51  ;;  %v338_v62 = vpack.c.bf16 %v322_v47, %v322_v47 }
  0x1a   : > { %v466_v0 = vunpack.c.l.b16 %v299_v54  ;;  %v467_v1 = vunpack.c.l.b16 %v300_v55  ;;  %v561_v2 = vunpack.c.l.b16 %v337_v56  ;;  %v339_v3 = vpack.c.bf16 %v323_v52, %v323_v52 }
  0x1b   : > { %v438_v4 = vpack.c.b16 %v437_v61, %v436_v60  ;;  %v562_v5 = vunpack.c.l.b16 %v338_v62  ;;  %v340_v6 = vpack.c.bf16 %v324_v57, %v324_v57  ;;  %v333_v7 = vpack.c.bf16 %v317_v58, %v317_v58  ;;  %v1424_v57 = vld [vmem:[%s268_s28] sm:$0xff] }
  0x1c   : > { %v468_v10 = vpack.c.b16 %v467_v1, %v466_v0  ;;  %v591_v11 = vunpack.c.l.b16 %v339_v3  ;;  %v334_v12 = vpack.c.bf16 %v318_v63, %v318_v63  ;;  %v335_v19 = vpack.c.bf16 %v319_v8, %v319_v8 }
  0x1d   : > { %1216 = vmatmul.msk.bf16.vlgmr.msra.gmra.mxu0 %vm383_vm0, %v377_v48  ;;  %v563_v13 = vpack.c.b16 %v562_v5, %v561_v2  ;;  %v592_v14 = vunpack.c.l.b16 %v340_v6  ;;  %v501_v15 = vunpack.c.l.b16 %v333_v7  ;;  %v336_v20 = vpack.c.bf16 %v320_v9, %v320_v9 }
  0x1e   : > { %1217 = vmatmul.msk.bf16.vlgmr.msra.gmra.mxu1 %vm383_vm0, %v408_v59  ;;  %1218 = vmatmul.msk.bf16.vlgmr.msra.gmra.mxu2 %vm383_vm0, %v438_v4  ;;  %v502_v16 = vunpack.c.l.b16 %v334_v12  ;;  %v531_v26 = vunpack.c.l.b16 %v335_v19  ;;  %v301_v31 = vpack.c.bf16 %v285_v17, %v285_v17  ;;  %v302_v32 = vpack.c.bf16 %v286_v18, %v286_v18  ;;  %v631_v4 = vld [vmem:[%s268_s28 + $0x8] sm:$0x1] }
  0x1f   : > { %v568_v21 = vsel %vm383_vm0, %v563_v13, 0  ;;  %v593_v22 = vpack.c.b16 %v592_v14, %v591_v11  ;;  %v532_v27 = vunpack.c.l.b16 %v336_v20  ;;  %v305_v37 = vpack.c.bf16 %v289_v23, %v289_v23 }
  0x20   : > { %1219 = vmatmul.msk.bf16.vlgmr.msra.gmra.mxu3 %vm383_vm0, %v468_v10  ;;  %577 = vmatpush.bf16.xpose.msrb.mxu2 %v568_v21  ;;  %v503_v25 = vpack.c.b16 %v502_v16, %v501_v15  ;;  %v306_v38 = vpack.c.bf16 %v290_v24, %v290_v24  ;;  %v303_v39 = vpack.c.bf16 %v287_v28, %v287_v28  ;;  %v496_v44 = vunpack.c.l.b16 %v301_v31 }
  0x21   : > { %v598_v30 = vsel %vm383_vm0, %v593_v22, 0  ;;  %v533_v36 = vpack.c.b16 %v532_v27, %v531_v26  ;;  %v304_v40 = vpack.c.bf16 %v288_v29, %v288_v29  ;;  %v307_v42 = vpack.c.bf16 %v291_v33, %v291_v33 }
  0x22   : > { %607 = vmatpush.bf16.xpose.msrb.mxu3 %v598_v30  ;;  %v508_v35 = vsel %vm383_vm0, %v503_v25, 0  ;;  %v308_v43 = vpack.c.bf16 %v292_v34, %v292_v34  ;;  %v497_v45 = vunpack.c.l.b16 %v302_v32  ;;  %v556_v46 = vunpack.c.l.b16 %v305_v37 }
  0x23   : > { %517 = vmatpush.bf16.xpose.msrb.mxu0 %v508_v35  ;;  %v538_v41 = vsel %vm383_vm0, %v533_v36, 0  ;;  %v557_v47 = vunpack.c.l.b16 %v306_v38  ;;  %v526_v48 = vunpack.c.l.b16 %v303_v39  ;;  %v527_v49 = vunpack.c.l.b16 %v304_v40 }
  0x24   : > { %547 = vmatpush.bf16.xpose.msrb.mxu1 %v538_v41  ;;  %v586_v50 = vunpack.c.l.b16 %v307_v42  ;;  %v587_v51 = vunpack.c.l.b16 %v308_v43  ;;  %v498_v52 = vpack.c.b16 %v497_v45, %v496_v44 }
  0x25   : > { %v558_v53 = vpack.c.b16 %v557_v47, %v556_v46  ;;  %v528_v54 = vpack.c.b16 %v527_v49, %v526_v48 }
  0x26   : > { %v588_v55 = vpack.c.b16 %v587_v51, %v586_v50 }
  0x2d   : > { %1220 = vmatmul.msk.bf16.vlgmr.msrb.gmra.mxu0 %vm383_vm0, %v498_v52 }
  0x2e   : > { %1222 = vmatmul.msk.bf16.vlgmr.msrb.gmra.mxu2 %vm383_vm0, %v558_v53  ;;  %1221 = vmatmul.msk.bf16.vlgmr.msrb.gmra.mxu1 %vm383_vm0, %v528_v54 }
  0x30   : > { %1223 = vmatmul.msk.bf16.vlgmr.msrb.gmra.mxu3 %vm383_vm0, %v588_v55 }
  0x9a   : > { %v399_v56 = vpop.f32.mrf.mxu0 }
  0x9b   : > { %v614_v58 = vmul.f32 0.17677669, %v399_v56  ;;  %v429_v59 = vpop.f32.mrf.mxu1 }
  0x9c   : > { %v616_v60 = vmul.f32 0.17677669, %v429_v59 }
  0x9d   : > { %v1427_v61 = vadd.f32 %v1424_v57, %v614_v58 }
  0x9e   : > { %v1430_v62 = vadd.f32 %v1424_v57, %v616_v60 }
  0x9f   : > { %v649_v63 = vsel %vm648_vm1, %v1427_v61, -inf }
  0xa0   : > { %v656_v0 = vsel %vm648_vm1, %v1430_v62, -inf  ;;  %650 = vmax.xlane.f32.xlu2 %v649_v63 }
  0xa1   : > { %v459_v1 = vpop.f32.mrf.mxu2  ;;  %657 = vmax.xlane.f32.xlu0 %v656_v0 }
  0xa2   : > { %v618_v2 = vmul.f32 0.17677669, %v459_v1  ;;  %v401_v3 = vpop.f32.mrf.mxu0 }
  0xa3   : > { %v489_v5 = vpop.f32.mrf.mxu3  ;;  %v615_v6 = vmul.f32 0.17677669, %v401_v3  ;;  %v431_v17 = vpop.f32.mrf.mxu1 }
  0xa4   : > { %v620_v7 = vmul.f32 0.17677669, %v489_v5  ;;  %v1437_v8 = vadd.f32 %v1424_v57, %v618_v2  ;;  %v617_v23 = vmul.f32 0.17677669, %v431_v17 }
  0xa5   : > { %v1439_v9 = vadd.f32 %v631_v4, %v615_v6 }
  0xa6   : > { %v1442_v10 = vadd.f32 %v1424_v57, %v620_v7  ;;  %v662_v11 = vsel %vm648_vm1, %v1437_v8, -inf  ;;  %v1461_v31 = vadd.f32 %v631_v4, %v617_v23 }
  0xa7   : > { %v653_v12 = vsel %vm652_vm2, %v1439_v9, -inf }
  0xa8   : > { %v668_v13 = vsel %vm648_vm1, %v1442_v10, -inf  ;;  %654 = vmax.xlane.f32.xlu2 %v653_v12  ;;  %v659_v36 = vsel %vm652_vm2, %v1461_v31, -inf }
  0xa9   : > { %669 = vmax.xlane.f32.xlu1 %v668_v13  ;;  %v461_v14 = vpop.f32.mrf.mxu2  ;;  %663 = vmax.xlane.f32.xlu0 %v662_v11 }
  0xaa   : > { %v619_v15 = vmul.f32 0.17677669, %v461_v14  ;;  %v519_v20 = vpop.f32.mrf.mxu0 }
  0xab   : > { %v491_v16 = vpop.f32.mrf.mxu3  ;;  %v622_v21 = vmul.f32 0.17677669, %v519_v20  ;;  %v549_v30 = vpop.f32.mrf.mxu1 }
  0xac   : > { %v621_v18 = vmul.f32 0.17677669, %v491_v16  ;;  %v1450_v19 = vadd.f32 %v631_v4, %v619_v15  ;;  %v624_v47 = vmul.f32 0.17677669, %v549_v30 }
  0xad   : > { %v1459_v28 = vadd.f32 %v1424_v57, %v622_v21 }
  0xae   : > { %v1452_v22 = vadd.f32 %v631_v4, %v621_v18  ;;  %v665_v25 = vsel %vm652_vm2, %v1450_v19, -inf  ;;  %v1486_v52 = vadd.f32 %v1424_v57, %v624_v47 }
  0xaf   : > { %v674_v34 = vsel %vm648_vm1, %v1459_v28, -inf }
  0xb0   : > { %v671_v24 = vsel %vm652_vm2, %v1452_v22, -inf  ;;  %v680_v55 = vsel %vm648_vm1, %v1486_v52, -inf }
  0xb1   : > { %672 = vmax.xlane.f32.xlu1 %v671_v24  ;;  %v579_v26 = vpop.f32.mrf.mxu2  ;;  %666 = vmax.xlane.f32.xlu0 %v665_v25 }
  0xb2   : > { %v626_v27 = vmul.f32 0.17677669, %v579_v26  ;;  %v521_v42 = vpop.f32.mrf.mxu0 }
  0xb3   : > { %v609_v29 = vpop.f32.mrf.mxu3  ;;  %v551_v44 = vpop.f32.mrf.mxu1  ;;  %v623_v46 = vmul.f32 0.17677669, %v521_v42 }
  0xb4   : > { %v1464_v32 = vadd.f32 %v1424_v57, %v626_v27  ;;  %v628_v35 = vmul.f32 0.17677669, %v609_v29  ;;  %v625_v50 = vmul.f32 0.17677669, %v551_v44 }
  0xb5   : > { %v1488_v53 = vadd.f32 %v631_v4, %v623_v46 }
  0xb6   : > { %v686_v33 = vsel %vm648_vm1, %v1464_v32, -inf  ;;  %v1473_v41 = vadd.f32 %v1424_v57, %v628_v35  ;;  %v1490_v54 = vadd.f32 %v631_v4, %v625_v50 }
  0xb7   : > { %687 = vmax.xlane.f32.xlu2 %v686_v33  ;;  %v677_v56 = vsel %vm652_vm2, %v1488_v53, -inf }
  0xb8   : > { %v692_v48 = vsel %vm648_vm1, %v1473_v41, -inf  ;;  %v683_v58 = vsel %vm652_vm2, %v1490_v54, -inf }
  0xb9   : > { %660 = vmax.xlane.f32.xlu1 %v659_v36  ;;  %v581_v37 = vpop.f32.mrf.mxu2  ;;  %675 = vmax.xlane.f32.xlu0 %v674_v34 }
  0xba   : > { %v627_v38 = vmul.f32 0.17677669, %v581_v37 }
  0xbb   : > { %v611_v39 = vpop.f32.mrf.mxu3 }
  0xbc   : > { %v629_v40 = vmul.f32 0.17677669, %v611_v39  ;;  %v1475_v43 = vadd.f32 %v631_v4, %v627_v38 }
  0xbe   : > { %v1477_v45 = vadd.f32 %v631_v4, %v629_v40  ;;  %v689_v51 = vsel %vm652_vm2, %v1475_v43, -inf }
  0xc0   : > { %v695_v49 = vsel %vm652_vm2, %v1477_v45, -inf }
  0xc1   : > { %693 = vmax.xlane.f32.xlu1 %v692_v48  ;;  %696 = vmax.xlane.f32.xlu2 %v695_v49 }
  0xc2   : > { %690 = vmax.xlane.f32.xlu0 %v689_v51 }
  0xc9   : > { %681 = vmax.xlane.f32.xlu2 %v680_v55  ;;  %678 = vmax.xlane.f32.xlu1 %v677_v56 }
  0xca   : > { %684 = vmax.xlane.f32.xlu0 %v683_v58 }
 0x113   : > { %v651_v59 = vpop.xlane.xlu2 %650 }
 0x114   : > { %v658_v60 = vpop.xlane.xlu0 %657  ;;  %v698_v57 = vsub.f32 %v1427_v61, %v651_v59 }
 0x115   : > { %v700_v63 = vsub.f32 %v1430_v62, %v658_v60 }
 0x116   : > { %v714_v0 = vmul.f32 1.442695, %v698_v57 }
 0x117   : > { %v718_v1 = vmul.f32 1.442695, %v700_v63 }
 0x118   : > { %1248 = vpow2.f32 %v714_v0 }
 0x119   : > { %1250 = vpow2.f32 %v718_v1 }
 0x11b   : > { %v655_v2 = vpop.xlane.xlu2 %654 }
 0x11c   : > { %v670_v3 = vpop.xlane.xlu1 %669  ;;  %v664_v4 = vpop.xlane.xlu0 %663  ;;  %v699_v61 = vsub.f32 %v1439_v9, %v655_v2 }
 0x11d   : > { %v704_v5 = vsub.f32 %v1442_v10, %v670_v3  ;;  %v702_v6 = vsub.f32 %v1437_v8, %v664_v4 }
 0x11e   : > { %v1502_v7 = vpop.eup %1248  ;;  %v716_v10 = vmul.f32 1.442695, %v699_v61 }
 0x11f   : > { %v1504_v11 = vpop.eup %1250  ;;  %v726_v12 = vmul.f32 1.442695, %v704_v5  ;;  %v722_v13 = vmul.f32 1.442695, %v702_v6  ;;  %v746_v62 = vsel %vm648_vm1, %v1502_v7, 0.0 }
 0x120   : > { %747 = vadd.xlane.f32.xlu2 %v746_v62  ;;  %v752_v14 = vsel %vm648_vm1, %v1504_v11, 0.0 }
 0x121   : > { %1252 = vpow2.f32 %v726_v12  ;;  %753 = vadd.xlane.f32.xlu1 %v752_v14 }
 0x122   : > { %1254 = vpow2.f32 %v722_v13 }
 0x123   : > { %1256 = vpow2.f32 %v716_v10  ;;  %v341_v10 = vld [vmem:[%s1582_s5] sm:$0xff] }
 0x124   : > { %v673_v8 = vpop.xlane.xlu1 %672  ;;  %v667_v15 = vpop.xlane.xlu0 %666 }
 0x125   : > { %v705_v16 = vsub.f32 %v1452_v22, %v673_v8  ;;  %v703_v17 = vsub.f32 %v1450_v19, %v667_v15  ;;  %v342_v8 = vld [vmem:[%s1582_s5 + $0x8] sm:$0x1]  ;;  %v357_v15 = vpack.c.bf16 %v341_v10, %v341_v10 }
 0x127   : > { %v1513_v18 = vpop.eup %1252  ;;  %v728_v9 = vmul.f32 1.442695, %v705_v16  ;;  %v724_v20 = vmul.f32 1.442695, %v703_v17  ;;  %v358_v16 = vpack.c.bf16 %v342_v8, %v342_v8  ;;  %v345_v17 = vld [vmem:[%s1582_s5 + $0x20] sm:$0xff] }
 0x128   : > { %v1515_v21 = vpop.eup %1254  ;;  %v764_v23 = vsel %vm648_vm1, %v1513_v18, 0.0 }
 0x129   : > { %1258 = vpow2.f32 %v728_v9  ;;  %765 = vadd.xlane.f32.xlu0 %v764_v23  ;;  %v758_v24 = vsel %vm648_vm1, %v1515_v21, 0.0  ;;  %v1522_v27 = vpop.eup %1256  ;;  %v346_v9 = vld [vmem:[%s1582_s5 + $0x28] sm:$0x1]  ;;  %v361_v23 = vpack.c.bf16 %v345_v17, %v345_v17 }
 0x12a   : > { %1260 = vpow2.f32 %v724_v20  ;;  %759 = vadd.xlane.f32.xlu1 %v758_v24  ;;  %v688_v22 = vpop.xlane.xlu2 %687  ;;  %v749_v38 = vsel %vm652_vm2, %v1522_v27, 0.0  ;;  %v347_v20 = vld [vmem:[%s1582_s5 + $0x30] sm:$0xff]  ;;  %v362_v24 = vpack.c.bf16 %v346_v9, %v346_v9 }
 0x12b   : > { %v710_v19 = vsub.f32 %v1464_v32, %v688_v22  ;;  %v348_v22 = vld [vmem:[%s1582_s5 + $0x38] sm:$0x1] }
 0x12c   : > { %v661_v25 = vpop.xlane.xlu1 %660  ;;  %v676_v26 = vpop.xlane.xlu0 %675 }
 0x12d   : > { %v701_v29 = vsub.f32 %v1461_v31, %v661_v25  ;;  %v738_v30 = vmul.f32 1.442695, %v710_v19  ;;  %v706_v33 = vsub.f32 %v1459_v28, %v676_v26  ;;  %v363_v19 = vpack.c.bf16 %v347_v20, %v347_v20 }
 0x12e   : > { %v849_v25 = vunpack.c.l.b16 %v357_v15  ;;  %v364_v26 = vpack.c.bf16 %v348_v22, %v348_v22  ;;  %v351_v22 = vld [vmem:[%s1582_s5 + $0x50] sm:$0xff] }
 0x12f   : > { %v1526_v34 = vpop.eup %1258  ;;  %v720_v35 = vmul.f32 1.442695, %v701_v29  ;;  %1262 = vpow2.f32 %v738_v30  ;;  %v730_v36 = vmul.f32 1.442695, %v706_v33  ;;  %v850_v29 = vunpack.c.l.b16 %v358_v16 }
 0x130   : > { %v1528_v37 = vpop.eup %1260  ;;  %v767_v31 = vsel %vm652_vm2, %v1526_v34, 0.0  ;;  %v1320_v30 = vmov 65535  }
 0x131   : > { %1264 = vpow2.f32 %v720_v35  ;;  %750 = vadd.xlane.f32.xlu0 %v749_v38  ;;  %v761_v32 = vsel %vm652_vm2, %v1528_v37, 0.0  ;;  %v857_v33 = vsel %vm855_vm3, 4294967295, %v1320_v30  ;;  %v913_v35 = vunpack.c.l.b16 %v361_v23  ;;  %v349_v23 = vld [vmem:[%s1582_s5 + $0x40] sm:$0xff] }
 0x132   : > { %1266 = vpow2.f32 %v730_v36  ;;  %762 = vadd.xlane.f32.xlu2 %v761_v32  ;;  %768 = vadd.xlane.f32.xlu1 %v767_v31  ;;  %v914_v36 = vunpack.c.l.b16 %v362_v24  ;;  %v1590_v38 = vsel %vm856_vm4, %v857_v33, 0  ;;  %v943_v32 = vunpack.c.l.b16 %v363_v19  ;;  %v350_v24 = vld [vmem:[%s1582_s5 + $0x48] sm:$0x1] }
 0x133   : > { %v944_v31 = vunpack.c.l.b16 %v364_v26  ;;  %v366_v26 = vpack.c.bf16 %v350_v24, %v350_v24  ;;  %v367_v30 = vpack.c.bf16 %v351_v22, %v351_v22 }
 0x134   : > { %v694_v28 = vpop.xlane.xlu1 %693  ;;  %v697_v39 = vpop.xlane.xlu2 %696 }
 0x135   : > { %v1536_v40 = vpop.eup %1262  ;;  %v712_v42 = vsub.f32 %v1473_v41, %v694_v28  ;;  %v713_v44 = vsub.f32 %v1477_v45, %v697_v39  ;;  %v691_v46 = vpop.xlane.xlu0 %690  ;;  %v851_v28 = vpack.c.b16 %v850_v29, %v849_v25  ;;  %v915_v39 = vpack.c.b16 %v914_v36, %v913_v35  ;;  %v352_v29 = vld [vmem:[%s1582_s5 + $0x58] sm:$0x1] }
 0x136   : > { %v711_v47 = vsub.f32 %v1475_v43, %v691_v46  ;;  %v782_v48 = vsel %vm648_vm1, %v1536_v40, 0.0  ;;  %v365_v25 = vpack.c.bf16 %v349_v23, %v349_v23 }
 0x137   : > { %v1543_v49 = vpop.eup %1264  ;;  %v742_v50 = vmul.f32 1.442695, %v712_v42  ;;  %v744_v51 = vmul.f32 1.442695, %v713_v44  ;;  %v945_v42 = vpack.c.b16 %v944_v31, %v943_v32  ;;  %v860_v44 = vand.u32 %v1590_v38, %v851_v28 }
 0x138   : > { %v1545_v55 = vpop.eup %1266  ;;  %v740_v56 = vmul.f32 1.442695, %v711_v47  ;;  %v755_v41 = vsel %vm652_vm2, %v1543_v49, 0.0  ;;  %v920_v46 = vand.u32 %v915_v39, %v1590_v38  ;;  %v368_v32 = vpack.c.bf16 %v352_v29, %v352_v29 }
 0x139   : > { %1268 = vpow2.f32 %v742_v50  ;;  %783 = vadd.xlane.f32.xlu0 %v782_v48  ;;  %v770_v45 = vsel %vm648_vm1, %v1545_v55, 0.0  ;;  %v950_v47 = vand.u32 %v945_v42, %v1590_v38  ;;  %869 = vmatpush.bf16.msra.mxu0 %v860_v44  ;;  %v343_v48 = vld [vmem:[%s1582_s5 + $0x10] sm:$0xff]  ;;  %v344_v50 = vld [vmem:[%s1582_s5 + $0x18] sm:$0x1]  ;;  %v973_v28 = vunpack.c.l.b16 %v365_v25 }
 0x13a   : > { %1270 = vpow2.f32 %v744_v51  ;;  %756 = vadd.xlane.f32.xlu2 %v755_v41  ;;  %771 = vadd.xlane.f32.xlu1 %v770_v45  ;;  %v360_v41 = vpack.c.bf16 %v344_v50, %v344_v50  ;;  %v974_v39 = vunpack.c.l.b16 %v366_v26  ;;  %v1003_v44 = vunpack.c.l.b16 %v367_v30 }
 0x13b   : > { %1272 = vpow2.f32 %v740_v56  ;;  %929 = vmatpush.bf16.msra.mxu2 %v920_v46  ;;  %v359_v56 = vpack.c.bf16 %v343_v48, %v343_v48  ;;  %959 = vmatpush.bf16.msra.mxu3 %v950_v47  ;;  %v1004_v46 = vunpack.c.l.b16 %v368_v32 }
 0x13c   : > { %v682_v43 = vpop.xlane.xlu2 %681  ;;  %v679_v58 = vpop.xlane.xlu1 %678  ;;  %v975_v48 = vpack.c.b16 %v974_v39, %v973_v28 }
 0x13d   : > { %v708_v59 = vsub.f32 %v1486_v52, %v682_v43  ;;  %v707_v60 = vsub.f32 %v1488_v53, %v679_v58  ;;  %v685_v57 = vpop.xlane.xlu0 %684  ;;  %v883_v45 = vunpack.c.l.b16 %v359_v56  ;;  %v884_v43 = vunpack.c.l.b16 %v360_v41 }
 0x13e   : > { %v709_v63 = vsub.f32 %v1490_v54, %v685_v57  ;;  %v354_v57 = vld [vmem:[%s1582_s5 + $0x68] sm:$0x1]  ;;  %v1005_v56 = vpack.c.b16 %v1004_v46, %v1003_v44 }
 0x13f   : > { %v1554_v0 = vpop.eup %1268  ;;  %v734_v1 = vmul.f32 1.442695, %v708_v59  ;;  %v732_v2 = vmul.f32 1.442695, %v707_v60  ;;  %v885_v58 = vpack.c.b16 %v884_v43, %v883_v45  ;;  %v353_v60 = vld [vmem:[%s1582_s5 + $0x60] sm:$0xff]  ;;  %v980_v45 = vand.u32 %v975_v48, %v1590_v38 }
 0x140   : > { %v1556_v3 = vpop.eup %1270  ;;  %v736_v4 = vmul.f32 1.442695, %v709_v63  ;;  %v788_v52 = vsel %vm648_vm1, %v1554_v0, 0.0  ;;  %v355_v63 = vld [vmem:[%s1582_s5 + $0x70] sm:$0xff] }
 0x141   : > { %v1558_v5 = vpop.eup %1272  ;;  %1274 = vpow2.f32 %v734_v1  ;;  %v791_v6 = vsel %vm652_vm2, %v1556_v3, 0.0  ;;  %v890_v59 = vand.u32 %v885_v58, %v1590_v38  ;;  %v1010_v58 = vand.u32 %v1005_v56, %v1590_v38  ;;  %989 = vmatpush.bf16.msrb.mxu0 %v980_v45 }
 0x142   : > { %1276 = vpow2.f32 %v732_v2  ;;  %792 = vadd.xlane.f32.xlu0 %v791_v6  ;;  %789 = vadd.xlane.f32.xlu2 %v788_v52  ;;  %v785_v53 = vsel %vm652_vm2, %v1558_v5, 0.0  ;;  %v370_v6 = vpack.c.bf16 %v354_v57, %v354_v57  ;;  %v356_v52 = vld [vmem:[%s1582_s5 + $0x78] sm:$0x1] }
 0x143   : > { %1278 = vpow2.f32 %v736_v4  ;;  %786 = vadd.xlane.f32.xlu1 %v785_v53  ;;  %899 = vmatpush.bf16.msra.mxu1 %v890_v59  ;;  %v369_v4 = vpack.c.bf16 %v353_v60, %v353_v60  ;;  %v371_v53 = vpack.c.bf16 %v355_v63, %v355_v63 }
 0x144   : > { %v1034_v10 = vunpack.c.l.b16 %v370_v6 }
 0x145   : > { %v1063_v8 = vunpack.c.l.b16 %v371_v53 }
 0x147   : > { %v1566_v54 = vpop.eup %1274  ;;  %1019 = vmatpush.bf16.msrb.mxu1 %v1010_v58 }
 0x148   : > { %v1568_v12 = vpop.eup %1276  ;;  %v776_v13 = vsel %vm648_vm1, %v1566_v54, 0.0 }
 0x149   : > { %v1572_v61 = vpop.eup %1278  ;;  %v773_v62 = vsel %vm652_vm2, %v1568_v12, 0.0 }
 0x14a   : > { %777 = vadd.xlane.f32.xlu0 %v776_v13  ;;  %v779_v14 = vsel %vm652_vm2, %v1572_v61, 0.0  ;;  %774 = vadd.xlane.f32.xlu2 %v773_v62  ;;  %v372_v62 = vpack.c.bf16 %v356_v52, %v356_v52 }
 0x14b   : > { %780 = vadd.xlane.f32.xlu1 %v779_v14  ;;  %v1033_v14 = vunpack.c.l.b16 %v369_v4 }
 0x14c   : > { %v1064_v15 = vunpack.c.l.b16 %v372_v62 }
 0x14d   : > { %v1035_v16 = vpack.c.b16 %v1034_v10, %v1033_v14 }
 0x14e   : > { %v1065_v17 = vpack.c.b16 %v1064_v15, %v1063_v8 }
 0x14f   : > { %v1040_v9 = vand.u32 %v1035_v16, %v1590_v38 }
 0x150   : > { %v1070_v20 = vand.u32 %v1065_v17, %v1590_v38 }
 0x151   : > { %1049 = vmatpush.bf16.msrb.mxu2 %v1040_v9 }
 0x152   : > { %1079 = vmatpush.bf16.msrb.mxu3 %v1070_v20 }
 0x193   : > { %v748_v1 = vpop.xlane.xlu2 %747 }
 0x194   : > { %v754_v51 = vpop.xlane.xlu1 %753  ;;  %1280 = vrcp.f32 %v748_v1 }
 0x19a   : > { %v1281_v33 = vpop.eup %1280 }
 0x19b   : > { %v810_v47 = vmul.f32 %v1281_v33, %v1502_v7 }
 0x19c   : > { %v766_v2 = vpop.xlane.xlu0 %765 }
 0x19d   : > { %v760_v13 = vpop.xlane.xlu1 %759  ;;  %v826_v60 = vpack.c.bf16 %v810_v47, %v810_v47 }
 0x19e   : > { %1282 = vrcp.f32 %v760_v13 }
 0x19f   : > { %1284 = vrcp.f32 %v766_v2  ;;  %v844_v53 = vunpack.c.l.b16 %v826_v60 }
 0x1a4   : > { %v751_v19 = vpop.xlane.xlu0 %750  ;;  %v1283_v31 = vpop.eup %1282 }
 0x1a5   : > { %1286 = vrcp.f32 %v751_v19  ;;  %v763_v35 = vpop.xlane.xlu2 %762  ;;  %v769_v36 = vpop.xlane.xlu1 %768  ;;  %v814_v50 = vmul.f32 %v1283_v31, %v1515_v21 }
 0x1a6   : > { %1288 = vrcp.f32 %v763_v35  ;;  %v1285_v42 = vpop.eup %1284 }
 0x1a7   : > { %1290 = vrcp.f32 %v769_v36  ;;  %v816_v41 = vmul.f32 %v1285_v42, %v1513_v18  ;;  %v830_v7 = vpack.c.bf16 %v814_v50, %v814_v50 }
 0x1a8   : > { %1292 = vrcp.f32 %v754_v51 }
 0x1a9   : > { %v832_v18 = vpack.c.bf16 %v816_v41, %v816_v41  ;;  %v908_v14 = vunpack.c.l.b16 %v830_v7 }
 0x1ab   : > { %v1287_v43 = vpop.eup %1286  ;;  %v938_v8 = vunpack.c.l.b16 %v832_v18 }
 0x1ac   : > { %v1289_v59 = vpop.eup %1288  ;;  %v811_v57 = vmul.f32 %v1287_v43, %v1522_v27  ;;  %v784_v63 = vpop.xlane.xlu0 %783 }
 0x1ad   : > { %v1291_v1 = vpop.eup %1290  ;;  %v815_v51 = vmul.f32 %v1289_v59, %v1528_v37  ;;  %v757_v2 = vpop.xlane.xlu2 %756 }
 0x1ae   : > { %v772_v21 = vpop.xlane.xlu1 %771  ;;  %v1293_v4 = vpop.eup %1292  ;;  %v827_v6 = vpack.c.bf16 %v811_v57, %v811_v57  ;;  %v817_v52 = vmul.f32 %v1291_v1, %v1526_v34  ;;  %1294 = vrcp.f32 %v757_v2 }
 0x1af   : > { %v831_v38 = vpack.c.bf16 %v815_v51, %v815_v51  ;;  %v812_v27 = vmul.f32 %v1293_v4, %v1504_v11  ;;  %1296 = vrcp.f32 %v784_v63 }
 0x1b0   : > { %v845_v13 = vunpack.c.l.b16 %v827_v6  ;;  %v833_v62 = vpack.c.bf16 %v817_v52, %v817_v52 }
 0x1b1   : > { %v909_v10 = vunpack.c.l.b16 %v831_v38  ;;  %v828_v20 = vpack.c.bf16 %v812_v27, %v812_v27 }
 0x1b2   : > { %v846_v15 = vpack.c.b16 %v845_v13, %v844_v53  ;;  %v939_v37 = vunpack.c.l.b16 %v833_v62 }
 0x1b3   : > { %v910_v16 = vpack.c.b16 %v909_v10, %v908_v14  ;;  %v878_v25 = vunpack.c.l.b16 %v828_v20 }
 0x1b4   : > { %v1295_v17 = vpop.eup %1294  ;;  %v940_v9 = vpack.c.b16 %v939_v37, %v938_v8  ;;  %1224 = vmatmul.msk.bf16.vlgmr.msra.gmra.mxu0 %vm648_vm1, %v846_v15 }
 0x1b5   : > { %v813_v34 = vmul.f32 %v1295_v17, %v1543_v49  ;;  %v793_v23 = vpop.xlane.xlu0 %792  ;;  %v790_v24 = vpop.xlane.xlu2 %789  ;;  %1226 = vmatmul.msk.bf16.vlgmr.msra.gmra.mxu2 %vm648_vm1, %v910_v16 }
 0x1b6   : > { %1298 = vrcp.f32 %v793_v23  ;;  %1227 = vmatmul.msk.bf16.vlgmr.msra.gmra.mxu3 %vm648_vm1, %v940_v9  ;;  %v787_v11 = vpop.xlane.xlu1 %786  ;;  %v1297_v19 = vpop.eup %1296 }
 0x1b7   : > { %v829_v22 = vpack.c.bf16 %v813_v34, %v813_v34  ;;  %1300 = vrcp.f32 %v790_v24  ;;  %v822_v29 = vmul.f32 %v1297_v19, %v1536_v40 }
 0x1b8   : > { %1302 = vrcp.f32 %v787_v11 }
 0x1b9   : > { %v879_v26 = vunpack.c.l.b16 %v829_v22  ;;  %1304 = vrcp.f32 %v772_v21  ;;  %v838_v44 = vpack.c.bf16 %v822_v29, %v822_v29 }
 0x1bb   : > { %v880_v30 = vpack.c.b16 %v879_v26, %v878_v25  ;;  %v1028_v41 = vunpack.c.l.b16 %v838_v44 }
 0x1bc   : > { %v1299_v33 = vpop.eup %1298 }
 0x1bd   : > { %v1301_v49 = vpop.eup %1300  ;;  %v825_v35 = vmul.f32 %v1299_v33, %v1556_v3  ;;  %v778_v36 = vpop.xlane.xlu0 %777  ;;  %1225 = vmatmul.msk.bf16.vlgmr.msra.gmra.mxu1 %vm648_vm1, %v880_v30 }
 0x1be   : > { %v775_v32 = vpop.xlane.xlu2 %774  ;;  %v1303_v31 = vpop.eup %1302  ;;  %v824_v28 = vmul.f32 %v1301_v49, %v1554_v0  ;;  %1306 = vrcp.f32 %v778_v36 }
 0x1bf   : > { %v781_v39 = vpop.xlane.xlu1 %780  ;;  %v1305_v42 = vpop.eup %1304  ;;  %v841_v46 = vpack.c.bf16 %v825_v35, %v825_v35  ;;  %v823_v47 = vmul.f32 %v1303_v31, %v1558_v5  ;;  %1308 = vrcp.f32 %v775_v32 }
 0x1c0   : > { %v840_v40 = vpack.c.bf16 %v824_v28, %v824_v28  ;;  %1310 = vrcp.f32 %v781_v39  ;;  %v818_v3 = vmul.f32 %v1305_v42, %v1545_v55 }
 0x1c1   : > { %v839_v48 = vpack.c.bf16 %v823_v47, %v823_v47  ;;  %v1059_v50 = vunpack.c.l.b16 %v841_v46 }
 0x1c2   : > { %v1058_v56 = vunpack.c.l.b16 %v840_v40  ;;  %v834_v63 = vpack.c.bf16 %v818_v3, %v818_v3 }
 0x1c3   : > { %v1029_v45 = vunpack.c.l.b16 %v839_v48 }
 0x1c4   : > { %v1307_v43 = vpop.eup %1306  ;;  %v1060_v58 = vpack.c.b16 %v1059_v50, %v1058_v56  ;;  %v968_v2 = vunpack.c.l.b16 %v834_v63 }
 0x1c5   : > { %v1309_v0 = vpop.eup %1308  ;;  %v1030_v59 = vpack.c.b16 %v1029_v45, %v1028_v41  ;;  %v820_v60 = vmul.f32 %v1307_v43, %v1566_v54 }
 0x1c6   : > { %v1311_v57 = vpop.eup %1310  ;;  %v819_v5 = vmul.f32 %v1309_v0, %v1568_v12  ;;  %1231 = vmatmul.msk.bf16.vlgmr.msrb.gmra.mxu3 %vm648_vm1, %v1060_v58 }
 0x1c7   : > { %v836_v1 = vpack.c.bf16 %v820_v60, %v820_v60  ;;  %v821_v55 = vmul.f32 %v1311_v57, %v1572_v61  ;;  %1230 = vmatmul.msk.bf16.vlgmr.msrb.gmra.mxu2 %vm648_vm1, %v1030_v59 }
 0x1c8   : > { %v835_v7 = vpack.c.bf16 %v819_v5, %v819_v5 }
 0x1c9   : > { %v837_v51 = vpack.c.bf16 %v821_v55, %v821_v55  ;;  %v998_v4 = vunpack.c.l.b16 %v836_v1 }
 0x1ca   : > { %v969_v21 = vunpack.c.l.b16 %v835_v7 }
 0x1cb   : > { %v999_v18 = vunpack.c.l.b16 %v837_v51 }
 0x1cc   : > { %v970_v6 = vpack.c.b16 %v969_v21, %v968_v2 }
 0x1cd   : > { %v1000_v54 = vpack.c.b16 %v999_v18, %v998_v4 }
 0x1ce   : > { %1228 = vmatmul.msk.bf16.vlgmr.msrb.gmra.mxu0 %vm648_vm1, %v970_v6 }
 0x1cf   : > { %1229 = vmatmul.msk.bf16.vlgmr.msrb.gmra.mxu1 %vm648_vm1, %v1000_v54 }
 0x231   : > { %v871_v12 = vpop.f32.mrf.mxu0 }
 0x232   : > { %1086 = vst.msk [vmem:[%s1638_s8] sm:$0xff] %vm383_vm0, %v871_v12 }
 0x238   : > { %v931_v61 = vpop.f32.mrf.mxu2 }
 0x239   : > { %v873_v52 = vpop.f32.mrf.mxu0  ;;  %1091 = vst.msk [vmem:[%s1638_s8 + $0x20] sm:$0xff] %vm383_vm0, %v931_v61  ;;  %v961_v38 = vpop.f32.mrf.mxu3 }
 0x23a   : > { %1088 = vst.msk [vmem:[%s1638_s8 + $0x8] sm:$0x1] %vm1087_vm5, %v873_v52  ;;  %v901_v53 = vpop.f32.mrf.mxu1 }
 0x23b   : > { %1093 = vst.msk [vmem:[%s1638_s8 + $0x30] sm:$0xff] %vm383_vm0, %v961_v38 }
 0x23c   : > { %1089 = vst.msk [vmem:[%s1638_s8 + $0x10] sm:$0xff] %vm383_vm0, %v901_v53 }
 0x240   : > { %v933_v13 = vpop.f32.mrf.mxu2 }
 0x241   : > { %1092 = vst.msk [vmem:[%s1638_s8 + $0x28] sm:$0x1] %vm1087_vm5, %v933_v13  ;;  %v963_v62 = vpop.f32.mrf.mxu3 }
 0x242   : > { %1094 = vst.msk [vmem:[%s1638_s8 + $0x38] sm:$0x1] %vm1087_vm5, %v963_v62  ;;  %v903_v27 = vpop.f32.mrf.mxu1 }
 0x243   : > { %1090 = vst.msk [vmem:[%s1638_s8 + $0x18] sm:$0x1] %vm1087_vm5, %v903_v27 }
 0x249   : > { %v1081_v14 = vpop.f32.mrf.mxu3 }
 0x24a   : > { %v1051_v10 = vpop.f32.mrf.mxu2  ;;  %1101 = vst.msk [vmem:[%s1638_s8 + $0x70] sm:$0xff] %vm383_vm0, %v1081_v14 }
 0x24b   : > { %1099 = vst.msk [vmem:[%s1638_s8 + $0x60] sm:$0xff] %vm383_vm0, %v1051_v10  ;;  %v991_v8 = vpop.f32.mrf.mxu0 }
 0x24c   : > { %1095 = vst.msk [vmem:[%s1638_s8 + $0x40] sm:$0xff] %vm383_vm0, %v991_v8  ;;  %v1021_v15 = vpop.f32.mrf.mxu1 }
 0x24d   : > { %1097 = vst.msk [vmem:[%s1638_s8 + $0x50] sm:$0xff] %vm383_vm0, %v1021_v15 }
 0x251   : > { %v1083_v37 = vpop.f32.mrf.mxu3 }
 0x252   : > { %v1053_v16 = vpop.f32.mrf.mxu2  ;;  %1102 = vst.msk [vmem:[%s1638_s8 + $0x78] sm:$0x1] %vm1087_vm5, %v1083_v37 }
 0x253   : > { %1100 = vst.msk [vmem:[%s1638_s8 + $0x68] sm:$0x1] %vm1087_vm5, %v1053_v16  ;;  %v993_v17 = vpop.f32.mrf.mxu0 }
 0x254   : > { %1096 = vst.msk [vmem:[%s1638_s8 + $0x48] sm:$0x1] %vm1087_vm5, %v993_v17  ;;  %v1023_v9 = vpop.f32.mrf.mxu1 }
 0x255   : > { %1098 = vst.msk [vmem:[%s1638_s8 + $0x58] sm:$0x1] %vm1087_vm5, %v1023_v9 }
 0x256 PF: > { %s14_s15 = sadd.s32 1, %s1318_s15  }
 0x257   : > { %p11_p5 = scmp.ge.s32.totalorder %s14_s15, 8  }
 0x259   :  { %13 = sbr.rel (!%p11_p5) target bundleno = 1 (0x1), region = 75 }

// kernel: loss_fn.61
= control target key start
LH: loop header
LB: loop body
LE: loop exit
PB: predicated region body
PF: predicated region fallthrough
CT: control target
= control target key end

     0   :  { %vm28_vm0 = vcmask 261120   ;;  %v327_v14 = vmov 32.0   ;;  %s546_s0 = inlined_call_operand.vmem [shape: f32[56,32], index: 0, kind: input, shape index: {}]   ;;  %s547_s2 = inlined_call_operand.vmem [shape: f32[1,32], index: 2, kind: input, shape index: {}]   ;;  %s548_s3 = inlined_call_operand.vmem [shape: f32[1,32], index: 3, kind: input, shape index: {}]   ;;  %s549_s4 = inlined_call_operand.vmem [shape: f32[1,128], index: 4, kind: input, shape index: {}]   ;;  %s550_s1 = inlined_call_operand.vmem [shape: bf16[32,128], index: 1, kind: input, shape index: {}]   ;;  %s551_s5 = inlined_call_operand.vmem [shape: f32[56,128], index: 5, kind: output, shape index: {}]  }
   0x1   :  { %v27_v0 = vld [vmem:[%s546_s0 + $0x30] sm:$0xff]  ;;  %v25_v1 = vld [vmem:[%s546_s0 + $0x20] sm:$0xff]  ;;  %v22_v2 = vld [vmem:[%s546_s0 + $0x8] sm:$0xff]  ;;  %311 = vrcp.f32 %v327_v14 }
   0x2   :  { %v47_v3 = vsel %vm28_vm0, %v27_v0, 0.0  ;;  %v41_v4 = vsel %vm28_vm0, %v25_v1, 0.0  ;;  %v32_v5 = vsel %vm28_vm0, %v22_v2, 0.0  ;;  %v26_v6 = vld [vmem:[%s546_s0 + $0x28] sm:$0xff]  ;;  %v21_v7 = vld [vmem:[%s546_s0] sm:$0xff]  ;;  %v23_v8 = vld [vmem:[%s546_s0 + $0x10] sm:$0xff] }
   0x3   :  { %48 = vadd.xlane.f32.xlu1 %v47_v3  ;;  %42 = vadd.xlane.f32.xlu0 %v41_v4  ;;  %v44_v9 = vsel %vm28_vm0, %v26_v6, 0.0  ;;  %v29_v10 = vsel %vm28_vm0, %v21_v7, 0.0  ;;  %v35_v11 = vsel %vm28_vm0, %v23_v8, 0.0  ;;  %v24_v12 = vld [vmem:[%s546_s0 + $0x18] sm:$0xff]  ;;  %v300_v56 = vld [vmem:[%s550_s1 + $0x8] sm:$0xff]  ;;  %v299_v57 = vld [vmem:[%s550_s1] sm:$0xff] }
   0x4   :  { %33 = vadd.xlane.f32.xlu2 %v32_v5  ;;  %v38_v13 = vsel %vm28_vm0, %v24_v12, 0.0  ;;  %303 = vmatpush.bf16.msra.mxu3 %v300_v56 }
   0x5   :  { %302 = vmatpush.bf16.msra.mxu2 %v300_v56  ;;  %254 = vmatpush.bf16.msra.mxu0 %v300_v56 }
   0x6   :  { %301 = vmatpush.bf16.msra.mxu1 %v300_v56 }
   0x7   :  { %v312_v15 = vpop.eup %311 }
   0x8   :  { %v51_v16 = vmul.f32 32.0, %v312_v15  ;;  %vm55_vm1 = vweird.f32 %v312_v15  ;;  %306 = vmatpush.bf16.msra.mxu3 %v299_v57 }
   0x9   :  { %305 = vmatpush.bf16.msra.mxu2 %v299_v57  ;;  %255 = vmatpush.bf16.msra.mxu0 %v299_v57 }
   0xa   :  { %v52_v17 = vsub.f32 1.0, %v51_v16  ;;  %304 = vmatpush.bf16.msra.mxu1 %v299_v57 }
   0xb   :  { %45 = vadd.xlane.f32.xlu0 %v44_v9  ;;  %30 = vadd.xlane.f32.xlu1 %v29_v10 }
   0xc   :  { %36 = vadd.xlane.f32.xlu2 %v35_v11  ;;  %v53_v18 = vmul.f32 %v312_v15, %v52_v17 }
   0xe   :  { %v54_v19 = vadd.f32 %v312_v15, %v53_v18 }
  0x10   :  { %v386_v20 = vsel %vm55_vm1, %v312_v15, %v54_v19 }
  0x13   :  { %39 = vadd.xlane.f32.xlu0 %v38_v13 }
  0x76   :  { %v49_v21 = vpop.xlane.xlu1 %48  ;;  %v43_v22 = vpop.xlane.xlu0 %42 }
  0x77   :  { %v63_v23 = vmul.f32 %v386_v20, %v49_v21  ;;  %v61_v24 = vmul.f32 %v386_v20, %v43_v22  ;;  %v34_v25 = vpop.xlane.xlu2 %33 }
  0x78   :  { %v58_v38 = vmul.f32 %v386_v20, %v34_v25 }
  0x79   :  { %v390_v26 = vsub.f32 %v27_v0, %v63_v23  ;;  %v392_v27 = vsub.f32 %v25_v1, %v61_v24 }
  0x7a   :  { %v416_v45 = vsub.f32 %v22_v2, %v58_v38 }
  0x7b   :  { %v77_v28 = vmul.f32 %v390_v26, %v390_v26  ;;  %v75_v29 = vmul.f32 %v392_v27, %v392_v27 }
  0x7c   :  { %v72_v52 = vmul.f32 %v416_v45, %v416_v45 }
  0x7d   :  { %v96_v30 = vsel %vm28_vm0, %v77_v28, 0.0  ;;  %v90_v31 = vsel %vm28_vm0, %v75_v29, 0.0 }
  0x7e   :  { %v46_v32 = vpop.xlane.xlu0 %45  ;;  %97 = vadd.xlane.f32.xlu0 %v96_v30  ;;  %91 = vadd.xlane.f32.xlu1 %v90_v31  ;;  %v31_v33 = vpop.xlane.xlu1 %30  ;;  %v81_v54 = vsel %vm28_vm0, %v72_v52, 0.0 }
  0x7f   :  { %v62_v34 = vmul.f32 %v386_v20, %v46_v32  ;;  %v37_v35 = vpop.xlane.xlu2 %36  ;;  %v57_v36 = vmul.f32 %v386_v20, %v31_v33 }
  0x80   :  { %v59_v37 = vmul.f32 %v386_v20, %v37_v35 }
  0x81   :  { %v404_v39 = vsub.f32 %v26_v6, %v62_v34  ;;  %v406_v40 = vsub.f32 %v21_v7, %v57_v36 }
  0x82   :  { %v408_v41 = vsub.f32 %v23_v8, %v59_v37 }
  0x83   :  { %v76_v42 = vmul.f32 %v404_v39, %v404_v39  ;;  %v71_v43 = vmul.f32 %v406_v40, %v406_v40 }
  0x84   :  { %v73_v44 = vmul.f32 %v408_v41, %v408_v41 }
  0x85   :  { %v93_v46 = vsel %vm28_vm0, %v76_v42, 0.0  ;;  %v78_v47 = vsel %vm28_vm0, %v71_v43, 0.0  ;;  %v474_v42 = vld [vmem:[%s547_s2] ss:$0 sm:$0xff] }
  0x86   :  { %v40_v48 = vpop.xlane.xlu0 %39  ;;  %94 = vadd.xlane.f32.xlu2 %v93_v46  ;;  %v84_v49 = vsel %vm28_vm0, %v73_v44, 0.0  ;;  %79 = vadd.xlane.f32.xlu1 %v78_v47 }
  0x87   :  { %v60_v50 = vmul.f32 %v386_v20, %v40_v48  ;;  %85 = vadd.xlane.f32.xlu0 %v84_v49  ;;  %v480_v49 = vld [vmem:[%s548_s3] ss:$0 sm:$0xff] }
  0x89   :  { %v422_v51 = vsub.f32 %v24_v12, %v60_v50 }
  0x8b   :  { %v74_v53 = vmul.f32 %v422_v51, %v422_v51 }
  0x8d   :  { %v87_v55 = vsel %vm28_vm0, %v74_v53, 0.0 }
  0x8e   :  { %82 = vadd.xlane.f32.xlu2 %v81_v54  ;;  %88 = vadd.xlane.f32.xlu1 %v87_v55 }
  0xf1   :  { %v98_v58 = vpop.xlane.xlu0 %97  ;;  %v92_v59 = vpop.xlane.xlu1 %91 }
  0xf2   :  { %v105_v60 = vmul.f32 %v98_v58, %v386_v20  ;;  %v103_v61 = vmul.f32 %v92_v59, %v386_v20 }
  0xf4   :  { %v112_v62 = vadd.f32 1e-05, %v105_v60  ;;  %v110_v63 = vadd.f32 1e-05, %v103_v61 }
  0xf6   :  { %313 = vrsqrt.f32 %v112_v62  ;;  %vm179_vm3 = vweird.f32 %v112_v62  ;;  %vm159_vm6 = vweird.f32 %v110_v63 }
  0xf7   :  { %315 = vrsqrt.f32 %v110_v63 }
  0xf9   :  { %v95_v0 = vpop.xlane.xlu2 %94  ;;  %v80_v1 = vpop.xlane.xlu1 %79 }
  0xfa   :  { %v86_v2 = vpop.xlane.xlu0 %85  ;;  %v104_v3 = vmul.f32 %v95_v0, %v386_v20  ;;  %v99_v4 = vmul.f32 %v80_v1, %v386_v20 }
  0xfb   :  { %v101_v5 = vmul.f32 %v86_v2, %v386_v20 }
  0xfc   :  { %v314_v6 = vpop.eup %313  ;;  %v441_v7 = vadd.f32 1e-05, %v104_v3  ;;  %v443_v8 = vadd.f32 1e-05, %v99_v4 }
  0xfd   :  { %v316_v9 = vpop.eup %315  ;;  %v174_v10 = vmul.f32 %v314_v6, %v112_v62  ;;  %v445_v11 = vadd.f32 1e-05, %v101_v5  ;;  %vm180_vm2 = vweird.f32 %v314_v6 }
  0xfe   :  { %v154_v12 = vmul.f32 %v316_v9, %v110_v63  ;;  %317 = vrsqrt.f32 %v441_v7  ;;  %vm160_vm4 = vweird.f32 %v316_v9  ;;  %vm459_vm5 = vmor %vm179_vm3, %vm180_vm2  ;;  %vm169_vm8 = vweird.f32 %v441_v7 }
  0xff   :  { %v175_v13 = vmul.f32 %v314_v6, %v174_v10  ;;  %319 = vrsqrt.f32 %v445_v11  ;;  %vm161_vm7 = vmor %vm159_vm6, %vm160_vm4  ;;  %vm139_vm10 = vweird.f32 %v445_v11  ;;  %vm119_vm14 = vweird.f32 %v443_v8 }
 0x100   :  { %v155_v14 = vmul.f32 %v316_v9, %v154_v12  ;;  %321 = vrsqrt.f32 %v443_v8 }
 0x101   :  { %v176_v15 = vmul.f32 0.5, %v175_v13  ;;  %v83_v16 = vpop.xlane.xlu2 %82  ;;  %v89_v17 = vpop.xlane.xlu1 %88 }
 0x102   :  { %v156_v18 = vmul.f32 0.5, %v155_v14  ;;  %v100_v19 = vmul.f32 %v83_v16, %v386_v20  ;;  %v102_v21 = vmul.f32 %v89_v17, %v386_v20 }
 0x103   :  { %v177_v22 = vsub.f32 1.5, %v176_v15 }
 0x104   :  { %v318_v23 = vpop.eup %317  ;;  %v157_v24 = vsub.f32 1.5, %v156_v18  ;;  %v452_v25 = vadd.f32 1e-05, %v100_v19  ;;  %v454_v28 = vadd.f32 1e-05, %v102_v21 }
 0x105   :  { %v456_v29 = vpop.eup %319  ;;  %v178_v30 = vmul.f32 %v314_v6, %v177_v22  ;;  %v164_v31 = vmul.f32 %v318_v23, %v441_v7  ;;  %vm170_vm9 = vweird.f32 %v318_v23 }
 0x106   :  { %v322_v32 = vpop.eup %321  ;;  %v158_v20 = vmul.f32 %v316_v9, %v157_v24  ;;  %v134_v34 = vmul.f32 %v456_v29, %v445_v11  ;;  %323 = vrsqrt.f32 %v452_v25  ;;  %vm140_vm12 = vweird.f32 %v456_v29  ;;  %vm171_vm13 = vmor %vm169_vm8, %vm170_vm9 }
 0x107   :  { %v182_v35 = vsel %vm459_vm5, %v314_v6, %v178_v30  ;;  %v165_v36 = vmul.f32 %v318_v23, %v164_v31  ;;  %v114_v37 = vmul.f32 %v322_v32, %v443_v8  ;;  %325 = vrsqrt.f32 %v454_v28  ;;  %vm141_vm1 = vmor %vm139_vm10, %vm140_vm12 }
 0x108   :  { %v135_v38 = vmul.f32 %v456_v29, %v134_v34  ;;  %v162_v43 = vsel %vm161_vm7, %v316_v9, %v158_v20  ;;  %v189_v48 = vmul.f32 %v182_v35, %v390_v26  ;;  %vm120_vm11 = vweird.f32 %v322_v32 }
 0x109   :  { %v166_v44 = vmul.f32 0.5, %v165_v36  ;;  %v115_v46 = vmul.f32 %v322_v32, %v114_v37  ;;  %v187_v54 = vmul.f32 %v162_v43, %v392_v27  ;;  %vm121_vm15 = vmor %vm119_vm14, %vm120_vm11  ;;  %vm129_vm3 = vweird.f32 %v452_v25 }
 0x10a   :  { %v136_v47 = vmul.f32 0.5, %v135_v38  ;;  %v200_v56 = vmul.f32 %v474_v42, %v189_v48  ;;  %vm149_vm6 = vweird.f32 %v454_v28 }
 0x10b   :  { %v167_v50 = vsub.f32 1.5, %v166_v44  ;;  %v116_v52 = vmul.f32 0.5, %v115_v46  ;;  %v198_v3 = vmul.f32 %v474_v42, %v187_v54 }
 0x10c   :  { %v324_v53 = vpop.eup %323  ;;  %v137_v55 = vsub.f32 1.5, %v136_v47  ;;  %v211_v27 = vadd.f32 %v480_v49, %v200_v56 }
 0x10d   :  { %v168_v57 = vmul.f32 %v318_v23, %v167_v50  ;;  %v117_v26 = vsub.f32 1.5, %v116_v52  ;;  %v124_v58 = vmul.f32 %v324_v53, %v452_v25  ;;  %v326_v59 = vpop.eup %325  ;;  %vm130_vm2 = vweird.f32 %v324_v53 }
 0x10e   :  { %v138_v60 = vmul.f32 %v456_v29, %v137_v55  ;;  %v144_v0 = vmul.f32 %v326_v59, %v454_v28  ;;  %v215_v2 = vpack.c.bf16 %v211_v27, %v211_v27  ;;  %v209_v12 = vadd.f32 %v480_v49, %v198_v3  ;;  %vm131_vm5 = vmor %vm129_vm3, %vm130_vm2 }
 0x10f   :  { %v172_v61 = vsel %vm171_vm13, %v318_v23, %v168_v57  ;;  %v118_v62 = vmul.f32 %v322_v32, %v117_v26  ;;  %v125_v63 = vmul.f32 %v324_v53, %v124_v58  ;;  %vm150_vm4 = vweird.f32 %v326_v59 }
 0x110   :  { %v188_v1 = vmul.f32 %v172_v61, %v404_v39  ;;  %v145_v6 = vmul.f32 %v326_v59, %v144_v0  ;;  %298 = vmatmul.msk.bf16.vlgmr.msra.gmra.mxu3 %vm28_vm0, %v215_v2  ;;  %v142_v8 = vsel %vm141_vm1, %v456_v29, %v138_v60  ;;  %vm151_vm7 = vmor %vm149_vm6, %vm150_vm4 }
 0x111   :  { %v122_v4 = vsel %vm121_vm15, %v322_v32, %v118_v62  ;;  %v126_v5 = vmul.f32 0.5, %v125_v63  ;;  %v185_v15 = vmul.f32 %v142_v8, %v408_v41 }
 0x112   :  { %v199_v7 = vmul.f32 %v474_v42, %v188_v1  ;;  %v146_v39 = vmul.f32 0.5, %v145_v6  ;;  %v183_v10 = vmul.f32 %v122_v4, %v406_v40 }
 0x113   :  { %v127_v9 = vsub.f32 1.5, %v126_v5  ;;  %v196_v41 = vmul.f32 %v474_v42, %v185_v15 }
 0x114   :  { %v210_v13 = vadd.f32 %v480_v49, %v199_v7  ;;  %v147_v11 = vsub.f32 1.5, %v146_v39  ;;  %v194_v40 = vmul.f32 %v474_v42, %v183_v10 }
 0x115   :  { %v128_v14 = vmul.f32 %v324_v53, %v127_v9 }
 0x116   :  { %v214_v16 = vpack.c.bf16 %v210_v13, %v209_v12  ;;  %v148_v18 = vmul.f32 %v326_v59, %v147_v11  ;;  %v205_v24 = vadd.f32 %v480_v49, %v194_v40 }
 0x117   :  { %v132_v17 = vsel %vm131_vm5, %v324_v53, %v128_v14 }
 0x118   :  { %v184_v19 = vmul.f32 %v132_v17, %v416_v45  ;;  %297 = vmatmul.msk.bf16.vlgmr.msra.gmra.mxu2 %vm28_vm0, %v214_v16  ;;  %v152_v21 = vsel %vm151_vm7, %v326_v59, %v148_v18  ;;  %v207_v45 = vadd.f32 %v480_v49, %v196_v41 }
 0x119   :  { %v186_v22 = vmul.f32 %v152_v21, %v422_v51  ;;  %v310_v51 = vld [vmem:[%s549_s4] ss:$0 sm:$0xff] }
 0x11a   :  { %v195_v23 = vmul.f32 %v474_v42, %v184_v19 }
 0x11b   :  { %v197_v28 = vmul.f32 %v474_v42, %v186_v22 }
 0x11c   :  { %v206_v25 = vadd.f32 %v480_v49, %v195_v23 }
 0x11d   :  { %v208_v30 = vadd.f32 %v480_v49, %v197_v28 }
 0x11e   :  { %v212_v29 = vpack.c.bf16 %v206_v25, %v205_v24 }
 0x11f   :  { %v213_v31 = vpack.c.bf16 %v208_v30, %v207_v45 }
 0x120   :  { %295 = vmatmul.msk.bf16.vlgmr.msra.gmra.mxu0 %vm28_vm0, %v212_v29 }
 0x121   :  { %296 = vmatmul.msk.bf16.vlgmr.msra.gmra.mxu1 %vm28_vm0, %v213_v31 }
 0x193   :  { %v272_v32 = vpop.f32.mrf.mxu3 }
 0x194   :  { %v273_v33 = vadd.f32 %v310_v51, %v272_v32 }
 0x196   :  { %282 = vst [vmem:[%s551_s5 + $0x30] sm:$0xff] %v273_v33 }
 0x19b   :  { %v267_v20 = vpop.f32.mrf.mxu2  ;;  %v274_v35 = vpop.f32.mrf.mxu3 }
 0x19c   :  { %v268_v34 = vadd.f32 %v310_v51, %v267_v20 }
 0x19d   :  { %v257_v36 = vpop.f32.mrf.mxu0 }
 0x19e   :  { %280 = vst [vmem:[%s551_s5 + $0x20] sm:$0xff] %v268_v34  ;;  %v258_v37 = vadd.f32 %v310_v51, %v257_v36  ;;  %v262_v38 = vpop.f32.mrf.mxu1 }
 0x19f   :  { %v263_v42 = vadd.f32 %v310_v51, %v262_v38 }
 0x1a0   :  { %276 = vst [vmem:[%s551_s5] sm:$0xff] %v258_v37 }
 0x1a1   :  { %278 = vst [vmem:[%s551_s5 + $0x10] sm:$0xff] %v263_v42 }
 0x1a3   :  { %v269_v43 = vpop.f32.mrf.mxu2 }
 0x1a4   :  { %v270_v44 = vadd.f32 %v310_v51, %v269_v43 }
 0x1a5   :  { %v259_v46 = vpop.f32.mrf.mxu0 }
 0x1a6   :  { %281 = vst [vmem:[%s551_s5 + $0x28] sm:$0xff] %v270_v44  ;;  %v260_v47 = vadd.f32 %v310_v51, %v259_v46  ;;  %v264_v48 = vpop.f32.mrf.mxu1 }
 0x1a7   :  { %v265_v49 = vadd.f32 %v310_v51, %v264_v48 }
 0x1a8   :  { %277 = vst [vmem:[%s551_s5 + $0x8] sm:$0xff] %v260_v47 }
 0x1a9   :  { %279 = vst [vmem:[%s551_s5 + $0x18] sm:$0xff] %v265_v49 }

// kernel: loss_fn.62
= control target key start
LH: loop header
LB: loop body
LE: loop exit
PB: predicated region body
PF: predicated region fallthrough
CT: control target
= control target key end

     0   :  { %s329_s1 = inlined_call_operand.vmem [shape: bf16[128,128], index: 1, kind: input, shape index: {}]   ;;  %s330_s2 = inlined_call_operand.vmem [shape: f32[1,128], index: 2, kind: input, shape index: {}]   ;;  %s331_s0 = inlined_call_operand.vmem [shape: f32[56,128], index: 0, kind: input, shape index: {}]   ;;  %s332_s3 = inlined_call_operand.vmem [shape: f32[56,128], index: 3, kind: input, shape index: {}]   ;;  %s333_s4 = inlined_call_operand.vmem [shape: f32[56,128], index: 4, kind: output, shape index: {}]  }
   0x1   :  { %v188_v0 = vld [vmem:[%s329_s1 + $0x38] sm:$0xff]  ;;  %v187_v1 = vld [vmem:[%s329_s1 + $0x30] sm:$0xff]  ;;  %v186_v2 = vld [vmem:[%s329_s1 + $0x28] sm:$0xff] }
   0x2   :  { %96 = vmatpush.bf16.msra.mxu0 %v188_v0  ;;  %189 = vmatpush.bf16.msra.mxu1 %v188_v0  ;;  %v185_v3 = vld [vmem:[%s329_s1 + $0x20] sm:$0xff]  ;;  %v184_v4 = vld [vmem:[%s329_s1 + $0x18] sm:$0xff]  ;;  %v183_v5 = vld [vmem:[%s329_s1 + $0x10] sm:$0xff] }
   0x3   :  { %190 = vmatpush.bf16.msra.mxu2 %v188_v0  ;;  %191 = vmatpush.bf16.msra.mxu3 %v188_v0  ;;  %v182_v6 = vld [vmem:[%s329_s1 + $0x8] sm:$0xff]  ;;  %v181_v7 = vld [vmem:[%s329_s1] sm:$0xff]  ;;  %v19_v10 = vld [vmem:[%s331_s0 + $0x10] sm:$0xff] }
   0x4   :  { %v17_v8 = vld [vmem:[%s331_s0] sm:$0xff]  ;;  %v18_v9 = vld [vmem:[%s331_s0 + $0x8] sm:$0xff]  ;;  %v20_v11 = vld [vmem:[%s331_s0 + $0x18] sm:$0xff] }
   0x5   :  { %v21_v12 = vld [vmem:[%s331_s0 + $0x20] sm:$0xff]  ;;  %v22_v13 = vld [vmem:[%s331_s0 + $0x28] sm:$0xff]  ;;  %v23_v14 = vld [vmem:[%s331_s0 + $0x30] sm:$0xff]  ;;  %v24_v15 = vpack.c.bf16 %v18_v9, %v17_v8  ;;  %v25_v16 = vpack.c.bf16 %v20_v11, %v19_v10 }
   0x6   :  { %97 = vmatpush.bf16.msra.mxu0 %v187_v1  ;;  %192 = vmatpush.bf16.msra.mxu1 %v187_v1  ;;  %v26_v17 = vpack.c.bf16 %v22_v13, %v21_v12  ;;  %v27_v18 = vpack.c.bf16 %v23_v14, %v23_v14  ;;  %v213_v19 = vld [vmem:[%s330_s2] ss:$0 sm:$0xff]  ;;  %v126_v23 = vld [vmem:[%s332_s3 + $0x10] sm:$0xff]  ;;  %v125_v35 = vld [vmem:[%s332_s3 + $0x8] sm:$0xff] }
   0x7   :  { %193 = vmatpush.bf16.msra.mxu2 %v187_v1  ;;  %194 = vmatpush.bf16.msra.mxu3 %v187_v1  ;;  %v124_v21 = vld [vmem:[%s332_s3] sm:$0xff]  ;;  %v130_v31 = vld [vmem:[%s332_s3 + $0x30] sm:$0xff]  ;;  %v127_v37 = vld [vmem:[%s332_s3 + $0x18] sm:$0xff] }
   0x8   :  { %v128_v29 = vld [vmem:[%s332_s3 + $0x20] sm:$0xff]  ;;  %v129_v45 = vld [vmem:[%s332_s3 + $0x28] sm:$0xff] }
   0xa   :  { %98 = vmatpush.bf16.msra.mxu0 %v186_v2  ;;  %195 = vmatpush.bf16.msra.mxu1 %v186_v2 }
   0xb   :  { %196 = vmatpush.bf16.msra.mxu2 %v186_v2  ;;  %197 = vmatpush.bf16.msra.mxu3 %v186_v2 }
   0xe   :  { %99 = vmatpush.bf16.msra.mxu0 %v185_v3  ;;  %198 = vmatpush.bf16.msra.mxu1 %v185_v3 }
   0xf   :  { %199 = vmatpush.bf16.msra.mxu2 %v185_v3  ;;  %200 = vmatpush.bf16.msra.mxu3 %v185_v3 }
  0x12   :  { %100 = vmatpush.bf16.msra.mxu0 %v184_v4  ;;  %201 = vmatpush.bf16.msra.mxu1 %v184_v4 }
  0x13   :  { %202 = vmatpush.bf16.msra.mxu2 %v184_v4  ;;  %203 = vmatpush.bf16.msra.mxu3 %v184_v4 }
  0x16   :  { %101 = vmatpush.bf16.msra.mxu0 %v183_v5  ;;  %204 = vmatpush.bf16.msra.mxu1 %v183_v5 }
  0x17   :  { %205 = vmatpush.bf16.msra.mxu2 %v183_v5  ;;  %206 = vmatpush.bf16.msra.mxu3 %v183_v5 }
  0x1a   :  { %102 = vmatpush.bf16.msra.mxu0 %v182_v6  ;;  %207 = vmatpush.bf16.msra.mxu1 %v182_v6 }
  0x1b   :  { %208 = vmatpush.bf16.msra.mxu2 %v182_v6  ;;  %209 = vmatpush.bf16.msra.mxu3 %v182_v6 }
  0x1e   :  { %103 = vmatpush.bf16.msra.mxu0 %v181_v7  ;;  %210 = vmatpush.bf16.msra.mxu1 %v181_v7 }
  0x1f   :  { %211 = vmatpush.bf16.msra.mxu2 %v181_v7  ;;  %212 = vmatpush.bf16.msra.mxu3 %v181_v7 }
  0x21   :  { %104 = vmatmul.bf16.vlgmr.msra.gmra.mxu0 %v24_v15  ;;  %109 = vmatmul.bf16.vlgmr.msra.gmra.mxu1 %v25_v16 }
  0x22   :  { %114 = vmatmul.bf16.vlgmr.msra.gmra.mxu2 %v26_v17  ;;  %119 = vmatmul.bf16.vlgmr.msra.gmra.mxu3 %v27_v18 }
  0x9e   :  { %v105_v20 = vpop.f32.mrf.mxu0  ;;  %v110_v22 = vpop.f32.mrf.mxu1 }
  0x9f   :  { %v106_v24 = vadd.f32 %v213_v19, %v105_v20  ;;  %v111_v25 = vadd.f32 %v213_v19, %v110_v22 }
  0xa1   :  { %v131_v26 = vadd.f32 %v124_v21, %v106_v24  ;;  %v133_v27 = vadd.f32 %v126_v23, %v111_v25 }
  0xa3   :  { %138 = vst [vmem:[%s333_s4] sm:$0xff] %v131_v26 }
  0xa4   :  { %140 = vst [vmem:[%s333_s4 + $0x10] sm:$0xff] %v133_v27 }
  0xa5   :  { %v115_v28 = vpop.f32.mrf.mxu2  ;;  %v120_v30 = vpop.f32.mrf.mxu3 }
  0xa6   :  { %v116_v32 = vadd.f32 %v213_v19, %v115_v28  ;;  %v121_v33 = vadd.f32 %v213_v19, %v120_v30  ;;  %v107_v34 = vpop.f32.mrf.mxu0  ;;  %v112_v36 = vpop.f32.mrf.mxu1 }
  0xa7   :  { %v108_v38 = vadd.f32 %v213_v19, %v107_v34  ;;  %v113_v39 = vadd.f32 %v213_v19, %v112_v36 }
  0xa8   :  { %v135_v40 = vadd.f32 %v128_v29, %v116_v32  ;;  %v137_v41 = vadd.f32 %v130_v31, %v121_v33 }
  0xa9   :  { %v132_v42 = vadd.f32 %v125_v35, %v108_v38  ;;  %v134_v43 = vadd.f32 %v127_v37, %v113_v39 }
  0xaa   :  { %142 = vst [vmem:[%s333_s4 + $0x20] sm:$0xff] %v135_v40 }
  0xab   :  { %144 = vst [vmem:[%s333_s4 + $0x30] sm:$0xff] %v137_v41 }
  0xac   :  { %139 = vst [vmem:[%s333_s4 + $0x8] sm:$0xff] %v132_v42 }
  0xad   :  { %141 = vst [vmem:[%s333_s4 + $0x18] sm:$0xff] %v134_v43  ;;  %v117_v44 = vpop.f32.mrf.mxu2  ;;  %v122_v46 = vpop.f32.mrf.mxu3 }
  0xae   :  { %v118_v47 = vadd.f32 %v213_v19, %v117_v44 }
  0xb0   :  { %v136_v48 = vadd.f32 %v129_v45, %v118_v47 }
  0xb2   :  { %143 = vst [vmem:[%s333_s4 + $0x28] sm:$0xff] %v136_v48 }

// kernel: loss_fn.109
= control target key start
LH: loop header
LB: loop body
LE: loop exit
PB: predicated region body
PF: predicated region fallthrough
CT: control target
= control target key end

     0   :  { %vm39_vm0 = vcmask 261120   ;;  %s174_s1 = inlined_call_operand.vmem [shape: bf16[32,128], index: 1, kind: input, shape index: {}]   ;;  %s175_s0 = inlined_call_operand.vmem [shape: f32[56,32], index: 0, kind: input, shape index: {}]   ;;  %s176_s2 = inlined_call_operand.vmem [shape: f32[56,128], index: 2, kind: output, shape index: {}]  }
   0x1   :  { %v104_v0 = vld [vmem:[%s174_s1 + $0x8] sm:$0xff]  ;;  %v103_v1 = vld [vmem:[%s174_s1] sm:$0xff]  ;;  %v14_v4 = vld [vmem:[%s175_s0 + $0x10] sm:$0xff] }
   0x2   :  { %v12_v2 = vld [vmem:[%s175_s0] sm:$0xff]  ;;  %58 = vmatpush.bf16.msra.mxu0 %v104_v0  ;;  %105 = vmatpush.bf16.msra.mxu1 %v104_v0  ;;  %v13_v3 = vld [vmem:[%s175_s0 + $0x8] sm:$0xff]  ;;  %v15_v5 = vld [vmem:[%s175_s0 + $0x18] sm:$0xff] }
   0x3   :  { %106 = vmatpush.bf16.msra.mxu2 %v104_v0  ;;  %107 = vmatpush.bf16.msra.mxu3 %v104_v0  ;;  %v16_v6 = vld [vmem:[%s175_s0 + $0x20] sm:$0xff]  ;;  %v17_v7 = vld [vmem:[%s175_s0 + $0x28] sm:$0xff]  ;;  %v18_v8 = vld [vmem:[%s175_s0 + $0x30] sm:$0xff]  ;;  %v19_v9 = vpack.c.bf16 %v13_v3, %v12_v2  ;;  %v20_v10 = vpack.c.bf16 %v15_v5, %v14_v4 }
   0x4   :  { %v21_v11 = vpack.c.bf16 %v17_v7, %v16_v6  ;;  %v22_v12 = vpack.c.bf16 %v18_v8, %v18_v8 }
   0x6   :  { %59 = vmatpush.bf16.msra.mxu0 %v103_v1  ;;  %108 = vmatpush.bf16.msra.mxu1 %v103_v1 }
   0x7   :  { %109 = vmatpush.bf16.msra.mxu2 %v103_v1  ;;  %110 = vmatpush.bf16.msra.mxu3 %v103_v1 }
   0x9   :  { %99 = vmatmul.msk.bf16.vlgmr.msra.gmra.mxu0 %vm39_vm0, %v19_v9  ;;  %100 = vmatmul.msk.bf16.vlgmr.msra.gmra.mxu1 %vm39_vm0, %v20_v10 }
   0xa   :  { %101 = vmatmul.msk.bf16.vlgmr.msra.gmra.mxu2 %vm39_vm0, %v21_v11  ;;  %102 = vmatmul.msk.bf16.vlgmr.msra.gmra.mxu3 %vm39_vm0, %v22_v12 }
  0x86   :  { %v61_v13 = vpop.f32.mrf.mxu0  ;;  %v66_v14 = vpop.f32.mrf.mxu1 }
  0x87   :  { %80 = vst [vmem:[%s176_s2] sm:$0xff] %v61_v13 }
  0x88   :  { %82 = vst [vmem:[%s176_s2 + $0x10] sm:$0xff] %v66_v14 }
  0x8d   :  { %v71_v15 = vpop.f32.mrf.mxu2  ;;  %v76_v16 = vpop.f32.mrf.mxu3 }
  0x8e   :  { %84 = vst [vmem:[%s176_s2 + $0x20] sm:$0xff] %v71_v15  ;;  %v63_v17 = vpop.f32.mrf.mxu0  ;;  %v68_v18 = vpop.f32.mrf.mxu1 }
  0x8f   :  { %86 = vst [vmem:[%s176_s2 + $0x30] sm:$0xff] %v76_v16 }
  0x90   :  { %81 = vst [vmem:[%s176_s2 + $0x8] sm:$0xff] %v63_v17 }
  0x91   :  { %83 = vst [vmem:[%s176_s2 + $0x18] sm:$0xff] %v68_v18 }
  0x95   :  { %v73_v19 = vpop.f32.mrf.mxu2  ;;  %v78_v20 = vpop.f32.mrf.mxu3 }
  0x96   :  { %85 = vst [vmem:[%s176_s2 + $0x28] sm:$0xff] %v73_v19 }

// kernel: loss_fn.83
= control target key start
LH: loop header
LB: loop body
LE: loop exit
PB: predicated region body
PF: predicated region fallthrough
CT: control target
= control target key end

     0   :  { %vm20_vm0 = vcmask 261120   ;;  %v144_v4 = vmov 32.0   ;;  %s199_s0 = inlined_call_operand.vmem [shape: f32[16,32], index: 0, kind: input, shape index: {}]   ;;  %s200_s2 = inlined_call_operand.vmem [shape: f32[1,32], index: 2, kind: input, shape index: {}]   ;;  %s201_s3 = inlined_call_operand.vmem [shape: f32[1,32], index: 3, kind: input, shape index: {}]   ;;  %s202_s1 = inlined_call_operand.vmem [shape: bf16[32,128], index: 1, kind: input, shape index: {}]   ;;  %s203_s4 = inlined_call_operand.vmem [shape: f32[16,128], index: 4, kind: output, shape index: {}]  }
   0x1   :  { %v18_v0 = vld [vmem:[%s199_s0] sm:$0xff]  ;;  %v19_v2 = vld [vmem:[%s199_s0 + $0x8] sm:$0xff]  ;;  %138 = vrcp.f32 %v144_v4 }
   0x2   :  { %v21_v1 = vsel %vm20_vm0, %v18_v0, 0.0  ;;  %v24_v3 = vsel %vm20_vm0, %v19_v2, 0.0  ;;  %v134_v21 = vld [vmem:[%s202_s1 + $0x8] sm:$0xff]  ;;  %v133_v23 = vld [vmem:[%s202_s1] sm:$0xff] }
   0x3   :  { %22 = vadd.xlane.f32.xlu0 %v21_v1  ;;  %110 = vmatpush.bf16.msra.mxu0 %v134_v21  ;;  %v136_v42 = vld [vmem:[%s200_s2] ss:$0 sm:$0xff] }
   0x4   :  { %v137_v47 = vld [vmem:[%s201_s3] ss:$0 sm:$0xff] }
   0x7   :  { %v139_v5 = vpop.eup %138  ;;  %111 = vmatpush.bf16.msra.mxu0 %v133_v23 }
   0x8   :  { %v28_v6 = vmul.f32 32.0, %v139_v5  ;;  %vm32_vm1 = vweird.f32 %v139_v5 }
   0xa   :  { %v29_v7 = vsub.f32 1.0, %v28_v6 }
   0xb   :  { %25 = vadd.xlane.f32.xlu0 %v24_v3 }
   0xc   :  { %v30_v8 = vmul.f32 %v139_v5, %v29_v7 }
   0xe   :  { %v31_v9 = vadd.f32 %v139_v5, %v30_v8 }
  0x10   :  { %v33_v10 = vsel %vm32_vm1, %v139_v5, %v31_v9 }
  0x76   :  { %v23_v11 = vpop.xlane.xlu0 %22 }
  0x77   :  { %v34_v12 = vmul.f32 %v33_v10, %v23_v11 }
  0x79   :  { %v36_v13 = vsub.f32 %v18_v0, %v34_v12 }
  0x7b   :  { %v38_v14 = vmul.f32 %v36_v13, %v36_v13 }
  0x7d   :  { %v40_v15 = vsel %vm20_vm0, %v38_v14, 0.0 }
  0x7e   :  { %41 = vadd.xlane.f32.xlu1 %v40_v15  ;;  %v26_v16 = vpop.xlane.xlu0 %25 }
  0x7f   :  { %v35_v17 = vmul.f32 %v33_v10, %v26_v16 }
  0x81   :  { %v37_v18 = vsub.f32 %v19_v2, %v35_v17 }
  0x83   :  { %v39_v19 = vmul.f32 %v37_v18, %v37_v18 }
  0x85   :  { %v43_v20 = vsel %vm20_vm0, %v39_v19, 0.0 }
  0x86   :  { %44 = vadd.xlane.f32.xlu1 %v43_v20 }
  0xf1   :  { %v42_v22 = vpop.xlane.xlu1 %41 }
  0xf2   :  { %v46_v24 = vmul.f32 %v42_v22, %v33_v10 }
  0xf4   :  { %v48_v25 = vadd.f32 1e-05, %v46_v24 }
  0xf6   :  { %140 = vrsqrt.f32 %v48_v25  ;;  %vm56_vm3 = vweird.f32 %v48_v25 }
  0xf9   :  { %v45_v26 = vpop.xlane.xlu1 %44 }
  0xfa   :  { %v47_v27 = vmul.f32 %v45_v26, %v33_v10 }
  0xfc   :  { %v141_v28 = vpop.eup %140  ;;  %v49_v29 = vadd.f32 1e-05, %v47_v27 }
  0xfd   :  { %v51_v30 = vmul.f32 %v141_v28, %v48_v25  ;;  %vm57_vm2 = vweird.f32 %v141_v28 }
  0xfe   :  { %142 = vrsqrt.f32 %v49_v29  ;;  %vm58_vm4 = vmor %vm56_vm3, %vm57_vm2  ;;  %vm66_vm6 = vweird.f32 %v49_v29 }
  0xff   :  { %v52_v31 = vmul.f32 %v141_v28, %v51_v30 }
 0x101   :  { %v53_v32 = vmul.f32 0.5, %v52_v31 }
 0x103   :  { %v54_v33 = vsub.f32 1.5, %v53_v32 }
 0x104   :  { %v143_v34 = vpop.eup %142 }
 0x105   :  { %v55_v35 = vmul.f32 %v141_v28, %v54_v33  ;;  %v61_v36 = vmul.f32 %v143_v34, %v49_v29  ;;  %vm67_vm5 = vweird.f32 %v143_v34 }
 0x106   :  { %vm68_vm7 = vmor %vm66_vm6, %vm67_vm5 }
 0x107   :  { %v62_v37 = vmul.f32 %v143_v34, %v61_v36  ;;  %v59_v38 = vsel %vm58_vm4, %v141_v28, %v55_v35 }
 0x108   :  { %v70_v41 = vmul.f32 %v59_v38, %v36_v13 }
 0x109   :  { %v63_v39 = vmul.f32 0.5, %v62_v37 }
 0x10a   :  { %v76_v46 = vmul.f32 %v136_v42, %v70_v41 }
 0x10b   :  { %v64_v40 = vsub.f32 1.5, %v63_v39 }
 0x10c   :  { %v82_v49 = vadd.f32 %v137_v47, %v76_v46 }
 0x10d   :  { %v65_v43 = vmul.f32 %v143_v34, %v64_v40 }
 0x10f   :  { %v69_v44 = vsel %vm68_vm7, %v143_v34, %v65_v43 }
 0x110   :  { %v71_v45 = vmul.f32 %v69_v44, %v37_v18 }
 0x112   :  { %v77_v48 = vmul.f32 %v136_v42, %v71_v45 }
 0x114   :  { %v83_v50 = vadd.f32 %v137_v47, %v77_v48 }
 0x116   :  { %v84_v51 = vpack.c.bf16 %v83_v50, %v82_v49 }
 0x118   :  { %132 = vmatmul.msk.bf16.vlgmr.msra.gmra.mxu0 %vm20_vm0, %v84_v51 }
 0x195   :  { %v113_v52 = vpop.f32.mrf.mxu0 }
 0x196   :  { %118 = vst [vmem:[%s203_s4] sm:$0xff] %v113_v52 }
 0x19d   :  { %v115_v53 = vpop.f32.mrf.mxu0 }
 0x19e   :  { %119 = vst [vmem:[%s203_s4 + $0x8] sm:$0xff] %v115_v53 }

// kernel: loss_fn.86
= control target key start
LH: loop header
LB: loop body
LE: loop exit
PB: predicated region body
PF: predicated region fallthrough
CT: control target
= control target key end

     0   :  { %vm23_vm0 = vcmask 261120   ;;  %v152_v4 = vmov 32.0   ;;  %s215_s0 = inlined_call_operand.vmem [shape: f32[16,32], index: 0, kind: input, shape index: {}]   ;;  %s216_s2 = inlined_call_operand.vmem [shape: f32[1,32], index: 2, kind: input, shape index: {}]   ;;  %s217_s3 = inlined_call_operand.vmem [shape: f32[1,32], index: 3, kind: input, shape index: {}]   ;;  %s218_s4 = inlined_call_operand.vmem [shape: f32[1,128], index: 4, kind: input, shape index: {}]   ;;  %s219_s1 = inlined_call_operand.vmem [shape: bf16[32,128], index: 1, kind: input, shape index: {}]   ;;  %s220_s5 = inlined_call_operand.vmem [shape: f32[16,128], index: 5, kind: output, shape index: {}]  }
   0x1   :  { %v21_v0 = vld [vmem:[%s215_s0] sm:$0xff]  ;;  %v22_v2 = vld [vmem:[%s215_s0 + $0x8] sm:$0xff]  ;;  %146 = vrcp.f32 %v152_v4 }
   0x2   :  { %v24_v1 = vsel %vm23_vm0, %v21_v0, 0.0  ;;  %v27_v3 = vsel %vm23_vm0, %v22_v2, 0.0  ;;  %v141_v21 = vld [vmem:[%s219_s1 + $0x8] sm:$0xff]  ;;  %v140_v23 = vld [vmem:[%s219_s1] sm:$0xff] }
   0x3   :  { %25 = vadd.xlane.f32.xlu0 %v24_v1  ;;  %117 = vmatpush.bf16.msra.mxu0 %v141_v21  ;;  %v143_v42 = vld [vmem:[%s216_s2] ss:$0 sm:$0xff] }
   0x4   :  { %v144_v47 = vld [vmem:[%s217_s3] ss:$0 sm:$0xff] }
   0x5   :  { %v145_v52 = vld [vmem:[%s218_s4] ss:$0 sm:$0xff] }
   0x7   :  { %v147_v5 = vpop.eup %146  ;;  %118 = vmatpush.bf16.msra.mxu0 %v140_v23 }
   0x8   :  { %v31_v6 = vmul.f32 32.0, %v147_v5  ;;  %vm35_vm1 = vweird.f32 %v147_v5 }
   0xa   :  { %v32_v7 = vsub.f32 1.0, %v31_v6 }
   0xb   :  { %28 = vadd.xlane.f32.xlu0 %v27_v3 }
   0xc   :  { %v33_v8 = vmul.f32 %v147_v5, %v32_v7 }
   0xe   :  { %v34_v9 = vadd.f32 %v147_v5, %v33_v8 }
  0x10   :  { %v36_v10 = vsel %vm35_vm1, %v147_v5, %v34_v9 }
  0x76   :  { %v26_v11 = vpop.xlane.xlu0 %25 }
  0x77   :  { %v37_v12 = vmul.f32 %v36_v10, %v26_v11 }
  0x79   :  { %v39_v13 = vsub.f32 %v21_v0, %v37_v12 }
  0x7b   :  { %v41_v14 = vmul.f32 %v39_v13, %v39_v13 }
  0x7d   :  { %v43_v15 = vsel %vm23_vm0, %v41_v14, 0.0 }
  0x7e   :  { %44 = vadd.xlane.f32.xlu1 %v43_v15  ;;  %v29_v16 = vpop.xlane.xlu0 %28 }
  0x7f   :  { %v38_v17 = vmul.f32 %v36_v10, %v29_v16 }
  0x81   :  { %v40_v18 = vsub.f32 %v22_v2, %v38_v17 }
  0x83   :  { %v42_v19 = vmul.f32 %v40_v18, %v40_v18 }
  0x85   :  { %v46_v20 = vsel %vm23_vm0, %v42_v19, 0.0 }
  0x86   :  { %47 = vadd.xlane.f32.xlu1 %v46_v20 }
  0xf1   :  { %v45_v22 = vpop.xlane.xlu1 %44 }
  0xf2   :  { %v49_v24 = vmul.f32 %v45_v22, %v36_v10 }
  0xf4   :  { %v51_v25 = vadd.f32 1e-05, %v49_v24 }
  0xf6   :  { %148 = vrsqrt.f32 %v51_v25  ;;  %vm59_vm3 = vweird.f32 %v51_v25 }
  0xf9   :  { %v48_v26 = vpop.xlane.xlu1 %47 }
  0xfa   :  { %v50_v27 = vmul.f32 %v48_v26, %v36_v10 }
  0xfc   :  { %v149_v28 = vpop.eup %148  ;;  %v52_v29 = vadd.f32 1e-05, %v50_v27 }
  0xfd   :  { %v54_v30 = vmul.f32 %v149_v28, %v51_v25  ;;  %vm60_vm2 = vweird.f32 %v149_v28 }
  0xfe   :  { %150 = vrsqrt.f32 %v52_v29  ;;  %vm61_vm4 = vmor %vm59_vm3, %vm60_vm2  ;;  %vm69_vm6 = vweird.f32 %v52_v29 }
  0xff   :  { %v55_v31 = vmul.f32 %v149_v28, %v54_v30 }
 0x101   :  { %v56_v32 = vmul.f32 0.5, %v55_v31 }
 0x103   :  { %v57_v33 = vsub.f32 1.5, %v56_v32 }
 0x104   :  { %v151_v34 = vpop.eup %150 }
 0x105   :  { %v58_v35 = vmul.f32 %v149_v28, %v57_v33  ;;  %v64_v36 = vmul.f32 %v151_v34, %v52_v29  ;;  %vm70_vm5 = vweird.f32 %v151_v34 }
 0x106   :  { %vm71_vm7 = vmor %vm69_vm6, %vm70_vm5 }
 0x107   :  { %v65_v37 = vmul.f32 %v151_v34, %v64_v36  ;;  %v62_v38 = vsel %vm61_vm4, %v149_v28, %v58_v35 }
 0x108   :  { %v73_v41 = vmul.f32 %v62_v38, %v39_v13 }
 0x109   :  { %v66_v39 = vmul.f32 0.5, %v65_v37 }
 0x10a   :  { %v79_v46 = vmul.f32 %v143_v42, %v73_v41 }
 0x10b   :  { %v67_v40 = vsub.f32 1.5, %v66_v39 }
 0x10c   :  { %v85_v49 = vadd.f32 %v144_v47, %v79_v46 }
 0x10d   :  { %v68_v43 = vmul.f32 %v151_v34, %v67_v40 }
 0x10f   :  { %v72_v44 = vsel %vm71_vm7, %v151_v34, %v68_v43 }
 0x110   :  { %v74_v45 = vmul.f32 %v72_v44, %v40_v18 }
 0x112   :  { %v80_v48 = vmul.f32 %v143_v42, %v74_v45 }
 0x114   :  { %v86_v50 = vadd.f32 %v144_v47, %v80_v48 }
 0x116   :  { %v87_v51 = vpack.c.bf16 %v86_v50, %v85_v49 }
 0x118   :  { %139 = vmatmul.msk.bf16.vlgmr.msra.gmra.mxu0 %vm23_vm0, %v87_v51 }
 0x195   :  { %v120_v53 = vpop.f32.mrf.mxu0 }
 0x196   :  { %v121_v54 = vadd.f32 %v145_v52, %v120_v53 }
 0x198   :  { %125 = vst [vmem:[%s220_s5] sm:$0xff] %v121_v54 }
 0x19d   :  { %v122_v55 = vpop.f32.mrf.mxu0 }
 0x19e   :  { %v123_v56 = vadd.f32 %v145_v52, %v122_v55 }
 0x1a0   :  { %126 = vst [vmem:[%s220_s5 + $0x8] sm:$0xff] %v123_v56 }

// kernel: loss_fn.84
= control target key start
LH: loop header
LB: loop body
LE: loop exit
PB: predicated region body
PF: predicated region fallthrough
CT: control target
= control target key end

     0   :  { %s943_s15 = smov 0   ;;  %s1080_s0 = inlined_call_operand.vmem [shape: f32[16,7,4], index: 0, kind: input, shape index: {}]   ;;  %s1081_s1 = inlined_call_operand.vmem [shape: f32[16,7,4], index: 1, kind: input, shape index: {}]   ;;  %s1082_s2 = inlined_call_operand.vmem [shape: f32[16,7,4], index: 2, kind: input, shape index: {}]   ;;  %s1083_s3 = inlined_call_operand.vmem [shape: f32[2,7,7], index: 3, kind: input, shape index: {}]   ;;  %s1084_s4 = inlined_call_operand.vmem [shape: f32[16,7,4], index: 4, kind: output, shape index: {}]  }
   0x1 LB: > { %s949_s16 = sadd.s32 4294967295, %s915_s15   ;;  %p840_p0 = scmp.ge.s32.totalorder %s915_s15, 1  ;;  %s915_s15 = sphi %s943_s15, %s14_s15  }
   0x2   : > { %p194_p1 = scmp.lt.s32.totalorder %s915_s15, 3 }
   0x4   : > { %p195_p2 = pnand %p840_p0, %p194_p1 }
   0x5   : > { %s841_s17 = sshll.u32 (!%p195_p2), %s949_s16, 3  ;;  %p252_p4 = scmp.lt.s32.totalorder (!%p195_p2), %s949_s16, 1 }
   0x6   : > { %198 = sbr.rel (%p195_p2) target bundleno = 585 (0x249), region = 36  ;;  %p235_p3 = scmp.lt.s32.totalorder (!%p195_p2), %s841_s17, 15 }
   0xb   : > { %s1086_s17 = smov (!%p235_p3, %s841_s17), 15  ;;  %vm311_vm0 = vcmask 31744   ;;  %s1088_s16 = smov (!%p252_p4, %s949_s16), 1  ;;  %vm481_vm1 = vcmask 55296   ;;  %vm582_vm2 = vcmask 1042432   ;;  %vm583_vm3 = vcmask 1043456  }
   0xc   : > { %s954_s18 = sshll.u32 %s1086_s17, 3  ;;  %s847_s25 = sshll.u32 %s1088_s16, 3  ;;  %vm578_vm4 = vcmask 56320   ;;  %vm735_vm5 = vcmask 30720  }
   0xd   : > { %s244_s21 = scalar_lea.vmem %s1081_s1, %s954_s18  ;;  %s964_s24 = scalar_lea.vmem %s1080_s0, %s954_s18 }
   0xe   : > { %v279_v0 = vld [vmem:[%s244_s21] sm:$0x7f]  ;;  %v280_v1 = vld [vmem:[%s244_s21 + $0x8] sm:$0x7f]  ;;  %v281_v2 = vld [vmem:[%s244_s21 + $0x10] sm:$0x7f]  ;;  %s255_s28 = scalar_lea.vmem %s1083_s3, %s847_s25  ;;  %s1039_s5 = scalar_lea.vmem %s1082_s2, %s954_s18 }
   0xf   : > { %v287_v3 = vpack.c.bf16 %v279_v0, %v279_v0  ;;  %v288_v4 = vpack.c.bf16 %v280_v1, %v280_v1  ;;  %v289_v5 = vpack.c.bf16 %v281_v2, %v281_v2  ;;  %v282_v6 = vld [vmem:[%s244_s21 + $0x18] sm:$0x7f]  ;;  %v263_v8 = vld [vmem:[%s964_s24] sm:$0x7f]  ;;  %v264_v9 = vld [vmem:[%s964_s24 + $0x8] sm:$0x7f]  ;;  %s260_s8 = scalar_lea.vmem %s1084_s4, %s954_s18 }
  0x10   : > { %v290_v7 = vpack.c.bf16 %v282_v6, %v282_v6  ;;  %v285_v10 = vld [vmem:[%s244_s21 + $0x30] sm:$0x7f]  ;;  %v286_v14 = vld [vmem:[%s244_s21 + $0x38] sm:$0x7f]  ;;  %v284_v18 = vld [vmem:[%s244_s21 + $0x28] sm:$0x7f]  ;;  %v271_v26 = vpack.c.bf16 %v263_v8, %v263_v8  ;;  %v272_v27 = vpack.c.bf16 %v264_v9, %v264_v9 }
  0x11   : > { %v316_v11 = vsel %vm311_vm0, %v287_v3, 0  ;;  %v335_v12 = vsel %vm311_vm0, %v288_v4, 0  ;;  %v354_v13 = vsel %vm311_vm0, %v289_v5, 0  ;;  %v293_v16 = vpack.c.bf16 %v285_v10, %v285_v10  ;;  %v283_v19 = vld [vmem:[%s244_s21 + $0x20] sm:$0x7f] }
  0x12   : > { %325 = vmatpush.bf16.xpose.msra.mxu0 %v316_v11  ;;  %344 = vmatpush.bf16.xpose.msra.mxu1 %v335_v12  ;;  %v373_v15 = vsel %vm311_vm0, %v290_v7, 0  ;;  %v294_v17 = vpack.c.bf16 %v286_v14, %v286_v14  ;;  %v265_v20 = vld [vmem:[%s964_s24 + $0x10] sm:$0x7f]  ;;  %v266_v21 = vld [vmem:[%s964_s24 + $0x18] sm:$0x7f]  ;;  %v292_v22 = vpack.c.bf16 %v284_v18, %v284_v18  ;;  %v291_v23 = vpack.c.bf16 %v283_v19, %v283_v19 }
  0x13   : > { %363 = vmatpush.bf16.xpose.msra.mxu2 %v354_v13  ;;  %382 = vmatpush.bf16.xpose.msra.mxu3 %v373_v15  ;;  %v430_v24 = vsel %vm311_vm0, %v293_v16, 0  ;;  %v273_v30 = vpack.c.bf16 %v265_v20, %v265_v20  ;;  %v274_v31 = vpack.c.bf16 %v266_v21, %v266_v21  ;;  %v268_v32 = vld [vmem:[%s964_s24 + $0x28] sm:$0x7f]  ;;  %v267_v33 = vld [vmem:[%s964_s24 + $0x20] sm:$0x7f] }
  0x14   : > { %v449_v25 = vsel %vm311_vm0, %v294_v17, 0  ;;  %v411_v28 = vsel %vm311_vm0, %v292_v22, 0  ;;  %v392_v29 = vsel %vm311_vm0, %v291_v23, 0  ;;  %v269_v34 = vld [vmem:[%s964_s24 + $0x30] sm:$0x7f]  ;;  %v276_v36 = vpack.c.bf16 %v268_v32, %v268_v32 }
  0x15   : > { %v270_v35 = vld [vmem:[%s964_s24 + $0x38] sm:$0x7f]  ;;  %v275_v37 = vpack.c.bf16 %v267_v33, %v267_v33  ;;  %v277_v38 = vpack.c.bf16 %v269_v34, %v269_v34  ;;  %v472_v42 = vld [vmem:[%s255_s28] sm:$0x7f] }
  0x16   : > { %v278_v39 = vpack.c.bf16 %v270_v35, %v270_v35 }
  0x19   : > { %850 = vmatmul.msk.bf16.vlgmr.msra.gmra.mxu0 %vm311_vm0, %v271_v26  ;;  %851 = vmatmul.msk.bf16.vlgmr.msra.gmra.mxu1 %vm311_vm0, %v272_v27 }
  0x1a   : > { %420 = vmatpush.bf16.xpose.msrb.mxu1 %v411_v28  ;;  %401 = vmatpush.bf16.xpose.msrb.mxu0 %v392_v29 }
  0x1b   : > { %439 = vmatpush.bf16.xpose.msrb.mxu2 %v430_v24  ;;  %458 = vmatpush.bf16.xpose.msrb.mxu3 %v449_v25 }
  0x1c   : > { %852 = vmatmul.msk.bf16.vlgmr.msra.gmra.mxu2 %vm311_vm0, %v273_v30  ;;  %853 = vmatmul.msk.bf16.vlgmr.msra.gmra.mxu3 %vm311_vm0, %v274_v31 }
  0x29   : > { %855 = vmatmul.msk.bf16.vlgmr.msrb.gmra.mxu1 %vm311_vm0, %v276_v36  ;;  %854 = vmatmul.msk.bf16.vlgmr.msrb.gmra.mxu0 %vm311_vm0, %v275_v37 }
  0x2c   : > { %856 = vmatmul.msk.bf16.vlgmr.msrb.gmra.mxu2 %vm311_vm0, %v277_v38  ;;  %857 = vmatmul.msk.bf16.vlgmr.msrb.gmra.mxu3 %vm311_vm0, %v278_v39 }
  0x96   : > { %v327_v40 = vpop.f32.mrf.mxu0  ;;  %v346_v41 = vpop.f32.mrf.mxu1 }
  0x97   : > { %v464_v43 = vmul.f32 0.17677669, %v327_v40  ;;  %v465_v44 = vmul.f32 0.17677669, %v346_v41 }
  0x99   : > { %v473_v45 = vadd.f32 %v472_v42, %v464_v43  ;;  %v474_v49 = vadd.f32 %v472_v42, %v465_v44 }
  0x9b   : > { %v482_v46 = vsel %vm481_vm1, %v473_v45, -inf  ;;  %v485_v55 = vsel %vm481_vm1, %v474_v49, -inf }
  0x9c   : > { %483 = vmax.xlane.f32.xlu1 %v482_v46 }
  0x9e   : > { %v348_v51 = vpop.f32.mrf.mxu1  ;;  %v329_v52 = vpop.f32.mrf.mxu0 }
  0x9f   : > { %v365_v47 = vpop.f32.mrf.mxu2  ;;  %v384_v48 = vpop.f32.mrf.mxu3 }
  0xa0   : > { %v466_v50 = vmul.f32 0.17677669, %v365_v47  ;;  %v467_v53 = vmul.f32 0.17677669, %v384_v48 }
  0xa2   : > { %v475_v54 = vadd.f32 %v472_v42, %v466_v50  ;;  %v476_v57 = vadd.f32 %v472_v42, %v467_v53 }
  0xa4   : > { %v488_v56 = vsel %vm481_vm1, %v475_v54, -inf  ;;  %486 = vmax.xlane.f32.xlu1 %v485_v55  ;;  %v491_v63 = vsel %vm481_vm1, %v476_v57, -inf }
  0xa5   : > { %489 = vmax.xlane.f32.xlu0 %v488_v56 }
  0xa6   : > { %v422_v60 = vpop.f32.mrf.mxu1  ;;  %v403_v61 = vpop.f32.mrf.mxu0 }
  0xa7   : > { %v367_v58 = vpop.f32.mrf.mxu2  ;;  %v386_v59 = vpop.f32.mrf.mxu3  ;;  %v469_v62 = vmul.f32 0.17677669, %v422_v60  ;;  %v468_v0 = vmul.f32 0.17677669, %v403_v61 }
  0xa8   : > { %v917_v59 = vmov 65535  }
  0xa9   : > { %v478_v1 = vadd.f32 %v472_v42, %v469_v62  ;;  %v477_v3 = vadd.f32 %v472_v42, %v468_v0  ;;  %v584_v60 = vsel %vm582_vm2, 4294967295, %v917_v59 }
  0xaa   : > { %v585_v61 = vsel %vm583_vm3, %v584_v60, 0 }
  0xab   : > { %v497_v2 = vsel %vm481_vm1, %v478_v1, -inf  ;;  %v494_v11 = vsel %vm481_vm1, %v477_v3, -inf }
  0xac   : > { %498 = vmax.xlane.f32.xlu1 %v497_v2  ;;  %v298_v2 = vld [vmem:[%s1039_s5 + $0x18] sm:$0x7f] }
  0xad   : > { %492 = vmax.xlane.f32.xlu0 %v491_v63  ;;  %v297_v63 = vld [vmem:[%s1039_s5 + $0x10] sm:$0x7f] }
  0xae   : > { %v405_v7 = vpop.f32.mrf.mxu0  ;;  %v424_v8 = vpop.f32.mrf.mxu1  ;;  %v305_v0 = vpack.c.bf16 %v297_v63, %v297_v63 }
  0xaf   : > { %v441_v4 = vpop.f32.mrf.mxu2  ;;  %v460_v5 = vpop.f32.mrf.mxu3  ;;  %v301_v8 = vld [vmem:[%s1039_s5 + $0x30] sm:$0x7f] }
  0xb0   : > { %v470_v6 = vmul.f32 0.17677669, %v441_v4  ;;  %v471_v9 = vmul.f32 0.17677669, %v460_v5  ;;  %v296_v5 = vld [vmem:[%s1039_s5 + $0x8] sm:$0x7f] }
  0xb2   : > { %v479_v10 = vadd.f32 %v472_v42, %v470_v6  ;;  %v480_v13 = vadd.f32 %v472_v42, %v471_v9  ;;  %v304_v6 = vpack.c.bf16 %v296_v5, %v296_v5  ;;  %v299_v9 = vld [vmem:[%s1039_s5 + $0x20] sm:$0x7f] }
  0xb4   : > { %v500_v12 = vsel %vm481_vm1, %v479_v10, -inf  ;;  %v503_v16 = vsel %vm481_vm1, %v480_v13, -inf  ;;  %v606_v7 = vand.u32 %v585_v61, %v304_v6 }
  0xb5   : > { %501 = vmax.xlane.f32.xlu2 %v500_v12  ;;  %495 = vmax.xlane.f32.xlu0 %v494_v11  ;;  %v307_v11 = vpack.c.bf16 %v299_v9, %v299_v9 }
  0xb6   : > { %615 = vmatpush.bf16.msra.mxu1 %v606_v7 }
  0xb7   : > { %v443_v14 = vpop.f32.mrf.mxu2  ;;  %v462_v15 = vpop.f32.mrf.mxu3 }
  0xb8   : > { %v302_v15 = vld [vmem:[%s1039_s5 + $0x38] sm:$0x7f] }
  0xbd   : > { %504 = vmax.xlane.f32.xlu2 %v503_v16  ;;  %v310_v16 = vpack.c.bf16 %v302_v15, %v302_v15 }
 0x10f   : > { %v484_v17 = vpop.xlane.xlu1 %483 }
 0x110   : > { %v506_v18 = vsub.f32 %v473_v45, %v484_v17  ;;  %v300_v17 = vld [vmem:[%s1039_s5 + $0x28] sm:$0x7f] }
 0x112   : > { %v514_v19 = vmul.f32 1.442695, %v506_v18  ;;  %v720_v18 = vand.u32 %v585_v61, %v310_v16 }
 0x114   : > { %877 = vpow2.f32 %v514_v19  ;;  %v308_v19 = vpack.c.bf16 %v300_v17, %v300_v17 }
 0x117   : > { %v487_v22 = vpop.xlane.xlu1 %486 }
 0x118   : > { %v490_v20 = vpop.xlane.xlu0 %489  ;;  %v507_v24 = vsub.f32 %v474_v49, %v487_v22  ;;  %v682_v22 = vand.u32 %v585_v61, %v308_v19 }
 0x119   : > { %v508_v21 = vsub.f32 %v475_v54, %v490_v20 }
 0x11a   : > { %v1003_v25 = vpop.eup %877  ;;  %v516_v27 = vmul.f32 1.442695, %v507_v24  ;;  %691 = vmatpush.bf16.msrb.mxu1 %v682_v22 }
 0x11b   : > { %v518_v23 = vmul.f32 1.442695, %v508_v21  ;;  %v530_v26 = vsel %vm481_vm1, %v1003_v25, 0.0 }
 0x11c   : > { %531 = vadd.xlane.f32.xlu1 %v530_v26 }
 0x11d   : > { %879 = vpow2.f32 %v518_v23 }
 0x11e   : > { %881 = vpow2.f32 %v516_v27 }
 0x11f   : > { %v499_v33 = vpop.xlane.xlu1 %498 }
 0x120   : > { %v493_v28 = vpop.xlane.xlu0 %492  ;;  %v511_v40 = vsub.f32 %v478_v1, %v499_v33  ;;  %v625_v1 = vand.u32 %v585_v61, %v305_v0 }
 0x121   : > { %v509_v29 = vsub.f32 %v476_v57, %v493_v28  ;;  %v295_v57 = vld [vmem:[%s1039_s5] sm:$0x7f] }
 0x122   : > { %v524_v45 = vmul.f32 1.442695, %v511_v40  ;;  %v303_v58 = vpack.c.bf16 %v295_v57, %v295_v57  ;;  %634 = vmatpush.bf16.msra.mxu2 %v625_v1 }
 0x123   : > { %v1007_v30 = vpop.eup %879  ;;  %v520_v31 = vmul.f32 1.442695, %v509_v29 }
 0x124   : > { %v536_v32 = vsel %vm481_vm1, %v1007_v30, 0.0  ;;  %v1011_v36 = vpop.eup %881  ;;  %v587_v62 = vand.u32 %v585_v61, %v303_v58 }
 0x125   : > { %883 = vpow2.f32 %v520_v31  ;;  %537 = vadd.xlane.f32.xlu2 %v536_v32  ;;  %v533_v43 = vsel %vm481_vm1, %v1011_v36, 0.0 }
 0x126   : > { %596 = vmatpush.bf16.msra.mxu0 %v587_v62 }
 0x128   : > { %v502_v34 = vpop.xlane.xlu2 %501  ;;  %v496_v35 = vpop.xlane.xlu0 %495 }
 0x129   : > { %v512_v37 = vsub.f32 %v479_v10, %v502_v34  ;;  %v510_v38 = vsub.f32 %v477_v3, %v496_v35  ;;  %v306_v3 = vpack.c.bf16 %v298_v2, %v298_v2  ;;  %v309_v10 = vpack.c.bf16 %v301_v8, %v301_v8 }
 0x12b   : > { %v1013_v39 = vpop.eup %883  ;;  %v526_v41 = vmul.f32 1.442695, %v512_v37  ;;  %v522_v42 = vmul.f32 1.442695, %v510_v38  ;;  %v644_v4 = vand.u32 %v585_v61, %v306_v3  ;;  %v701_v12 = vand.u32 %v585_v61, %v309_v10 }
 0x12c   : > { %v539_v44 = vsel %vm481_vm1, %v1013_v39, 0.0 }
 0x12d   : > { %885 = vpow2.f32 %v526_v41  ;;  %534 = vadd.xlane.f32.xlu2 %v533_v43  ;;  %540 = vadd.xlane.f32.xlu0 %v539_v44 }
 0x12e   : > { %887 = vpow2.f32 %v522_v42  ;;  %653 = vmatpush.bf16.msra.mxu3 %v644_v4  ;;  %710 = vmatpush.bf16.msrb.mxu2 %v701_v12 }
 0x12f   : > { %889 = vpow2.f32 %v524_v45 }
 0x130   : > { %v505_v46 = vpop.xlane.xlu2 %504 }
 0x131   : > { %v513_v47 = vsub.f32 %v480_v13, %v505_v46  ;;  %v663_v13 = vand.u32 %v585_v61, %v307_v11 }
 0x132   : > { %729 = vmatpush.bf16.msrb.mxu3 %v720_v18 }
 0x133   : > { %v1019_v48 = vpop.eup %885  ;;  %v528_v49 = vmul.f32 1.442695, %v513_v47  ;;  %672 = vmatpush.bf16.msrb.mxu0 %v663_v13 }
 0x134   : > { %v1021_v50 = vpop.eup %887  ;;  %v548_v51 = vsel %vm481_vm1, %v1019_v48, 0.0 }
 0x135   : > { %891 = vpow2.f32 %v528_v49  ;;  %549 = vadd.xlane.f32.xlu0 %v548_v51  ;;  %v542_v52 = vsel %vm481_vm1, %v1021_v50, 0.0  ;;  %v1027_v53 = vpop.eup %889 }
 0x136   : > { %543 = vadd.xlane.f32.xlu2 %v542_v52  ;;  %v545_v56 = vsel %vm481_vm1, %v1027_v53, 0.0 }
 0x13b   : > { %v1029_v54 = vpop.eup %891 }
 0x13c   : > { %v551_v55 = vsel %vm481_vm1, %v1029_v54, 0.0 }
 0x13d   : > { %552 = vadd.xlane.f32.xlu1 %v551_v55  ;;  %546 = vadd.xlane.f32.xlu0 %v545_v56 }
 0x18f   : > { %v532_v14 = vpop.xlane.xlu1 %531 }
 0x190   : > { %893 = vrcp.f32 %v532_v14 }
 0x196   : > { %v894_v20 = vpop.eup %893 }
 0x197   : > { %v562_v23 = vmul.f32 %v894_v20, %v1003_v25 }
 0x198   : > { %v538_v21 = vpop.xlane.xlu2 %537 }
 0x199   : > { %895 = vrcp.f32 %v538_v21  ;;  %v570_v24 = vpack.c.bf16 %v562_v23, %v562_v23 }
 0x19b   : > { %858 = vmatmul.msk.bf16.vlgmr.msra.gmra.mxu0 %vm578_vm4, %v570_v24 }
 0x19f   : > { %v896_v26 = vpop.eup %895 }
 0x1a0   : > { %v564_v27 = vmul.f32 %v896_v26, %v1007_v30  ;;  %v535_v28 = vpop.xlane.xlu2 %534  ;;  %v541_v29 = vpop.xlane.xlu0 %540 }
 0x1a1   : > { %897 = vrcp.f32 %v535_v28 }
 0x1a2   : > { %v572_v31 = vpack.c.bf16 %v564_v27, %v564_v27  ;;  %899 = vrcp.f32 %v541_v29 }
 0x1a4   : > { %860 = vmatmul.msk.bf16.vlgmr.msra.gmra.mxu2 %vm578_vm4, %v572_v31 }
 0x1a7   : > { %v898_v32 = vpop.eup %897 }
 0x1a8   : > { %v900_v33 = vpop.eup %899  ;;  %v563_v25 = vmul.f32 %v898_v32, %v1011_v36  ;;  %v550_v34 = vpop.xlane.xlu0 %549 }
 0x1a9   : > { %v565_v35 = vmul.f32 %v900_v33, %v1013_v39  ;;  %v544_v37 = vpop.xlane.xlu2 %543  ;;  %901 = vrcp.f32 %v550_v34 }
 0x1aa   : > { %v571_v38 = vpack.c.bf16 %v563_v25, %v563_v25  ;;  %903 = vrcp.f32 %v544_v37 }
 0x1ab   : > { %v573_v40 = vpack.c.bf16 %v565_v35, %v565_v35 }
 0x1ac   : > { %859 = vmatmul.msk.bf16.vlgmr.msra.gmra.mxu1 %vm578_vm4, %v571_v38 }
 0x1ad   : > { %861 = vmatmul.msk.bf16.vlgmr.msra.gmra.mxu3 %vm578_vm4, %v573_v40 }
 0x1af   : > { %v902_v30 = vpop.eup %901 }
 0x1b0   : > { %v904_v41 = vpop.eup %903  ;;  %v568_v42 = vmul.f32 %v902_v30, %v1019_v48  ;;  %v553_v43 = vpop.xlane.xlu1 %552 }
 0x1b1   : > { %v547_v44 = vpop.xlane.xlu0 %546  ;;  %v566_v36 = vmul.f32 %v904_v41, %v1021_v50  ;;  %905 = vrcp.f32 %v553_v43 }
 0x1b2   : > { %v576_v39 = vpack.c.bf16 %v568_v42, %v568_v42  ;;  %907 = vrcp.f32 %v547_v44 }
 0x1b3   : > { %v574_v45 = vpack.c.bf16 %v566_v36, %v566_v36 }
 0x1b4   : > { %864 = vmatmul.msk.bf16.vlgmr.msrb.gmra.mxu2 %vm578_vm4, %v576_v39 }
 0x1b5   : > { %862 = vmatmul.msk.bf16.vlgmr.msrb.gmra.mxu0 %vm578_vm4, %v574_v45 }
 0x1b7   : > { %v906_v46 = vpop.eup %905 }
 0x1b8   : > { %v908_v47 = vpop.eup %907  ;;  %v569_v49 = vmul.f32 %v906_v46, %v1029_v54 }
 0x1b9   : > { %v567_v51 = vmul.f32 %v908_v47, %v1027_v53 }
 0x1ba   : > { %v577_v48 = vpack.c.bf16 %v569_v49, %v569_v49 }
 0x1bb   : > { %v575_v52 = vpack.c.bf16 %v567_v51, %v567_v51 }
 0x1bd   : > { %863 = vmatmul.msk.bf16.vlgmr.msrb.gmra.mxu1 %vm578_vm4, %v575_v52  ;;  %865 = vmatmul.msk.bf16.vlgmr.msrb.gmra.mxu3 %vm578_vm4, %v577_v48 }
 0x218   : > { %v598_v50 = vpop.f32.mrf.mxu0 }
 0x219   : > { %736 = vst.msk [vmem:[%s260_s8] sm:$0x7f] %vm735_vm5, %v598_v50 }
 0x220   : > { %v600_v55 = vpop.f32.mrf.mxu0 }
 0x227   : > { %v636_v56 = vpop.f32.mrf.mxu2 }
 0x228   : > { %738 = vst.msk [vmem:[%s260_s8 + $0x10] sm:$0x7f] %vm735_vm5, %v636_v56 }
 0x229   : > { %v617_v54 = vpop.f32.mrf.mxu1 }
 0x22a   : > { %737 = vst.msk [vmem:[%s260_s8 + $0x8] sm:$0x7f] %vm735_vm5, %v617_v54 }
 0x22f   : > { %v638_v53 = vpop.f32.mrf.mxu2 }
 0x230   : > { %v655_v57 = vpop.f32.mrf.mxu3 }
 0x231   : > { %739 = vst.msk [vmem:[%s260_s8 + $0x18] sm:$0x7f] %vm735_vm5, %v655_v57  ;;  %v619_v58 = vpop.f32.mrf.mxu1 }
 0x232   : > { %v674_v59 = vpop.f32.mrf.mxu0 }
 0x233   : > { %740 = vst.msk [vmem:[%s260_s8 + $0x20] sm:$0x7f] %vm735_vm5, %v674_v59 }
 0x237   : > { %v712_v60 = vpop.f32.mrf.mxu2 }
 0x238   : > { %v657_v61 = vpop.f32.mrf.mxu3  ;;  %742 = vst.msk [vmem:[%s260_s8 + $0x30] sm:$0x7f] %vm735_vm5, %v712_v60 }
 0x23a   : > { %v676_v62 = vpop.f32.mrf.mxu0  ;;  %v693_v63 = vpop.f32.mrf.mxu1 }
 0x23b   : > { %741 = vst.msk [vmem:[%s260_s8 + $0x28] sm:$0x7f] %vm735_vm5, %v693_v63 }
 0x23f   : > { %v714_v0 = vpop.f32.mrf.mxu2 }
 0x240   : > { %v731_v1 = vpop.f32.mrf.mxu3 }
 0x241   : > { %743 = vst.msk [vmem:[%s260_s8 + $0x38] sm:$0x7f] %vm735_vm5, %v731_v1 }
 0x242   : > { %v695_v2 = vpop.f32.mrf.mxu1 }
 0x248   : > { %v733_v3 = vpop.f32.mrf.mxu3 }
 0x249 PF: > { %s14_s15 = sadd.s32 1, %s915_s15  }
 0x24a   : > { %p11_p5 = scmp.ge.s32.totalorder %s14_s15, 4  }
 0x24c   :  { %13 = sbr.rel (!%p11_p5) target bundleno = 1 (0x1), region = 75 }

// kernel: loss_fn.85
= control target key start
LH: loop header
LB: loop body
LE: loop exit
PB: predicated region body
PF: predicated region fallthrough
CT: control target
= control target key end

     0   :  { %vm41_vm0 = vcmask 261120   ;;  %s133_s1 = inlined_call_operand.vmem [shape: bf16[32,128], index: 1, kind: input, shape index: {}]   ;;  %s134_s0 = inlined_call_operand.vmem [shape: f32[16,32], index: 0, kind: input, shape index: {}]   ;;  %s135_s2 = inlined_call_operand.vmem [shape: f32[1,128], index: 2, kind: input, shape index: {}]   ;;  %s136_s3 = inlined_call_operand.vmem [shape: f32[16,128], index: 3, kind: input, shape index: {}]   ;;  %s137_s4 = inlined_call_operand.vmem [shape: f32[16,128], index: 4, kind: output, shape index: {}]  }
   0x1   :  { %v79_v0 = vld [vmem:[%s133_s1 + $0x8] sm:$0xff]  ;;  %v78_v1 = vld [vmem:[%s133_s1] sm:$0xff] }
   0x2   :  { %51 = vmatpush.bf16.msra.mxu0 %v79_v0  ;;  %v18_v2 = vld [vmem:[%s134_s0] sm:$0xff]  ;;  %v19_v3 = vld [vmem:[%s134_s0 + $0x8] sm:$0xff] }
   0x3   :  { %v20_v4 = vpack.c.bf16 %v19_v3, %v18_v2  ;;  %v80_v5 = vld [vmem:[%s135_s2] ss:$0 sm:$0xff]  ;;  %v60_v11 = vld [vmem:[%s136_s3 + $0x8] sm:$0xff] }
   0x4   :  { %v59_v7 = vld [vmem:[%s136_s3] sm:$0xff] }
   0x6   :  { %52 = vmatpush.bf16.msra.mxu0 %v78_v1 }
   0x9   :  { %77 = vmatmul.msk.bf16.vlgmr.msra.gmra.mxu0 %vm41_vm0, %v20_v4 }
  0x86   :  { %v54_v6 = vpop.f32.mrf.mxu0 }
  0x87   :  { %v55_v8 = vadd.f32 %v80_v5, %v54_v6 }
  0x89   :  { %v61_v9 = vadd.f32 %v59_v7, %v55_v8 }
  0x8b   :  { %63 = vst [vmem:[%s137_s4] sm:$0xff] %v61_v9 }
  0x8e   :  { %v56_v10 = vpop.f32.mrf.mxu0 }
  0x8f   :  { %v57_v12 = vadd.f32 %v80_v5, %v56_v10 }
  0x91   :  { %v62_v13 = vadd.f32 %v60_v11, %v57_v12 }
  0x93   :  { %64 = vst [vmem:[%s137_s4 + $0x8] sm:$0xff] %v62_v13 }

// kernel: loss_fn.87
= control target key start
LH: loop header
LB: loop body
LE: loop exit
PB: predicated region body
PF: predicated region fallthrough
CT: control target
= control target key end

     0   :  { %s223_s1 = inlined_call_operand.vmem [shape: bf16[128,128], index: 1, kind: input, shape index: {}]   ;;  %s224_s2 = inlined_call_operand.vmem [shape: f32[1,128], index: 2, kind: input, shape index: {}]   ;;  %s225_s0 = inlined_call_operand.vmem [shape: f32[16,128], index: 0, kind: input, shape index: {}]   ;;  %s226_s3 = inlined_call_operand.vmem [shape: f32[16,128], index: 3, kind: input, shape index: {}]   ;;  %s227_s4 = inlined_call_operand.vmem [shape: f32[16,128], index: 4, kind: output, shape index: {}]  }
   0x1   :  { %v151_v0 = vld [vmem:[%s223_s1 + $0x38] sm:$0xff]  ;;  %v150_v1 = vld [vmem:[%s223_s1 + $0x30] sm:$0xff]  ;;  %v149_v2 = vld [vmem:[%s223_s1 + $0x28] sm:$0xff] }
   0x2   :  { %88 = vmatpush.bf16.msra.mxu0 %v151_v0  ;;  %v148_v3 = vld [vmem:[%s223_s1 + $0x20] sm:$0xff]  ;;  %v147_v4 = vld [vmem:[%s223_s1 + $0x18] sm:$0xff]  ;;  %v146_v5 = vld [vmem:[%s223_s1 + $0x10] sm:$0xff] }
   0x3   :  { %v145_v6 = vld [vmem:[%s223_s1 + $0x8] sm:$0xff]  ;;  %v144_v7 = vld [vmem:[%s223_s1] sm:$0xff] }
   0x4   :  { %v17_v8 = vld [vmem:[%s225_s0] sm:$0xff]  ;;  %v18_v9 = vld [vmem:[%s225_s0 + $0x8] sm:$0xff] }
   0x5   :  { %v19_v10 = vpack.c.bf16 %v18_v9, %v17_v8  ;;  %v152_v11 = vld [vmem:[%s224_s2] ss:$0 sm:$0xff]  ;;  %v103_v17 = vld [vmem:[%s226_s3 + $0x8] sm:$0xff] }
   0x6   :  { %89 = vmatpush.bf16.msra.mxu0 %v150_v1  ;;  %v102_v13 = vld [vmem:[%s226_s3] sm:$0xff] }
   0xa   :  { %90 = vmatpush.bf16.msra.mxu0 %v149_v2 }
   0xe   :  { %91 = vmatpush.bf16.msra.mxu0 %v148_v3 }
  0x12   :  { %92 = vmatpush.bf16.msra.mxu0 %v147_v4 }
  0x16   :  { %93 = vmatpush.bf16.msra.mxu0 %v146_v5 }
  0x1a   :  { %94 = vmatpush.bf16.msra.mxu0 %v145_v6 }
  0x1e   :  { %95 = vmatpush.bf16.msra.mxu0 %v144_v7 }
  0x21   :  { %96 = vmatmul.bf16.vlgmr.msra.gmra.mxu0 %v19_v10 }
  0x9e   :  { %v97_v12 = vpop.f32.mrf.mxu0 }
  0x9f   :  { %v98_v14 = vadd.f32 %v152_v11, %v97_v12 }
  0xa1   :  { %v104_v15 = vadd.f32 %v102_v13, %v98_v14 }
  0xa3   :  { %106 = vst [vmem:[%s227_s4] sm:$0xff] %v104_v15 }
  0xa6   :  { %v99_v16 = vpop.f32.mrf.mxu0 }
  0xa7   :  { %v100_v18 = vadd.f32 %v152_v11, %v99_v16 }
  0xa9   :  { %v105_v19 = vadd.f32 %v103_v17, %v100_v18 }
  0xab   :  { %107 = vst [vmem:[%s227_s4 + $0x8] sm:$0xff] %v105_v19 }

// kernel: loss_fn.112
= control target key start
LH: loop header
LB: loop body
LE: loop exit
PB: predicated region body
PF: predicated region fallthrough
CT: control target
= control target key end

     0   :  { %s747_s18 = smov 0   ;;  %s749_s19 = smov 0   ;;  %s845_s0 = inlined_call_operand.vmem [shape: f32[16,32], index: 0, kind: input, shape index: {}]   ;;  %s846_s1 = inlined_call_operand.vmem [shape: bf16[32,512], index: 1, kind: input, shape index: {}]   ;;  %s847_s2 = inlined_call_operand.vmem [shape: f32[1,32], index: 2, kind: input, shape index: {}]   ;;  %s848_s3 = inlined_call_operand.vmem [shape: f32[1,32], index: 3, kind: input, shape index: {}]   ;;  %s849_s4 = inlined_call_operand.vmem [shape: f32[1,512], index: 4, kind: input, shape index: {}]   ;;  %s850_s5 = inlined_call_operand.vmem [shape: f32[16,512], index: 5, kind: output, shape index: {}]  }
   0x1   :  { %s751_s20 = smov 0   ;;  %s753_s21 = smov 0  }
   0x2   :  { %s755_s22 = smov 0  }
   0x3 LB: > { %s24_s23 = sadd.s32 1, %s710_s21  ;;  %s586_s24 = sadd.s32 4294967295, %s714_s22   ;;  %s714_s22 = sphi %s755_s22, %s15_s22   ;;  %s710_s21 = sphi %s753_s21, %s855_s21   ;;  %s706_s20 = sphi %s751_s20, %s854_s20   ;;  %s702_s19 = sphi %s749_s19, %s853_s19   ;;  %s698_s18 = sphi %s747_s18, %s852_s18  }
   0x4   : > { %p25_p0 = scmp.ge.s32.totalorder %s24_s23, 2  ;;  %p67_p1 = scmp.ne.s32.totalorder %s702_s19, %s698_s18 }
   0x5   : > { %p68_p2 = scmp.eq.s32.totalorder %s714_s22, 0  ;;  %p167_p4 = scmp.eq.s32.totalorder %s586_s24, 1 }
   0x6   : > { %s857_s23 = smov (%p25_p0, %s24_s23), 0  ;;  %s60_s26 = sadd.s32 1, %s702_s19 }
   0x7   : > { %p69_p3 = por %p68_p2, %p67_p1  ;;  %s57_s25 = ssub.s32 %s710_s21, %s857_s23 }
   0x8   : > { %p58_p5 = scmp.eq.s32.totalorder %s57_s25, 0  ;;  %p782_p6 = por %p167_p4, %p67_p1 }
   0x9   : > { %p590_p7 = scmp.ge.s32.totalorder %s714_s22, 2 }
   0xa   : > { %s787_s28 = scalar_select %p58_p5, %s702_s19, %s60_s26  }
   0xb   : > { %204 = sbr.rel (%p590_p7) target bundleno = 24 (0x18), region = 28 }
  0x10   : > { %207 = sbr.rel (!%p69_p3) target bundleno = 24 (0x18), region = 32  ;;  %s209_s29 = sand.u32 (%p69_p3), 1, %s702_s19  }
  0x11   : > { %s621_s30 = sshll.u32 (%p69_p3), %s710_s21, 3  ;;  %s591_s6 = sshll.u32 (%p69_p3), %s209_s29, 5 }
  0x12   : > { %s214_s9 = scalar_lea.vmem (%p69_p3), %s846_s1, %s621_s30  ;;  %s211_s10 = scalar_lea.vmem (%p69_p3), [#allocation2], %s591_s6 }
  0x13   : > { %v249_v0 = vld [vmem:[%s214_s9] sm:$0xff] (%p69_p3)  ;;  %v251_v1 = vld [vmem:[%s214_s9 + $0x10] sm:$0xff] (%p69_p3) }
  0x14   : > { %v253_v2 = vld [vmem:[%s214_s9 + $0x20] sm:$0xff] (%p69_p3)  ;;  %250 = vst [vmem:[%s211_s10] sm:$0xff] (%p69_p3), %v249_v0  ;;  %v255_v3 = vld [vmem:[%s214_s9 + $0x30] sm:$0xff] (%p69_p3) }
  0x15   : > { %252 = vst [vmem:[%s211_s10 + $0x8] sm:$0xff] %v251_v1 }
  0x16   : > { %254 = vst [vmem:[%s211_s10 + $0x10] sm:$0xff] %v253_v2 }
  0x17   : > { %256 = vst [vmem:[%s211_s10 + $0x18] sm:$0xff] %v255_v3 }
  0x18 PF: > { %p594_p8 = scmp.ge.s32.totalorder %s714_s22, 1  ;;  %p269_p9 = scmp.lt.s32.totalorder %s714_s22, 3 }
  0x1a   : > { %p270_p10 = pnand %p594_p8, %p269_p9 }
  0x1b   : > { %s276_s15 = sand.u32 (!%p270_p10), 1, %s698_s18   ;;  %s597_s29 = sshll.u32 (!%p270_p10), %s706_s20, 1 }
  0x1c   : > { %273 = sbr.rel (%p270_p10) target bundleno = 458 (0x1ca), region = 74  ;;  %s808_s16 = sshll.u32 (!%p270_p10), %s276_s15, 5 }
  0x1d   : > { %s278_s17 = scalar_lea.vmem (!%p270_p10), [#allocation2], %s808_s16  ;;  %p319_p11 = scmp.lt.s32.totalorder (!%p270_p10), %s597_s29, 3 }
  0x1e   : > { %s310_s8 = scalar_lea.vmem (!%p270_p10), [#allocation3], %s808_s16 }
  0x21   : > { %v326_v4 = vld [vmem:[%s845_s0] sm:$0xff]  ;;  %vm328_vm0 = vcmask 261120   ;;  %v327_v6 = vld [vmem:[%s845_s0 + $0x8] sm:$0xff]  ;;  %v716_v8 = vmov 32.0   ;;  %v608_v25 = vld [vmem:[%s278_s17 + $0x10] sm:$0xf] }
  0x22   : > { %v329_v5 = vsel %vm328_vm0, %v326_v4, 0.0  ;;  %v332_v7 = vsel %vm328_vm0, %v327_v6, 0.0  ;;  %670 = vrcp.f32 %v716_v8  ;;  %v625_v26 = vld [vmem:[%s278_s17 + $0x14] sm:$0xf0]  ;;  %v624_v27 = vld [vmem:[%s278_s17 + $0x14] sm:$0xf] }
  0x23   : > { %330 = vadd.xlane.f32.xlu0 %v329_v5  ;;  %v609_v28 = vor.u32 %v625_v26, %v608_v25  ;;  %v610_v29 = vld [vmem:[%s278_s17 + $0x18] sm:$0xf0]  ;;  %v600_v31 = vld [vmem:[%s278_s17] sm:$0xf]  ;;  %v623_v32 = vld [vmem:[%s278_s17 + $0x4] sm:$0xf0] }
  0x24   : > { %v613_v30 = vor.u32 %v624_v27, %v610_v29  ;;  %v622_v33 = vld [vmem:[%s278_s17 + $0x4] sm:$0xf]  ;;  %v601_v35 = vor.u32 %v623_v32, %v600_v31  ;;  %v602_v36 = vld [vmem:[%s278_s17 + $0x8] sm:$0xf0]  ;;  %v668_v56 = vld [vmem:[%s847_s2] ss:$0 sm:$0xff] }
  0x25   : > { %432 = vmatpush.bf16.msra.mxu0 %v609_v28  ;;  %v605_v38 = vor.u32 %v622_v33, %v602_v36  ;;  %v669_v61 = vld [vmem:[%s848_s3] ss:$0 sm:$0xff]  ;;  %s859_s29 = smov (!%p319_p11, %s597_s29), 3  ;;  %s626_s9 = sshll.u32 (%p782_p6), %s706_s20, 4 }
  0x26   : > { %446 = vmatpush.bf16.msra.mxu1 %v613_v30  ;;  %s321_s7 = scalar_lea.vmem %s849_s4, %s859_s29  ;;  %s470_s12 = scalar_lea.vmem (%p782_p6), %s850_s5, %s626_s9 }
  0x27   : > { %v397_v2 = vld [vmem:[%s321_s7] sm:$0x3] }
  0x28   : > { %v671_v9 = vpop.eup %670  ;;  %v399_v3 = vperm.slane %v397_v2, 0 }
  0x29   : > { %v336_v10 = vmul.f32 32.0, %v671_v9  ;;  %vm340_vm1 = vweird.f32 %v671_v9  ;;  %433 = vmatpush.bf16.msra.mxu0 %v601_v35 }
  0x2a   : > { %447 = vmatpush.bf16.msra.mxu1 %v605_v38 }
  0x2b   : > { %333 = vadd.xlane.f32.xlu0 %v332_v7  ;;  %v337_v11 = vsub.f32 1.0, %v336_v10 }
  0x2d   : > { %v338_v12 = vmul.f32 %v671_v9, %v337_v11 }
  0x2f   : > { %v339_v13 = vadd.f32 %v671_v9, %v338_v12 }
  0x31   : > { %v341_v14 = vsel %vm340_vm1, %v671_v9, %v339_v13 }
  0x96   : > { %v331_v15 = vpop.xlane.xlu0 %330 }
  0x97   : > { %v342_v16 = vmul.f32 %v341_v14, %v331_v15 }
  0x99   : > { %v344_v17 = vsub.f32 %v326_v4, %v342_v16  ;;  %v400_v4 = vperm.slane %v397_v2, 1 }
  0x9b   : > { %v346_v18 = vmul.f32 %v344_v17, %v344_v17 }
  0x9d   : > { %v348_v19 = vsel %vm328_vm0, %v346_v18, 0.0 }
  0x9e   : > { %349 = vadd.xlane.f32.xlu1 %v348_v19  ;;  %v334_v20 = vpop.xlane.xlu0 %333 }
  0x9f   : > { %v343_v21 = vmul.f32 %v341_v14, %v334_v20 }
  0xa1   : > { %v345_v22 = vsub.f32 %v327_v6, %v343_v21 }
  0xa3   : > { %v347_v23 = vmul.f32 %v345_v22, %v345_v22 }
  0xa5   : > { %v351_v24 = vsel %vm328_vm0, %v347_v23, 0.0 }
  0xa6   : > { %352 = vadd.xlane.f32.xlu1 %v351_v24 }
 0x111   : > { %v350_v34 = vpop.xlane.xlu1 %349 }
 0x112   : > { %v354_v37 = vmul.f32 %v350_v34, %v341_v14 }
 0x114   : > { %v356_v39 = vadd.f32 1e-05, %v354_v37 }
 0x116   : > { %672 = vrsqrt.f32 %v356_v39  ;;  %vm364_vm3 = vweird.f32 %v356_v39 }
 0x119   : > { %v353_v40 = vpop.xlane.xlu1 %352 }
 0x11a   : > { %v355_v41 = vmul.f32 %v353_v40, %v341_v14 }
 0x11c   : > { %v673_v42 = vpop.eup %672  ;;  %v357_v43 = vadd.f32 1e-05, %v355_v41 }
 0x11d   : > { %v359_v44 = vmul.f32 %v673_v42, %v356_v39  ;;  %vm365_vm2 = vweird.f32 %v673_v42 }
 0x11e   : > { %674 = vrsqrt.f32 %v357_v43  ;;  %vm366_vm4 = vmor %vm364_vm3, %vm365_vm2  ;;  %vm374_vm6 = vweird.f32 %v357_v43 }
 0x11f   : > { %v360_v45 = vmul.f32 %v673_v42, %v359_v44 }
 0x121   : > { %v361_v46 = vmul.f32 0.5, %v360_v45 }
 0x123   : > { %v362_v47 = vsub.f32 1.5, %v361_v46 }
 0x124   : > { %v675_v48 = vpop.eup %674 }
 0x125   : > { %v363_v49 = vmul.f32 %v673_v42, %v362_v47  ;;  %v369_v50 = vmul.f32 %v675_v48, %v357_v43  ;;  %vm375_vm5 = vweird.f32 %v675_v48 }
 0x126   : > { %vm376_vm7 = vmor %vm374_vm6, %vm375_vm5 }
 0x127   : > { %v370_v51 = vmul.f32 %v675_v48, %v369_v50  ;;  %v367_v52 = vsel %vm366_vm4, %v673_v42, %v363_v49 }
 0x128   : > { %v378_v55 = vmul.f32 %v367_v52, %v344_v17 }
 0x129   : > { %v371_v53 = vmul.f32 0.5, %v370_v51 }
 0x12a   : > { %v384_v60 = vmul.f32 %v668_v56, %v378_v55 }
 0x12b   : > { %v372_v54 = vsub.f32 1.5, %v371_v53 }
 0x12c   : > { %v390_v63 = vadd.f32 %v669_v61, %v384_v60 }
 0x12d   : > { %v373_v57 = vmul.f32 %v675_v48, %v372_v54 }
 0x12f   : > { %v377_v58 = vsel %vm376_vm7, %v675_v48, %v373_v57 }
 0x130   : > { %v379_v59 = vmul.f32 %v377_v58, %v345_v22 }
 0x132   : > { %v385_v62 = vmul.f32 %v668_v56, %v379_v59 }
 0x134   : > { %v391_v0 = vadd.f32 %v669_v61, %v385_v62 }
 0x136   : > { %v392_v1 = vpack.c.bf16 %v391_v0, %v390_v63 }
 0x138   : > { %614 = vmatmul.msk.bf16.vlgmr.msra.gmra.mxu0 %vm328_vm0, %v392_v1  ;;  %615 = vmatmul.msk.bf16.vlgmr.msra.gmra.mxu1 %vm328_vm0, %v392_v1 }
 0x1b5   : > { %v435_v5 = vpop.f32.mrf.mxu0  ;;  %v449_v6 = vpop.f32.mrf.mxu1 }
 0x1b6   : > { %v436_v7 = vadd.f32 %v435_v5, %v399_v3  ;;  %v450_v8 = vadd.f32 %v449_v6, %v400_v4 }
 0x1b8   : > { %454 = vst [vmem:[%s310_s8] sm:$0xff] %v436_v7 }
 0x1b9   : > { %455 = vst [vmem:[%s310_s8 + $0x8] sm:$0xff] %v450_v8 }
 0x1bd   : > { %v437_v9 = vpop.f32.mrf.mxu0  ;;  %v451_v10 = vpop.f32.mrf.mxu1  ;;  %464 = sbr.rel (!%p782_p6) target bundleno = 458 (0x1ca), region = 82 }
 0x1be   : > { %v438_v11 = vadd.f32 %v437_v9, %v399_v3  ;;  %v452_v12 = vadd.f32 %v451_v10, %v400_v4 }
 0x1bf   : > { %v483_v13 = vld [vmem:[%s310_s8] sm:$0xff] (%p782_p6) }
 0x1c0   : > { %456 = vst [vmem:[%s310_s8 + $0x10] sm:$0xff] %v438_v11  ;;  %v485_v14 = vld [vmem:[%s310_s8 + $0x8] sm:$0xff] (%p782_p6) }
 0x1c1   : > { %457 = vst [vmem:[%s310_s8 + $0x18] sm:$0xff] %v452_v12 }
 0x1c2   : > { %484 = vst [vmem:[%s470_s12] sm:$0xff] %v483_v13 }
 0x1c3   : > { %486 = vst [vmem:[%s470_s12 + $0x8] sm:$0xff] %v485_v14 }
 0x1c7   : > { %v487_v15 = vld [vmem:[%s310_s8 + $0x10] sm:$0xff] }
 0x1c8   : > { %v489_v16 = vld [vmem:[%s310_s8 + $0x18] sm:$0xff]  ;;  %488 = vst [vmem:[%s470_s12 + $0x20] sm:$0xff] %v487_v15 }
 0x1c9   : > { %490 = vst [vmem:[%s470_s12 + $0x28] sm:$0xff] %v489_v16 }
 0x1ca PF: > { %s15_s22 = sadd.s32 1, %s714_s22   ;;  %s852_s18 = smov %s702_s19 }
 0x1cb   : > { %p12_p12 = scmp.ge.s32.totalorder %s15_s22, 4   ;;  %s853_s19 = smov %s787_s28 }
 0x1cc   : > { %s854_s20 = smov %s710_s21  ;;  %s855_s21 = smov %s857_s23 }
 0x1cd   :  { %14 = sbr.rel (!%p12_p12) target bundleno = 3 (0x3), region = 142 }

// kernel: loss_fn.110
= control target key start
LH: loop header
LB: loop body
LE: loop exit
PB: predicated region body
PF: predicated region fallthrough
CT: control target
= control target key end

     0   :  { %s1241_s15 = smov 0   ;;  %s1488_s0 = inlined_call_operand.vmem [shape: f32[16,7,4], index: 0, kind: input, shape index: {}]   ;;  %s1489_s1 = inlined_call_operand.vmem [shape: f32[16,27,4], index: 1, kind: input, shape index: {}]   ;;  %s1490_s2 = inlined_call_operand.vmem [shape: f32[16,27,4], index: 2, kind: input, shape index: {}]   ;;  %s1491_s3 = inlined_call_operand.vmem [shape: f32[2,7,27], index: 3, kind: input, shape index: {}]   ;;  %s1492_s4 = inlined_call_operand.vmem [shape: f32[16,7,4], index: 4, kind: output, shape index: {}]  }
   0x1 LB: > { %s1247_s16 = sadd.s32 4294967295, %s1213_s15   ;;  %p1134_p0 = scmp.ge.s32.totalorder %s1213_s15, 1  ;;  %s1213_s15 = sphi %s1241_s15, %s14_s15  }
   0x2   : > { %p196_p1 = scmp.lt.s32.totalorder %s1213_s15, 3 }
   0x4   : > { %p197_p2 = pnand %p1134_p0, %p196_p1 }
   0x5   : > { %s1135_s17 = sshll.u32 (!%p197_p2), %s1247_s16, 3  ;;  %p258_p4 = scmp.lt.s32.totalorder (!%p197_p2), %s1247_s16, 1 }
   0x6   : > { %200 = sbr.rel (%p197_p2) target bundleno = 596 (0x254), region = 36  ;;  %p239_p3 = scmp.lt.s32.totalorder (!%p197_p2), %s1135_s17, 15 }
   0xb   : > { %s1494_s17 = smov (!%p239_p3, %s1135_s17), 15  ;;  %vm423_vm0 = vcmask 31744   ;;  %s1496_s16 = smov (!%p258_p4, %s1247_s16), 1  ;;  %vm687_vm1 = vcmask 219136   ;;  %vm799_vm2 = vcmask 1044480   ;;  %vm800_vm3 = vcmask 1045504  }
   0xc   : > { %s1164_s18 = sshll.u32 %s1494_s17, 5  ;;  %s1136_s22 = sshll.u32 %s1494_s17, 3  ;;  %vm795_vm4 = vcmask 220160   ;;  %vm1029_vm5 = vcmask 30720  }
   0xd   : > { %s1260_s21 = scalar_lea.vmem %s1489_s1, %s1164_s18  ;;  %s1280_s25 = scalar_lea.vmem %s1488_s0, %s1136_s22 }
   0xe   : > { %v287_v0 = vld [vmem:[%s1260_s21 + $0x10] sm:$0xff]  ;;  %v288_v1 = vld [vmem:[%s1260_s21 + $0x18] sm:$0x7]  ;;  %v285_v14 = vld [vmem:[%s1260_s21] sm:$0xff]  ;;  %s1143_s26 = sshll.u32 %s1496_s16, 3  ;;  %s1412_s6 = scalar_lea.vmem %s1490_s2, %s1164_s18 }
   0xf   : > { %v291_v2 = vld [vmem:[%s1260_s21 + $0x30] sm:$0xff]  ;;  %v319_v3 = vpack.c.bf16 %v287_v0, %v287_v0  ;;  %v320_v4 = vpack.c.bf16 %v288_v1, %v288_v1  ;;  %v292_v5 = vld [vmem:[%s1260_s21 + $0x38] sm:$0x7]  ;;  %v286_v19 = vld [vmem:[%s1260_s21 + $0x8] sm:$0xff]  ;;  %v317_v28 = vpack.c.bf16 %v285_v14, %v285_v14  ;;  %s261_s29 = scalar_lea.vmem %s1491_s3, %s1143_s26  ;;  %s266_s9 = scalar_lea.vmem %s1492_s4, %s1136_s22 }
  0x10   : > { %v323_v6 = vpack.c.bf16 %v291_v2, %v291_v2  ;;  %v295_v7 = vld [vmem:[%s1260_s21 + $0x50] sm:$0xff]  ;;  %v296_v8 = vld [vmem:[%s1260_s21 + $0x58] sm:$0x7]  ;;  %v324_v9 = vpack.c.bf16 %v292_v5, %v292_v5  ;;  %v289_v20 = vld [vmem:[%s1260_s21 + $0x20] sm:$0xff]  ;;  %v318_v29 = vpack.c.bf16 %v286_v19, %v286_v19 }
  0x11   : > { %v327_v10 = vpack.c.bf16 %v295_v7, %v295_v7  ;;  %v328_v11 = vpack.c.bf16 %v296_v8, %v296_v8  ;;  %v299_v12 = vld [vmem:[%s1260_s21 + $0x70] sm:$0xff]  ;;  %v300_v13 = vld [vmem:[%s1260_s21 + $0x78] sm:$0x7]  ;;  %v419_v15 = vunpack.c.l.b16 %v319_v3  ;;  %v420_v16 = vunpack.c.l.b16 %v320_v4  ;;  %v290_v25 = vld [vmem:[%s1260_s21 + $0x28] sm:$0xff] }
  0x12   : > { %v452_v17 = vunpack.c.l.b16 %v323_v6  ;;  %v331_v18 = vpack.c.bf16 %v299_v12, %v299_v12  ;;  %v453_v21 = vunpack.c.l.b16 %v324_v9  ;;  %v332_v24 = vpack.c.bf16 %v300_v13, %v300_v13  ;;  %v293_v34 = vld [vmem:[%s1260_s21 + $0x40] sm:$0xff]  ;;  %v294_v35 = vld [vmem:[%s1260_s21 + $0x48] sm:$0xff]  ;;  %v1296_v52 = vld [vmem:[%s1280_s25 + $0x10] sm:$0x7f] }
  0x13   : > { %v484_v22 = vunpack.c.l.b16 %v327_v10  ;;  %v485_v23 = vunpack.c.l.b16 %v328_v11  ;;  %v422_v26 = vpack.c.b16 %v420_v16, %v419_v15  ;;  %v321_v33 = vpack.c.bf16 %v289_v20, %v289_v20  ;;  %v297_v40 = vld [vmem:[%s1260_s21 + $0x60] sm:$0xff]  ;;  %v298_v41 = vld [vmem:[%s1260_s21 + $0x68] sm:$0xff]  ;;  %v1302_v57 = vld [vmem:[%s1280_s25 + $0x18] sm:$0x7f] }
  0x14   : > { %v516_v27 = vunpack.c.l.b16 %v331_v18  ;;  %v455_v30 = vpack.c.b16 %v453_v21, %v452_v17  ;;  %v517_v32 = vunpack.c.l.b16 %v332_v24  ;;  %v417_v37 = vunpack.c.l.b16 %v317_v28  ;;  %v1288_v42 = vld [vmem:[%s1280_s25] sm:$0x7f]  ;;  %v1293_v51 = vld [vmem:[%s1280_s25 + $0x8] sm:$0x7f]  ;;  %v311_v58 = vld [vmem:[%s1260_s21 + $0xd0] sm:$0xff] }
  0x15   : > { %v487_v31 = vpack.c.b16 %v485_v23, %v484_v22  ;;  %v431_v36 = vsel %vm423_vm0, %v422_v26, 0  ;;  %v418_v38 = vunpack.c.l.b16 %v318_v29  ;;  %v322_v39 = vpack.c.bf16 %v290_v25, %v290_v25  ;;  %v312_v63 = vld [vmem:[%s1260_s21 + $0xd8] sm:$0x7]  ;;  %v307_v0 = vld [vmem:[%s1260_s21 + $0xb0] sm:$0xff]  ;;  %v309_v22 = vld [vmem:[%s1260_s21 + $0xc0] sm:$0xff] }
  0x16   : > { %439 = vmatpush.bf16.xpose.msra.mxu0 %v431_v36  ;;  %v463_v43 = vsel %vm423_vm0, %v455_v30, 0  ;;  %v519_v45 = vpack.c.b16 %v517_v32, %v516_v27  ;;  %v450_v46 = vunpack.c.l.b16 %v321_v33  ;;  %v325_v49 = vpack.c.bf16 %v293_v34, %v293_v34  ;;  %v308_v1 = vld [vmem:[%s1260_s21 + $0xb8] sm:$0x7]  ;;  %v315_v6 = vld [vmem:[%s1260_s21 + $0xf0] sm:$0xff]  ;;  %v310_v23 = vld [vmem:[%s1260_s21 + $0xc8] sm:$0xff] }
  0x17   : > { %v495_v44 = vsel %vm423_vm0, %v487_v31, 0  ;;  %471 = vmatpush.bf16.xpose.msra.mxu1 %v463_v43  ;;  %v421_v47 = vpack.c.b16 %v418_v38, %v417_v37  ;;  %v451_v48 = vunpack.c.l.b16 %v322_v39  ;;  %v326_v50 = vpack.c.bf16 %v294_v35, %v294_v35  ;;  %v316_v7 = vld [vmem:[%s1260_s21 + $0xf8] sm:$0x7]  ;;  %v303_v16 = vld [vmem:[%s1260_s21 + $0x90] sm:$0xff]  ;;  %v305_v28 = vld [vmem:[%s1260_s21 + $0xa0] sm:$0xff] }
  0x18   : > { %503 = vmatpush.bf16.xpose.msra.mxu2 %v495_v44  ;;  %v527_v53 = vsel %vm423_vm0, %v519_v45, 0  ;;  %v329_v54 = vpack.c.bf16 %v297_v40, %v297_v40  ;;  %v330_v55 = vpack.c.bf16 %v298_v41, %v298_v41  ;;  %v277_v56 = vpack.c.bf16 %v1288_v42, %v1288_v42  ;;  %v304_v17 = vld [vmem:[%s1260_s21 + $0x98] sm:$0x7]  ;;  %v306_v37 = vld [vmem:[%s1260_s21 + $0xa8] sm:$0xff]  ;;  %v313_v43 = vld [vmem:[%s1260_s21 + $0xe0] sm:$0xff] }
  0x19   : > { %535 = vmatpush.bf16.xpose.msra.mxu3 %v527_v53  ;;  %v428_v59 = vsel %vm423_vm0, %v421_v47, 0  ;;  %v454_v60 = vpack.c.b16 %v451_v48, %v450_v46  ;;  %v482_v61 = vunpack.c.l.b16 %v325_v49  ;;  %v483_v62 = vunpack.c.l.b16 %v326_v50  ;;  %v314_v44 = vld [vmem:[%s1260_s21 + $0xe8] sm:$0xff]  ;;  %v301_v45 = vld [vmem:[%s1260_s21 + $0x80] sm:$0xff] }
  0x1a   : > { %v514_v2 = vunpack.c.l.b16 %v329_v54  ;;  %v515_v3 = vunpack.c.l.b16 %v330_v55  ;;  %v278_v4 = vpack.c.bf16 %v1293_v51, %v1293_v51  ;;  %v279_v5 = vpack.c.bf16 %v1296_v52, %v1296_v52  ;;  %v302_v50 = vld [vmem:[%s1260_s21 + $0x88] sm:$0xff] }
  0x1b   : > { %v460_v8 = vsel %vm423_vm0, %v454_v60, 0  ;;  %v486_v9 = vpack.c.b16 %v483_v62, %v482_v61  ;;  %v280_v10 = vpack.c.bf16 %v1302_v57, %v1302_v57  ;;  %v343_v11 = vpack.c.bf16 %v311_v58, %v311_v58  ;;  %v275_v57 = vld [vmem:[%s1280_s25 + $0x30] sm:$0x7f] }
  0x1c   : > { %v518_v12 = vpack.c.b16 %v515_v3, %v514_v2  ;;  %v344_v13 = vpack.c.bf16 %v312_v63, %v312_v63  ;;  %v339_v14 = vpack.c.bf16 %v307_v0, %v307_v0  ;;  %v340_v15 = vpack.c.bf16 %v308_v1, %v308_v1 }
  0x1d   : > { %v492_v18 = vsel %vm423_vm0, %v486_v9, 0  ;;  %v612_v19 = vunpack.c.l.b16 %v343_v11  ;;  %v347_v20 = vpack.c.bf16 %v315_v6, %v315_v6  ;;  %v348_v21 = vpack.c.bf16 %v316_v7, %v316_v7  ;;  %v274_v9 = vld [vmem:[%s1280_s25 + $0x28] sm:$0x7f]  ;;  %v273_v11 = vld [vmem:[%s1280_s25 + $0x20] sm:$0x7f] }
  0x1e   : > { %440 = vmatpush.bf16.xpose.msra.mxu0 %v428_v59  ;;  %v524_v24 = vsel %vm423_vm0, %v518_v12, 0  ;;  %v613_v25 = vunpack.c.l.b16 %v344_v13  ;;  %v580_v26 = vunpack.c.l.b16 %v339_v14  ;;  %v581_v27 = vunpack.c.l.b16 %v340_v15 }
  0x1f   : > { %472 = vmatpush.bf16.xpose.msra.mxu1 %v460_v8  ;;  %v644_v29 = vunpack.c.l.b16 %v347_v20  ;;  %v645_v30 = vunpack.c.l.b16 %v348_v21  ;;  %v335_v31 = vpack.c.bf16 %v303_v16, %v303_v16  ;;  %v336_v32 = vpack.c.bf16 %v304_v17, %v304_v17  ;;  %v678_v17 = vld [vmem:[%s261_s29] sm:$0x7f] }
  0x20   : > { %504 = vmatpush.bf16.xpose.msra.mxu2 %v492_v18  ;;  %v615_v33 = vpack.c.b16 %v613_v25, %v612_v19  ;;  %v583_v34 = vpack.c.b16 %v581_v27, %v580_v26  ;;  %v341_v35 = vpack.c.bf16 %v309_v22, %v309_v22  ;;  %v342_v36 = vpack.c.bf16 %v310_v23, %v310_v23 }
  0x21   : > { %536 = vmatpush.bf16.xpose.msra.mxu3 %v524_v24  ;;  %v647_v38 = vpack.c.b16 %v645_v30, %v644_v29  ;;  %v548_v39 = vunpack.c.l.b16 %v335_v31  ;;  %v549_v40 = vunpack.c.l.b16 %v336_v32  ;;  %v337_v41 = vpack.c.bf16 %v305_v28, %v305_v28 }
  0x22   : > { %v623_v46 = vsel %vm423_vm0, %v615_v33, 0  ;;  %v591_v47 = vsel %vm423_vm0, %v583_v34, 0  ;;  %v610_v48 = vunpack.c.l.b16 %v341_v35  ;;  %v611_v49 = vunpack.c.l.b16 %v342_v36 }
  0x23   : > { %v655_v53 = vsel %vm423_vm0, %v647_v38, 0  ;;  %v551_v54 = vpack.c.b16 %v549_v40, %v548_v39  ;;  %v338_v55 = vpack.c.bf16 %v306_v37, %v306_v37  ;;  %v578_v58 = vunpack.c.l.b16 %v337_v41 }
  0x24   : > { %v614_v59 = vpack.c.b16 %v611_v49, %v610_v48  ;;  %v345_v60 = vpack.c.bf16 %v313_v43, %v313_v43  ;;  %v346_v61 = vpack.c.bf16 %v314_v44, %v314_v44  ;;  %v333_v62 = vpack.c.bf16 %v301_v45, %v301_v45 }
  0x25   : > { %1146 = vmatmul.msk.bf16.vlgmr.msra.gmra.mxu0 %vm423_vm0, %v277_v56  ;;  %v559_v63 = vsel %vm423_vm0, %v551_v54, 0  ;;  %v579_v0 = vunpack.c.l.b16 %v338_v55  ;;  %v334_v1 = vpack.c.bf16 %v302_v50, %v302_v50  ;;  %v282_v12 = vpack.c.bf16 %v274_v9, %v274_v9 }
  0x26   : > { %1147 = vmatmul.msk.bf16.vlgmr.msra.gmra.mxu1 %vm423_vm0, %v278_v4  ;;  %v642_v2 = vunpack.c.l.b16 %v345_v60  ;;  %v643_v3 = vunpack.c.l.b16 %v346_v61  ;;  %v546_v42 = vunpack.c.l.b16 %v333_v62  ;;  %567 = vmatpush.bf16.xpose.msrb.mxu0 %v559_v63  ;;  %v620_v51 = vsel %vm423_vm0, %v614_v59, 0 }
  0x27   : > { %599 = vmatpush.bf16.xpose.msrb.mxu1 %v591_v47  ;;  %1148 = vmatmul.msk.bf16.vlgmr.msra.gmra.mxu2 %vm423_vm0, %v279_v5  ;;  %v582_v56 = vpack.c.b16 %v579_v0, %v578_v58  ;;  %v547_v6 = vunpack.c.l.b16 %v334_v1  ;;  %v283_v13 = vpack.c.bf16 %v275_v57, %v275_v57  ;;  %v281_v14 = vpack.c.bf16 %v273_v11, %v273_v11 }
  0x28   : > { %631 = vmatpush.bf16.xpose.msrb.mxu2 %v623_v46  ;;  %1149 = vmatmul.msk.bf16.vlgmr.msra.gmra.mxu3 %vm423_vm0, %v280_v10  ;;  %v646_v52 = vpack.c.b16 %v643_v3, %v642_v2  ;;  %v276_v10 = vld [vmem:[%s1280_s25 + $0x38] sm:$0x7f] }
  0x29   : > { %663 = vmatpush.bf16.xpose.msrb.mxu3 %v655_v53  ;;  %v588_v4 = vsel %vm423_vm0, %v582_v56, 0  ;;  %v550_v5 = vpack.c.b16 %v547_v6, %v546_v42  ;;  %v284_v15 = vpack.c.bf16 %v276_v10, %v276_v10 }
  0x2a   : > { %v652_v7 = vsel %vm423_vm0, %v646_v52, 0 }
  0x2b   : > { %v556_v8 = vsel %vm423_vm0, %v550_v5, 0 }
  0x2e   : > { %568 = vmatpush.bf16.xpose.msrb.mxu0 %v556_v8 }
  0x2f   : > { %600 = vmatpush.bf16.xpose.msrb.mxu1 %v588_v4 }
  0x30   : > { %632 = vmatpush.bf16.xpose.msrb.mxu2 %v620_v51 }
  0x31   : > { %664 = vmatpush.bf16.xpose.msrb.mxu3 %v652_v7 }
  0x35   : > { %1150 = vmatmul.msk.bf16.vlgmr.msrb.gmra.mxu0 %vm423_vm0, %v281_v14 }
  0x36   : > { %1151 = vmatmul.msk.bf16.vlgmr.msrb.gmra.mxu1 %vm423_vm0, %v282_v12 }
  0x37   : > { %1152 = vmatmul.msk.bf16.vlgmr.msrb.gmra.mxu2 %vm423_vm0, %v283_v13 }
  0x38   : > { %1153 = vmatmul.msk.bf16.vlgmr.msrb.gmra.mxu3 %vm423_vm0, %v284_v15 }
  0xa2   : > { %v442_v16 = vpop.f32.mrf.mxu0 }
  0xa3   : > { %v670_v18 = vmul.f32 0.17677669, %v442_v16  ;;  %v474_v19 = vpop.f32.mrf.mxu1 }
  0xa4   : > { %v671_v20 = vmul.f32 0.17677669, %v474_v19 }
  0xa5   : > { %v679_v21 = vadd.f32 %v678_v17, %v670_v18 }
  0xa6   : > { %v680_v24 = vadd.f32 %v678_v17, %v671_v20 }
  0xa7   : > { %v688_v22 = vsel %vm687_vm1, %v679_v21, -inf }
  0xa8   : > { %689 = vmax.xlane.f32.xlu1 %v688_v22  ;;  %v691_v31 = vsel %vm687_vm1, %v680_v24, -inf }
  0xaa   : > { %v506_v23 = vpop.f32.mrf.mxu2  ;;  %v444_v26 = vpop.f32.mrf.mxu0 }
  0xab   : > { %v672_v25 = vmul.f32 0.17677669, %v506_v23  ;;  %v538_v27 = vpop.f32.mrf.mxu3  ;;  %v476_v28 = vpop.f32.mrf.mxu1 }
  0xac   : > { %v673_v29 = vmul.f32 0.17677669, %v538_v27 }
  0xad   : > { %v681_v30 = vadd.f32 %v678_v17, %v672_v25 }
  0xae   : > { %v682_v33 = vadd.f32 %v678_v17, %v673_v29 }
  0xaf   : > { %v694_v32 = vsel %vm687_vm1, %v681_v30, -inf }
  0xb0   : > { %695 = vmax.xlane.f32.xlu0 %v694_v32  ;;  %692 = vmax.xlane.f32.xlu1 %v691_v31  ;;  %v697_v38 = vsel %vm687_vm1, %v682_v33, -inf }
  0xb2   : > { %v508_v34 = vpop.f32.mrf.mxu2  ;;  %v570_v39 = vpop.f32.mrf.mxu0 }
  0xb3   : > { %v540_v35 = vpop.f32.mrf.mxu3  ;;  %v602_v36 = vpop.f32.mrf.mxu1  ;;  %v674_v40 = vmul.f32 0.17677669, %v570_v39  ;;  %v352_v34 = vld [vmem:[%s1412_s6 + $0x18] sm:$0x7] }
  0xb4   : > { %v675_v37 = vmul.f32 0.17677669, %v602_v36  ;;  %v384_v36 = vpack.c.bf16 %v352_v34, %v352_v34  ;;  %v375_v34 = vld [vmem:[%s1412_s6 + $0xd0] sm:$0xff] }
  0xb5   : > { %v683_v44 = vadd.f32 %v678_v17, %v674_v40  ;;  %v1215_v40 = vmov 65535  }
  0xb6   : > { %v684_v41 = vadd.f32 %v678_v17, %v675_v37 }
  0xb7   : > { %v700_v53 = vsel %vm687_vm1, %v683_v44, -inf }
  0xb8   : > { %698 = vmax.xlane.f32.xlu0 %v697_v38  ;;  %v703_v43 = vsel %vm687_vm1, %v684_v41, -inf  ;;  %v791_v38 = vunpack.c.l.b16 %v384_v36  ;;  %v367_v36 = vld [vmem:[%s1412_s6 + $0x90] sm:$0xff] }
  0xb9   : > { %704 = vmax.xlane.f32.xlu1 %v703_v43 }
  0xba   : > { %v634_v45 = vpop.f32.mrf.mxu2  ;;  %v572_v54 = vpop.f32.mrf.mxu0 }
  0xbb   : > { %v676_v46 = vmul.f32 0.17677669, %v634_v45  ;;  %v666_v47 = vpop.f32.mrf.mxu3  ;;  %v604_v48 = vpop.f32.mrf.mxu1  ;;  %v350_v45 = vld [vmem:[%s1412_s6 + $0x8] sm:$0xff] }
  0xbc   : > { %v677_v49 = vmul.f32 0.17677669, %v666_v47 }
  0xbd   : > { %v685_v50 = vadd.f32 %v678_v17, %v676_v46  ;;  %v359_v46 = vld [vmem:[%s1412_s6 + $0x50] sm:$0xff] }
  0xbe   : > { %v686_v58 = vadd.f32 %v678_v17, %v677_v49  ;;  %v382_v49 = vpack.c.bf16 %v350_v45, %v350_v45 }
  0xbf   : > { %v706_v55 = vsel %vm687_vm1, %v685_v50, -inf }
  0xc0   : > { %707 = vmax.xlane.f32.xlu2 %v706_v55  ;;  %701 = vmax.xlane.f32.xlu0 %v700_v53  ;;  %v709_v61 = vsel %vm687_vm1, %v686_v58, -inf  ;;  %v391_v53 = vpack.c.bf16 %v359_v46, %v359_v46  ;;  %v399_v46 = vpack.c.bf16 %v367_v36, %v367_v36  ;;  %v370_v36 = vld [vmem:[%s1412_s6 + $0xa8] sm:$0xff] }
  0xc2   : > { %v636_v59 = vpop.f32.mrf.mxu2 }
  0xc3   : > { %v668_v60 = vpop.f32.mrf.mxu3  ;;  %v855_v59 = vunpack.c.l.b16 %v391_v53 }
  0xc8   : > { %710 = vmax.xlane.f32.xlu2 %v709_v61 }
 0x11b   : > { %v690_v62 = vpop.xlane.xlu1 %689 }
 0x11c   : > { %v712_v63 = vsub.f32 %v679_v21, %v690_v62 }
 0x11e   : > { %v720_v0 = vmul.f32 1.442695, %v712_v63  ;;  %v357_v63 = vld [vmem:[%s1412_s6 + $0x40] sm:$0xff] }
 0x120   : > { %1175 = vpow2.f32 %v720_v0  ;;  %v358_v0 = vld [vmem:[%s1412_s6 + $0x48] sm:$0xff] }
 0x123   : > { %v696_v1 = vpop.xlane.xlu0 %695  ;;  %v693_v3 = vpop.xlane.xlu1 %692 }
 0x124   : > { %v714_v2 = vsub.f32 %v681_v30, %v696_v1  ;;  %v713_v56 = vsub.f32 %v680_v24, %v693_v3  ;;  %v389_v1 = vpack.c.bf16 %v357_v63, %v357_v63 }
 0x126   : > { %v724_v42 = vmul.f32 1.442695, %v714_v2  ;;  %v1375_v6 = vpop.eup %1175  ;;  %v722_v52 = vmul.f32 1.442695, %v713_v56  ;;  %v390_v2 = vpack.c.bf16 %v358_v0, %v358_v0  ;;  %v364_v56 = vld [vmem:[%s1412_s6 + $0x78] sm:$0x7] }
 0x127   : > { %v736_v51 = vsel %vm687_vm1, %v1375_v6, 0.0 }
 0x128   : > { %1177 = vpow2.f32 %v724_v42  ;;  %737 = vadd.xlane.f32.xlu1 %v736_v51  ;;  %v363_v42 = vld [vmem:[%s1412_s6 + $0x70] sm:$0xff] }
 0x129   : > { %1179 = vpow2.f32 %v722_v52  ;;  %v355_v51 = vld [vmem:[%s1412_s6 + $0x30] sm:$0xff]  ;;  %v395_v52 = vpack.c.bf16 %v363_v42, %v363_v42 }
 0x12a   : > { %v379_v42 = vld [vmem:[%s1412_s6 + $0xf0] sm:$0xff] }
 0x12b   : > { %v699_v4 = vpop.xlane.xlu0 %698 }
 0x12c   : > { %v715_v5 = vsub.f32 %v682_v33, %v699_v4  ;;  %v705_v57 = vpop.xlane.xlu1 %704  ;;  %v351_v33 = vld [vmem:[%s1412_s6 + $0x10] sm:$0xff]  ;;  %v396_v4 = vpack.c.bf16 %v364_v56, %v364_v56  ;;  %v380_v56 = vld [vmem:[%s1412_s6 + $0xf8] sm:$0x7] }
 0x12d   : > { %v717_v16 = vsub.f32 %v684_v41, %v705_v57  ;;  %v383_v35 = vpack.c.bf16 %v351_v33, %v351_v33  ;;  %v801_v41 = vsel %vm799_vm2, 4294967295, %v1215_v40  ;;  %v387_v57 = vpack.c.bf16 %v355_v51, %v355_v51 }
 0x12e   : > { %v1379_v7 = vpop.eup %1177  ;;  %v726_v8 = vmul.f32 1.442695, %v715_v5  ;;  %v1416_v43 = vsel %vm800_vm3, %v801_v41, 0  ;;  %v853_v5 = vunpack.c.l.b16 %v389_v1  ;;  %v407_v40 = vpack.c.bf16 %v375_v34, %v375_v34  ;;  %v368_v41 = vld [vmem:[%s1412_s6 + $0x98] sm:$0x7]  ;;  %v374_v1 = vld [vmem:[%s1412_s6 + $0xc8] sm:$0xff] }
 0x12f   : > { %v742_v9 = vsel %vm687_vm1, %v1379_v7, 0.0  ;;  %v1383_v12 = vpop.eup %1179  ;;  %v730_v21 = vmul.f32 1.442695, %v717_v16  ;;  %v790_v37 = vunpack.c.l.b16 %v383_v35  ;;  %v825_v16 = vunpack.c.l.b16 %v387_v57  ;;  %v376_v35 = vld [vmem:[%s1412_s6 + $0xd8] sm:$0x7] }
 0x130   : > { %1181 = vpow2.f32 %v726_v8  ;;  %743 = vadd.xlane.f32.xlu2 %v742_v9  ;;  %v739_v19 = vsel %vm687_vm1, %v1383_v12, 0.0  ;;  %v356_v8 = vld [vmem:[%s1412_s6 + $0x38] sm:$0x7]  ;;  %v854_v9 = vunpack.c.l.b16 %v390_v2  ;;  %v408_v45 = vpack.c.bf16 %v376_v35, %v376_v35 }
 0x131   : > { %v793_v39 = vpack.c.b16 %v791_v38, %v790_v37 }
 0x132   : > { %v976_v53 = vunpack.c.l.b16 %v408_v45 }
 0x133   : > { %v708_v11 = vpop.xlane.xlu2 %707  ;;  %v702_v10 = vpop.xlane.xlu0 %701  ;;  %v804_v47 = vand.u32 %v1416_v43, %v793_v39 }
 0x134   : > { %v718_v13 = vsub.f32 %v685_v50, %v708_v11  ;;  %v716_v14 = vsub.f32 %v683_v44, %v702_v10  ;;  %v349_v44 = vld [vmem:[%s1412_s6] sm:$0xff]  ;;  %v360_v50 = vld [vmem:[%s1412_s6 + $0x58] sm:$0x7]  ;;  %v388_v11 = vpack.c.bf16 %v356_v8, %v356_v8  ;;  %v885_v10 = vunpack.c.l.b16 %v395_v52 }
 0x135   : > { %v381_v48 = vpack.c.bf16 %v349_v44, %v349_v44  ;;  %v392_v54 = vpack.c.bf16 %v360_v50, %v360_v50  ;;  %812 = vmatpush.bf16.msra.mxu0 %v804_v47  ;;  %v400_v47 = vpack.c.bf16 %v368_v41, %v368_v41  ;;  %v406_v52 = vpack.c.bf16 %v374_v1, %v374_v1 }
 0x136   : > { %v1385_v15 = vpop.eup %1181  ;;  %v732_v17 = vmul.f32 1.442695, %v718_v13  ;;  %v728_v18 = vmul.f32 1.442695, %v716_v14  ;;  %v886_v13 = vunpack.c.l.b16 %v396_v4  ;;  %v857_v14 = vpack.c.b16 %v854_v9, %v853_v5  ;;  %v371_v4 = vld [vmem:[%s1412_s6 + $0xb0] sm:$0xff] }
 0x137   : > { %v745_v20 = vsel %vm687_vm1, %v1385_v15, 0.0  ;;  %v788_v55 = vunpack.c.l.b16 %v381_v48  ;;  %v856_v60 = vunpack.c.l.b16 %v392_v54  ;;  %v915_v54 = vunpack.c.l.b16 %v399_v46 }
 0x138   : > { %1183 = vpow2.f32 %v732_v17  ;;  %740 = vadd.xlane.f32.xlu2 %v739_v19  ;;  %746 = vadd.xlane.f32.xlu0 %v745_v20  ;;  %v826_v17 = vunpack.c.l.b16 %v388_v11  ;;  %v361_v20 = vld [vmem:[%s1412_s6 + $0x60] sm:$0xff]  ;;  %v411_v5 = vpack.c.bf16 %v379_v42, %v379_v42  ;;  %v412_v8 = vpack.c.bf16 %v380_v56, %v380_v56  ;;  %v372_v11 = vld [vmem:[%s1412_s6 + $0xb8] sm:$0x7] }
 0x139   : > { %1185 = vpow2.f32 %v728_v18  ;;  %v858_v62 = vpack.c.b16 %v856_v60, %v855_v59  ;;  %v888_v18 = vpack.c.b16 %v886_v13, %v885_v10  ;;  %v365_v60 = vld [vmem:[%s1412_s6 + $0x80] sm:$0xff]  ;;  %v974_v13 = vunpack.c.l.b16 %v406_v52 }
 0x13a   : > { %1187 = vpow2.f32 %v730_v21  ;;  %v828_v19 = vpack.c.b16 %v826_v17, %v825_v16  ;;  %v362_v21 = vld [vmem:[%s1412_s6 + $0x68] sm:$0xff]  ;;  %v397_v63 = vpack.c.bf16 %v365_v60, %v365_v60  ;;  %v404_v16 = vpack.c.bf16 %v372_v11, %v372_v11 }
 0x13b   : > { %v711_v22 = vpop.xlane.xlu2 %710  ;;  %v864_v3 = vand.u32 %v858_v62, %v1416_v43  ;;  %v373_v62 = vld [vmem:[%s1412_s6 + $0xc0] sm:$0xff] }
 0x13c   : > { %v719_v23 = vsub.f32 %v686_v58, %v711_v22  ;;  %v789_v58 = vunpack.c.l.b16 %v382_v49  ;;  %v353_v22 = vld [vmem:[%s1412_s6 + $0x20] sm:$0xff]  ;;  %v975_v49 = vunpack.c.l.b16 %v407_v40  ;;  %v405_v2 = vpack.c.bf16 %v373_v62, %v373_v62 }
 0x13d   : > { %872 = vmatpush.bf16.msra.mxu2 %v864_v3  ;;  %v913_v9 = vunpack.c.l.b16 %v397_v63 }
 0x13e   : > { %v1391_v24 = vpop.eup %1183  ;;  %v734_v25 = vmul.f32 1.442695, %v719_v23  ;;  %v792_v61 = vpack.c.b16 %v789_v58, %v788_v55  ;;  %v894_v23 = vand.u32 %v888_v18, %v1416_v43  ;;  %v916_v55 = vunpack.c.l.b16 %v400_v47 }
 0x13f   : > { %v1393_v26 = vpop.eup %1185  ;;  %v754_v27 = vsel %vm687_vm1, %v1391_v24, 0.0  ;;  %v978_v58 = vpack.c.b16 %v976_v53, %v975_v49  ;;  %v973_v10 = vunpack.c.l.b16 %v405_v2  ;;  %v1005_v18 = vunpack.c.l.b16 %v411_v5 }
 0x140   : > { %1189 = vpow2.f32 %v734_v25  ;;  %755 = vadd.xlane.f32.xlu0 %v754_v27  ;;  %v748_v28 = vsel %vm687_vm1, %v1393_v26, 0.0  ;;  %v1399_v29 = vpop.eup %1187  ;;  %813 = vmatpush.bf16.msra.mxu0 %v792_v61  ;;  %v393_v25 = vpack.c.bf16 %v361_v20, %v361_v20  ;;  %v394_v27 = vpack.c.bf16 %v362_v21, %v362_v21  ;;  %v366_v61 = vld [vmem:[%s1412_s6 + $0x88] sm:$0xff] }
 0x141   : > { %749 = vadd.xlane.f32.xlu2 %v748_v28  ;;  %v751_v32 = vsel %vm687_vm1, %v1399_v29, 0.0  ;;  %873 = vmatpush.bf16.msra.mxu2 %v857_v14  ;;  %v354_v28 = vld [vmem:[%s1412_s6 + $0x28] sm:$0xff]  ;;  %v918_v59 = vpack.c.b16 %v916_v55, %v915_v54  ;;  %v398_v0 = vpack.c.bf16 %v366_v61, %v366_v61  ;;  %v984_v3 = vand.u32 %v978_v58, %v1416_v43 }
 0x142   : > { %v386_v33 = vpack.c.bf16 %v354_v28, %v354_v28  ;;  %902 = vmatpush.bf16.msra.mxu3 %v894_v23  ;;  %v883_v37 = vunpack.c.l.b16 %v393_v25  ;;  %v884_v38 = vunpack.c.l.b16 %v394_v27  ;;  %v403_v14 = vpack.c.bf16 %v371_v4, %v371_v4  ;;  %v377_v28 = vld [vmem:[%s1412_s6 + $0xe0] sm:$0xff] }
 0x143   : > { %v924_v51 = vand.u32 %v918_v59, %v1416_v43  ;;  %v914_v57 = vunpack.c.l.b16 %v398_v0  ;;  %v977_v21 = vpack.c.b16 %v974_v13, %v973_v10  ;;  %v946_v23 = vunpack.c.l.b16 %v404_v16 }
 0x144   : > { %v824_v44 = vunpack.c.l.b16 %v386_v33  ;;  %v887_v48 = vpack.c.b16 %v884_v38, %v883_v37  ;;  %v409_v34 = vpack.c.bf16 %v377_v28, %v377_v28 }
 0x145   : > { %992 = vmatpush.bf16.msrb.mxu2 %v984_v3  ;;  %932 = vmatpush.bf16.msrb.mxu0 %v924_v51  ;;  %v917_v20 = vpack.c.b16 %v914_v57, %v913_v9 }
 0x146   : > { %v1401_v30 = vpop.eup %1189  ;;  %903 = vmatpush.bf16.msra.mxu3 %v887_v48  ;;  %v1003_v40 = vunpack.c.l.b16 %v409_v34 }
 0x147   : > { %v757_v31 = vsel %vm687_vm1, %v1401_v30, 0.0 }
 0x148   : > { %758 = vadd.xlane.f32.xlu1 %v757_v31  ;;  %752 = vadd.xlane.f32.xlu0 %v751_v32  ;;  %v385_v31 = vpack.c.bf16 %v353_v22, %v353_v22  ;;  %v834_v32 = vand.u32 %v828_v19, %v1416_v43  ;;  %v1006_v19 = vunpack.c.l.b16 %v412_v8  ;;  %v945_v22 = vunpack.c.l.b16 %v403_v14 }
 0x149   : > { %933 = vmatpush.bf16.msrb.mxu0 %v917_v20  ;;  %993 = vmatpush.bf16.msrb.mxu2 %v977_v21 }
 0x14a   : > { %v823_v39 = vunpack.c.l.b16 %v385_v31  ;;  %842 = vmatpush.bf16.msra.mxu1 %v834_v32  ;;  %v1008_v25 = vpack.c.b16 %v1006_v19, %v1005_v18  ;;  %v948_v27 = vpack.c.b16 %v946_v23, %v945_v22  ;;  %v378_v31 = vld [vmem:[%s1412_s6 + $0xe8] sm:$0xff]  ;;  %v369_v32 = vld [vmem:[%s1412_s6 + $0xa0] sm:$0xff] }
 0x14b   : > { %v410_v35 = vpack.c.bf16 %v378_v31, %v378_v31  ;;  %v401_v37 = vpack.c.bf16 %v369_v32, %v369_v32 }
 0x14c   : > { %v827_v50 = vpack.c.b16 %v824_v44, %v823_v39  ;;  %v1014_v33 = vand.u32 %v1008_v25, %v1416_v43  ;;  %v954_v38 = vand.u32 %v948_v27, %v1416_v43  ;;  %v402_v39 = vpack.c.bf16 %v370_v36, %v370_v36 }
 0x14d   : > { %v1004_v41 = vunpack.c.l.b16 %v410_v35  ;;  %v943_v44 = vunpack.c.l.b16 %v401_v37 }
 0x14e   : > { %843 = vmatpush.bf16.msra.mxu1 %v827_v50  ;;  %1022 = vmatpush.bf16.msrb.mxu3 %v1014_v33  ;;  %v944_v47 = vunpack.c.l.b16 %v402_v39 }
 0x14f   : > { %v1007_v49 = vpack.c.b16 %v1004_v41, %v1003_v40 }
 0x150   : > { %v947_v50 = vpack.c.b16 %v944_v47, %v943_v44 }
 0x152   : > { %962 = vmatpush.bf16.msrb.mxu1 %v954_v38  ;;  %1023 = vmatpush.bf16.msrb.mxu3 %v1007_v49 }
 0x156   : > { %963 = vmatpush.bf16.msrb.mxu1 %v947_v50 }
 0x19b   : > { %v738_v17 = vpop.xlane.xlu1 %737 }
 0x19c   : > { %1191 = vrcp.f32 %v738_v17 }
 0x1a2   : > { %v1192_v45 = vpop.eup %1191 }
 0x1a3   : > { %v744_v46 = vpop.xlane.xlu2 %743  ;;  %v768_v48 = vmul.f32 %v1192_v45, %v1375_v6 }
 0x1a4   : > { %1193 = vrcp.f32 %v744_v46 }
 0x1a5   : > { %v776_v53 = vpack.c.bf16 %v768_v48, %v768_v48 }
 0x1a7   : > { %1154 = vmatmul.msk.bf16.vlgmr.msra.gmra.mxu0 %vm795_vm4, %v776_v53 }
 0x1aa   : > { %v1194_v43 = vpop.eup %1193 }
 0x1ab   : > { %v770_v54 = vmul.f32 %v1194_v43, %v1379_v7  ;;  %v741_v55 = vpop.xlane.xlu2 %740  ;;  %v747_v58 = vpop.xlane.xlu0 %746 }
 0x1ac   : > { %1195 = vrcp.f32 %v741_v55 }
 0x1ad   : > { %v778_v59 = vpack.c.bf16 %v770_v54, %v770_v54  ;;  %1197 = vrcp.f32 %v747_v58 }
 0x1af   : > { %1156 = vmatmul.msk.bf16.vlgmr.msra.gmra.mxu2 %vm795_vm4, %v778_v59 }
 0x1b2   : > { %v1196_v6 = vpop.eup %1195 }
 0x1b3   : > { %v1198_v60 = vpop.eup %1197  ;;  %v769_v61 = vmul.f32 %v1196_v6, %v1383_v12  ;;  %v756_v62 = vpop.xlane.xlu0 %755 }
 0x1b4   : > { %v771_v63 = vmul.f32 %v1198_v60, %v1385_v15  ;;  %v750_v0 = vpop.xlane.xlu2 %749  ;;  %1199 = vrcp.f32 %v756_v62 }
 0x1b5   : > { %v777_v1 = vpack.c.bf16 %v769_v61, %v769_v61  ;;  %1201 = vrcp.f32 %v750_v0 }
 0x1b6   : > { %v779_v2 = vpack.c.bf16 %v771_v63, %v771_v63 }
 0x1b7   : > { %1155 = vmatmul.msk.bf16.vlgmr.msra.gmra.mxu1 %vm795_vm4, %v777_v1 }
 0x1b8   : > { %1157 = vmatmul.msk.bf16.vlgmr.msra.gmra.mxu3 %vm795_vm4, %v779_v2 }
 0x1ba   : > { %v1200_v7 = vpop.eup %1199 }
 0x1bb   : > { %v1202_v3 = vpop.eup %1201  ;;  %v774_v42 = vmul.f32 %v1200_v7, %v1391_v24  ;;  %v759_v56 = vpop.xlane.xlu1 %758 }
 0x1bc   : > { %v753_v51 = vpop.xlane.xlu0 %752  ;;  %v772_v12 = vmul.f32 %v1202_v3, %v1393_v26  ;;  %1203 = vrcp.f32 %v759_v56 }
 0x1bd   : > { %v782_v15 = vpack.c.bf16 %v774_v42, %v774_v42  ;;  %1205 = vrcp.f32 %v753_v51 }
 0x1be   : > { %v780_v52 = vpack.c.bf16 %v772_v12, %v772_v12 }
 0x1bf   : > { %1160 = vmatmul.msk.bf16.vlgmr.msrb.gmra.mxu2 %vm795_vm4, %v782_v15 }
 0x1c0   : > { %1158 = vmatmul.msk.bf16.vlgmr.msrb.gmra.mxu0 %vm795_vm4, %v780_v52 }
 0x1c2   : > { %v1204_v4 = vpop.eup %1203 }
 0x1c3   : > { %v1206_v5 = vpop.eup %1205  ;;  %v775_v8 = vmul.f32 %v1204_v4, %v1401_v30 }
 0x1c4   : > { %v773_v9 = vmul.f32 %v1206_v5, %v1399_v29 }
 0x1c5   : > { %v783_v24 = vpack.c.bf16 %v775_v8, %v775_v8 }
 0x1c6   : > { %v781_v57 = vpack.c.bf16 %v773_v9, %v773_v9 }
 0x1c8   : > { %1159 = vmatmul.msk.bf16.vlgmr.msrb.gmra.mxu1 %vm795_vm4, %v781_v57  ;;  %1161 = vmatmul.msk.bf16.vlgmr.msrb.gmra.mxu3 %vm795_vm4, %v783_v24 }
 0x224   : > { %v815_v26 = vpop.f32.mrf.mxu0 }
 0x225   : > { %1030 = vst.msk [vmem:[%s266_s9] sm:$0x7f] %vm1029_vm5, %v815_v26 }
 0x22c   : > { %v817_v11 = vpop.f32.mrf.mxu0 }
 0x232   : > { %v875_v10 = vpop.f32.mrf.mxu2 }
 0x233   : > { %1032 = vst.msk [vmem:[%s266_s9 + $0x10] sm:$0x7f] %vm1029_vm5, %v875_v10 }
 0x234   : > { %v845_v29 = vpop.f32.mrf.mxu1 }
 0x235   : > { %1031 = vst.msk [vmem:[%s266_s9 + $0x8] sm:$0x7f] %vm1029_vm5, %v845_v29 }
 0x23a   : > { %v877_v30 = vpop.f32.mrf.mxu2 }
 0x23b   : > { %v905_v13 = vpop.f32.mrf.mxu3 }
 0x23c   : > { %1033 = vst.msk [vmem:[%s266_s9 + $0x18] sm:$0x7f] %vm1029_vm5, %v905_v13  ;;  %v847_v14 = vpop.f32.mrf.mxu1 }
 0x23d   : > { %v935_v16 = vpop.f32.mrf.mxu0 }
 0x23e   : > { %1034 = vst.msk [vmem:[%s266_s9 + $0x20] sm:$0x7f] %vm1029_vm5, %v935_v16 }
 0x242   : > { %v995_v17 = vpop.f32.mrf.mxu2 }
 0x243   : > { %v907_v18 = vpop.f32.mrf.mxu3  ;;  %1036 = vst.msk [vmem:[%s266_s9 + $0x30] sm:$0x7f] %vm1029_vm5, %v995_v17 }
 0x245   : > { %v937_v19 = vpop.f32.mrf.mxu0  ;;  %v965_v20 = vpop.f32.mrf.mxu1 }
 0x246   : > { %1035 = vst.msk [vmem:[%s266_s9 + $0x28] sm:$0x7f] %vm1029_vm5, %v965_v20 }
 0x24a   : > { %v997_v21 = vpop.f32.mrf.mxu2 }
 0x24b   : > { %v1025_v22 = vpop.f32.mrf.mxu3 }
 0x24c   : > { %1037 = vst.msk [vmem:[%s266_s9 + $0x38] sm:$0x7f] %vm1029_vm5, %v1025_v22 }
 0x24d   : > { %v967_v23 = vpop.f32.mrf.mxu1 }
 0x253   : > { %v1027_v25 = vpop.f32.mrf.mxu3 }
 0x254 PF: > { %s14_s15 = sadd.s32 1, %s1213_s15  }
 0x255   : > { %p11_p5 = scmp.ge.s32.totalorder %s14_s15, 4  }
 0x257   :  { %13 = sbr.rel (!%p11_p5) target bundleno = 1 (0x1), region = 75 }

// kernel: loss_fn.114
= control target key start
LH: loop header
LB: loop body
LE: loop exit
PB: predicated region body
PF: predicated region fallthrough
CT: control target
= control target key end

     0   :  { %vm38_vm0 = vcmask 261120   ;;  %s115_s1 = inlined_call_operand.vmem [shape: bf16[32,128], index: 1, kind: input, shape index: {}]   ;;  %s116_s0 = inlined_call_operand.vmem [shape: f32[16,32], index: 0, kind: input, shape index: {}]   ;;  %s117_s2 = inlined_call_operand.vmem [shape: f32[1,128], index: 2, kind: input, shape index: {}]   ;;  %s118_s3 = inlined_call_operand.vmem [shape: f32[16,128], index: 3, kind: output, shape index: {}]  }
   0x1   :  { %v72_v0 = vld [vmem:[%s115_s1 + $0x8] sm:$0xff]  ;;  %v71_v1 = vld [vmem:[%s115_s1] sm:$0xff] }
   0x2   :  { %48 = vmatpush.bf16.msra.mxu0 %v72_v0  ;;  %v15_v2 = vld [vmem:[%s116_s0] sm:$0xff]  ;;  %v16_v3 = vld [vmem:[%s116_s0 + $0x8] sm:$0xff] }
   0x3   :  { %v17_v4 = vpack.c.bf16 %v16_v3, %v15_v2  ;;  %v73_v5 = vld [vmem:[%s117_s2] ss:$0 sm:$0xff] }
   0x6   :  { %49 = vmatpush.bf16.msra.mxu0 %v71_v1 }
   0x9   :  { %70 = vmatmul.msk.bf16.vlgmr.msra.gmra.mxu0 %vm38_vm0, %v17_v4 }
  0x86   :  { %v51_v6 = vpop.f32.mrf.mxu0 }
  0x87   :  { %v52_v7 = vadd.f32 %v73_v5, %v51_v6 }
  0x89   :  { %56 = vst [vmem:[%s118_s3] sm:$0xff] %v52_v7 }
  0x8e   :  { %v53_v8 = vpop.f32.mrf.mxu0 }
  0x8f   :  { %v54_v9 = vadd.f32 %v73_v5, %v53_v8 }
  0x91   :  { %57 = vst [vmem:[%s118_s3 + $0x8] sm:$0xff] %v54_v9 }

// kernel: loss_fn.113
= control target key start
LH: loop header
LB: loop body
LE: loop exit
PB: predicated region body
PF: predicated region fallthrough
CT: control target
= control target key end

     0   :  { %s676_s1 = inlined_call_operand.vmem [shape: bf16[512,128], index: 1, kind: input, shape index: {}]   ;;  %s677_s2 = inlined_call_operand.vmem [shape: f32[1,128], index: 2, kind: input, shape index: {}]   ;;  %s678_s0 = inlined_call_operand.vmem [shape: f32[16,512], index: 0, kind: input, shape index: {}]   ;;  %s679_s3 = inlined_call_operand.vmem [shape: f32[16,128], index: 3, kind: input, shape index: {}]   ;;  %s680_s4 = inlined_call_operand.vmem [shape: f32[16,128], index: 4, kind: output, shape index: {}]  }
   0x1   :  { %v490_v0 = vld [vmem:[%s676_s1 + $0x38] sm:$0xff]  ;;  %v489_v4 = vld [vmem:[%s676_s1 + $0x30] sm:$0xff]  ;;  %v488_v8 = vld [vmem:[%s676_s1 + $0x28] sm:$0xff] }
   0x2   :  { %v498_v1 = vld [vmem:[%s676_s1 + $0x78] sm:$0xff]  ;;  %289 = vmatpush.bf16.msra.mxu0 %v490_v0  ;;  %v497_v5 = vld [vmem:[%s676_s1 + $0x70] sm:$0xff]  ;;  %v496_v9 = vld [vmem:[%s676_s1 + $0x68] sm:$0xff] }
   0x3   :  { %v506_v2 = vld [vmem:[%s676_s1 + $0xb8] sm:$0xff]  ;;  %303 = vmatpush.bf16.msra.mxu1 %v498_v1  ;;  %v505_v6 = vld [vmem:[%s676_s1 + $0xb0] sm:$0xff]  ;;  %v504_v10 = vld [vmem:[%s676_s1 + $0xa8] sm:$0xff] }
   0x4   :  { %v514_v3 = vld [vmem:[%s676_s1 + $0xf8] sm:$0xff]  ;;  %317 = vmatpush.bf16.msra.mxu2 %v506_v2  ;;  %v513_v7 = vld [vmem:[%s676_s1 + $0xf0] sm:$0xff]  ;;  %v512_v11 = vld [vmem:[%s676_s1 + $0xe8] sm:$0xff] }
   0x5   :  { %331 = vmatpush.bf16.msra.mxu3 %v514_v3  ;;  %v487_v12 = vld [vmem:[%s676_s1 + $0x20] sm:$0xff]  ;;  %v486_v16 = vld [vmem:[%s676_s1 + $0x18] sm:$0xff]  ;;  %v485_v20 = vld [vmem:[%s676_s1 + $0x10] sm:$0xff] }
   0x6   :  { %290 = vmatpush.bf16.msra.mxu0 %v489_v4  ;;  %v495_v13 = vld [vmem:[%s676_s1 + $0x60] sm:$0xff]  ;;  %v494_v17 = vld [vmem:[%s676_s1 + $0x58] sm:$0xff]  ;;  %v493_v21 = vld [vmem:[%s676_s1 + $0x50] sm:$0xff] }
   0x7   :  { %304 = vmatpush.bf16.msra.mxu1 %v497_v5  ;;  %v503_v14 = vld [vmem:[%s676_s1 + $0xa0] sm:$0xff]  ;;  %v502_v18 = vld [vmem:[%s676_s1 + $0x98] sm:$0xff]  ;;  %v501_v22 = vld [vmem:[%s676_s1 + $0x90] sm:$0xff] }
   0x8   :  { %318 = vmatpush.bf16.msra.mxu2 %v505_v6  ;;  %v511_v15 = vld [vmem:[%s676_s1 + $0xe0] sm:$0xff]  ;;  %v510_v19 = vld [vmem:[%s676_s1 + $0xd8] sm:$0xff]  ;;  %v509_v23 = vld [vmem:[%s676_s1 + $0xd0] sm:$0xff] }
   0x9   :  { %332 = vmatpush.bf16.msra.mxu3 %v513_v7  ;;  %v484_v24 = vld [vmem:[%s676_s1 + $0x8] sm:$0xff]  ;;  %v483_v28 = vld [vmem:[%s676_s1] sm:$0xff]  ;;  %v19_v36 = vld [vmem:[%s678_s0 + $0x10] sm:$0xff] }
   0xa   :  { %291 = vmatpush.bf16.msra.mxu0 %v488_v8  ;;  %v492_v25 = vld [vmem:[%s676_s1 + $0x48] sm:$0xff]  ;;  %v491_v29 = vld [vmem:[%s676_s1 + $0x40] sm:$0xff]  ;;  %v23_v37 = vld [vmem:[%s678_s0 + $0x30] sm:$0xff] }
   0xb   :  { %305 = vmatpush.bf16.msra.mxu1 %v496_v9  ;;  %v500_v26 = vld [vmem:[%s676_s1 + $0x88] sm:$0xff]  ;;  %v499_v30 = vld [vmem:[%s676_s1 + $0x80] sm:$0xff]  ;;  %v20_v38 = vld [vmem:[%s678_s0 + $0x18] sm:$0xff]  ;;  %v27_v42 = vpack.c.bf16 %v23_v37, %v19_v36 }
   0xc   :  { %319 = vmatpush.bf16.msra.mxu2 %v504_v10  ;;  %v508_v27 = vld [vmem:[%s676_s1 + $0xc8] sm:$0xff]  ;;  %v507_v31 = vld [vmem:[%s676_s1 + $0xc0] sm:$0xff]  ;;  %v24_v39 = vld [vmem:[%s678_s0 + $0x38] sm:$0xff] }
   0xd   :  { %333 = vmatpush.bf16.msra.mxu3 %v512_v11  ;;  %v17_v32 = vld [vmem:[%s678_s0] sm:$0xff]  ;;  %v18_v34 = vld [vmem:[%s678_s0 + $0x8] sm:$0xff]  ;;  %v28_v43 = vpack.c.bf16 %v24_v39, %v20_v38 }
   0xe   :  { %292 = vmatpush.bf16.msra.mxu0 %v487_v12  ;;  %v21_v33 = vld [vmem:[%s678_s0 + $0x20] sm:$0xff]  ;;  %v22_v35 = vld [vmem:[%s678_s0 + $0x28] sm:$0xff] }
   0xf   :  { %306 = vmatpush.bf16.msra.mxu1 %v495_v13  ;;  %v25_v40 = vpack.c.bf16 %v21_v33, %v17_v32  ;;  %v26_v41 = vpack.c.bf16 %v22_v35, %v18_v34  ;;  %v515_v44 = vld [vmem:[%s677_s2] ss:$0 sm:$0xff]  ;;  %v346_v62 = vld [vmem:[%s679_s3 + $0x8] sm:$0xff] }
  0x10   :  { %320 = vmatpush.bf16.msra.mxu2 %v503_v14  ;;  %v345_v53 = vld [vmem:[%s679_s3] sm:$0xff] }
  0x11   :  { %334 = vmatpush.bf16.msra.mxu3 %v511_v15 }
  0x12   :  { %293 = vmatpush.bf16.msra.mxu0 %v486_v16 }
  0x13   :  { %307 = vmatpush.bf16.msra.mxu1 %v494_v17 }
  0x14   :  { %321 = vmatpush.bf16.msra.mxu2 %v502_v18 }
  0x15   :  { %335 = vmatpush.bf16.msra.mxu3 %v510_v19 }
  0x16   :  { %294 = vmatpush.bf16.msra.mxu0 %v485_v20 }
  0x17   :  { %308 = vmatpush.bf16.msra.mxu1 %v493_v21 }
  0x18   :  { %322 = vmatpush.bf16.msra.mxu2 %v501_v22 }
  0x19   :  { %336 = vmatpush.bf16.msra.mxu3 %v509_v23 }
  0x1a   :  { %295 = vmatpush.bf16.msra.mxu0 %v484_v24 }
  0x1b   :  { %309 = vmatpush.bf16.msra.mxu1 %v492_v25 }
  0x1c   :  { %323 = vmatpush.bf16.msra.mxu2 %v500_v26 }
  0x1d   :  { %337 = vmatpush.bf16.msra.mxu3 %v508_v27 }
  0x1e   :  { %296 = vmatpush.bf16.msra.mxu0 %v483_v28 }
  0x1f   :  { %310 = vmatpush.bf16.msra.mxu1 %v491_v29 }
  0x20   :  { %324 = vmatpush.bf16.msra.mxu2 %v499_v30 }
  0x21   :  { %338 = vmatpush.bf16.msra.mxu3 %v507_v31  ;;  %297 = vmatmul.bf16.vlgmr.msra.gmra.mxu0 %v25_v40 }
  0x22   :  { %311 = vmatmul.bf16.vlgmr.msra.gmra.mxu1 %v26_v41 }
  0x23   :  { %325 = vmatmul.bf16.vlgmr.msra.gmra.mxu2 %v27_v42 }
  0x24   :  { %339 = vmatmul.bf16.vlgmr.msra.gmra.mxu3 %v28_v43 }
  0x9e   :  { %v298_v45 = vpop.f32.mrf.mxu0 }
  0x9f   :  { %v299_v46 = vadd.f32 %v515_v44, %v298_v45  ;;  %v312_v47 = vpop.f32.mrf.mxu1 }
  0xa1   :  { %v313_v48 = vadd.f32 %v312_v47, %v299_v46 }
  0xa6   :  { %v326_v49 = vpop.f32.mrf.mxu2  ;;  %v300_v52 = vpop.f32.mrf.mxu0 }
  0xa7   :  { %v340_v50 = vpop.f32.mrf.mxu3  ;;  %v327_v51 = vadd.f32 %v326_v49, %v313_v48  ;;  %v301_v55 = vadd.f32 %v515_v44, %v300_v52  ;;  %v314_v57 = vpop.f32.mrf.mxu1 }
  0xa9   :  { %v341_v54 = vadd.f32 %v340_v50, %v327_v51  ;;  %v315_v58 = vadd.f32 %v314_v57, %v301_v55 }
  0xab   :  { %v347_v56 = vadd.f32 %v345_v53, %v341_v54 }
  0xad   :  { %349 = vst [vmem:[%s680_s4] sm:$0xff] %v347_v56 }
  0xae   :  { %v328_v59 = vpop.f32.mrf.mxu2 }
  0xaf   :  { %v329_v60 = vadd.f32 %v328_v59, %v315_v58  ;;  %v342_v61 = vpop.f32.mrf.mxu3 }
  0xb1   :  { %v343_v63 = vadd.f32 %v342_v61, %v329_v60 }
  0xb3   :  { %v348_v0 = vadd.f32 %v346_v62, %v343_v63 }
  0xb5   :  { %350 = vst [vmem:[%s680_s4 + $0x8] sm:$0xff] %v348_v0 }

// kernel: loss_fn.115
= control target key start
LH: loop header
LB: loop body
LE: loop exit
PB: predicated region body
PF: predicated region fallthrough
CT: control target
= control target key end

     0   :  { %v162_v2 = vmov 0   ;;  %s199_s0 = inlined_call_operand.vmem [shape: f32[16,128], index: 0, kind: input, shape index: {}]   ;;  %s200_s1 = inlined_call_operand.vmem [shape: s32[16,1], index: 1, kind: input, shape index: {}]   ;;  %s201_s2 = inlined_call_operand.hbm [shape: f32[1,1], index: 2, kind: output, shape index: {}]  }
   0x1   :  { %v19_v0 = vld [vmem:[%s199_s0 + $0x8] sm:$0xff]  ;;  %124 = vset.pattern.permute.xlu1 %v162_v2 }
   0x2   :  { %v21_v1 = vld [vmem:[%s200_s1 + $0x8] sm:$0xff]  ;;  %24 = vmax.xlane.f32.xlu0 %v19_v0 }
   0x3   :  { %7 = vsyncpa [#allocation4], 0  ;;  %48 = vperm.xlu1 %124, %v21_v1   ;;  %125 = vset.pattern.permute.xlu0 %v162_v2  ;;  %v18_v3 = vld [vmem:[%s199_s0] sm:$0xff]  ;;  %v42_v5 = vlaneseq  ;;  %vm71_vm3 = vcmask 7168   ;;  %vm16_vm4 = vcmask 0   ;;  %v163_v37 = vmov 0.0  }
   0x4   :  { %v20_v4 = vld [vmem:[%s200_s1] sm:$0xff]  ;;  %17 = vst.msk [vmem:[#allocation2] sm:$0x1] %vm16_vm4, %v163_v37  ;;  %v164_v45 = vmov 14.0   ;;  %s165_s1 = smov [#allocation3]   ;;  %s109_s20 = sshll.u32 %s201_s2, 4  ;;  %s110_s20 = int_to_ptr.hbm [resolvable:$true] %s109_s20 }
   0x5   :  { %v43_v6 = vand.u32 127, %v42_v5  ;;  %v59_v23 = vshrl.u32 %v42_v5, 7  ;;  %s107_s17 = sshll.u32 %s165_s1, 4  ;;  %s108_s17 = int_to_ptr.vmem [resolvable:$true] %s107_s17 }
   0x7   :  { %v60_v25 = vadd.s32 8, %v59_v23 }
   0x9   :  { %vm66_vm2 = vcmp.lt.s32.totalorder %v60_v25, 14 }
   0xa   :  { %22 = vmax.xlane.f32.xlu0 %v18_v3 }
   0xb   :  { %45 = vperm.xlu1 %124, %v20_v4   ;;  %v84_v49 = vld [vmem:[#allocation2] sm:$0x1] }
  0x75   :  { %v25_v7 = vpop.xlane.xlu0 %24  ;;  %v49_v8 = vpop.permute.xlu1 %48 }
  0x76   :  { %v27_v9 = vsub.f32 %v19_v0, %v25_v7  ;;  %vm51_vm0 = vcmp.eq.s32.totalorder %v43_v6, %v49_v8 }
  0x77   :  { %v53_v10 = vsel %vm51_vm0, %v19_v0, 0.0 }
  0x78   :  { %v30_v11 = vmul.f32 1.442695, %v27_v9  ;;  %56 = vadd.xlane.f32.xlu0 %v53_v10 }
  0x7a   :  { %126 = vpow2.f32 %v30_v11 }
  0x7d   :  { %v23_v12 = vpop.xlane.xlu0 %22  ;;  %v46_v13 = vpop.permute.xlu1 %45 }
  0x7e   :  { %v26_v14 = vsub.f32 %v18_v3, %v23_v12  ;;  %vm50_vm1 = vcmp.eq.s32.totalorder %v43_v6, %v46_v13 }
  0x7f   :  { %v52_v15 = vsel %vm50_vm1, %v18_v3, 0.0 }
  0x80   :  { %v127_v16 = vpop.eup %126  ;;  %v28_v17 = vmul.f32 1.442695, %v26_v14  ;;  %54 = vadd.xlane.f32.xlu1 %v52_v15 }
  0x81   :  { %34 = vadd.xlane.f32.xlu2 %v127_v16 }
  0x82   :  { %128 = vpow2.f32 %v28_v17 }
  0x88   :  { %v129_v18 = vpop.eup %128 }
  0x89   :  { %32 = vadd.xlane.f32.xlu2 %v129_v18 }
  0xeb   :  { %v57_v26 = vpop.xlane.xlu0 %56 }
  0xf3   :  { %v55_v32 = vpop.xlane.xlu1 %54 }
  0xf4   :  { %v35_v19 = vpop.xlane.xlu2 %34 }
  0xf5   :  { %130 = vlog2.f32 %v35_v19 }
  0xfb   :  { %v131_v20 = vpop.eup %130 }
  0xfc   :  { %v39_v21 = vmul.f32 0.6931472, %v131_v20  ;;  %v33_v22 = vpop.xlane.xlu2 %32 }
  0xfd   :  { %132 = vlog2.f32 %v33_v22 }
  0xfe   :  { %v41_v24 = vadd.f32 %v39_v21, %v25_v7  ;;  %134 = vrcp.f32 %v164_v45 }
 0x100   :  { %v68_v28 = vsub.f32 %v41_v24, %v57_v26 }
 0x102   :  { %v70_v31 = vsel %vm66_vm2, %v68_v28, 0.0 }
 0x103   :  { %v133_v27 = vpop.eup %132  ;;  %v73_v35 = vsel %vm71_vm3, %v70_v31, 0.0 }
 0x104   :  { %v37_v29 = vmul.f32 0.6931472, %v133_v27  ;;  %v135_v46 = vpop.eup %134 }
 0x105   :  { %v94_v47 = vmul.f32 14.0, %v135_v46  ;;  %vm98_vm5 = vweird.f32 %v135_v46 }
 0x106   :  { %v40_v30 = vadd.f32 %v37_v29, %v23_v12 }
 0x107   :  { %v95_v48 = vsub.f32 1.0, %v94_v47 }
 0x108   :  { %v67_v33 = vsub.f32 %v40_v30, %v55_v32 }
 0x109   :  { %v96_v51 = vmul.f32 %v135_v46, %v95_v48 }
 0x10a   :  { %v72_v34 = vsel %vm71_vm3, %v67_v33, 0.0 }
 0x10b   :  { %v74_v36 = vadd.f32 %v73_v35, %v72_v34  ;;  %v97_v53 = vadd.f32 %v135_v46, %v96_v51 }
 0x10d   :  { %75 = vadd.xlane.f32.xlu2 %v74_v36  ;;  %v99_v54 = vsel %vm98_vm5, %v135_v46, %v97_v53 }
 0x180   :  { %v76_v38 = vpop.xlane.xlu2 %75 }
 0x181   :  { %v77_v39 = vrot.slane %v76_v38, 4 }
 0x183   :  { %v78_v40 = vadd.f32 %v77_v39, %v76_v38 }
 0x185   :  { %v79_v41 = vrot.slane %v78_v40, 2 }
 0x187   :  { %v80_v42 = vadd.f32 %v79_v41, %v78_v40 }
 0x189   :  { %v81_v43 = vrot.slane %v80_v42, 1 }
 0x18b   :  { %v82_v44 = vadd.f32 %v81_v43, %v80_v42 }
 0x18d   :  { %118 = vpush %v82_v44 }
 0x1be   :  { %s119_s0 = spop %118 }
 0x1bf   :  { %v85_v50 = vstv %s119_s0 }
 0x1c0   :  { %v86_v52 = vadd.f32 %v85_v50, %v84_v49 }
 0x1c2   :  { %88 = vst.msk [vmem:[#allocation2] sm:$0x1] %vm16_vm4, %v86_v52 }
 0x1c9   :  { %v92_v55 = vld [vmem:[#allocation2] sm:$0x1] }
 0x1ca   :  { %v100_v56 = vmul.f32 %v99_v54, %v92_v55 }
 0x1cc   :  { %101 = vst.msk [vmem:[#allocation3] sm:$0x1] %vm16_vm4, %v100_v56 }
 0x1cd   :  { %112 = dma.vmem_to_hbm [thread:$0]  %s108_s17, 16, %s110_s20, [#allocation4]  }
 0x1ce   :  { %160 = dma.done.wait [#allocation4], 16  }
 0x1cf   :  { %161 = vsyncadd [#allocation4], 4294967280 }
 0x1d0   :  { %117 = vsyncpa [#allocation4], 1 }

</bundles_post_ra>
